<compile_context>
chip_gen: v7x
topology: tpu7x:2x2x1
jax: 0.10.0
libtpu: 0.0.40
codegen_flags: <defaults>
</compile_context>

<pallas_src>
import functools
import numpy as np
import jax
import jax.numpy as jnp
from jax import lax
from jax.experimental import pallas as pl
from jax.experimental.pallas import tpu as pltpu


_BN_SCALE = float(1.0 / np.sqrt(1.0 + 1e-5))   # BatchNorm1d(1), eval mode, default stats
_LN_EPS = 1e-5

# TODO(synk): set to jnp.bfloat16 on v6e/v7x for 2x MXU rate / half the weight DMA bytes;
# kept f32 here for bit-parity with the f32 PyTorch reference at these tiny sizes.
_MXU_DTYPE = jnp.float32


# ----------------------------- in-kernel helpers -----------------------------

def _softplus(x):
    return jnp.maximum(x, 0.0) + jnp.log(1.0 + jnp.exp(-jnp.abs(x)))


def _silu(x):
    return x * jax.nn.sigmoid(x)


def _layer_norm(x, g, b):
    mu = jnp.mean(x, axis=-1, keepdims=True)
    var = jnp.mean(jnp.square(x - mu), axis=-1, keepdims=True)
    return (x - mu) * lax.rsqrt(var + _LN_EPS) * g + b


def _mm(a, b):
    return jnp.dot(a.astype(_MXU_DTYPE), b.astype(_MXU_DTYPE),
                   preferred_element_type=jnp.float32)


# ----------------------- generic M-tiled linear ------------------------------

def _linear_kernel(x_ref, w_ref, b_ref, o_ref):
    o_ref[...] = _mm(x_ref[...], w_ref[...]) + b_ref[...]


def pallas_linear(x, w, b=None, tm=256):
    """x: (..., K) @ w: (K, N) + b -> (..., N).  M axis tiled + parallel."""
    K = x.shape[-1]
    N = w.shape[1]
    lead = x.shape[:-1]
    x2 = x.reshape(-1, K).astype(jnp.float32)
    M = x2.shape[0]
    if b is None:
        b = jnp.zeros((N,), jnp.float32)
    tm = min(tm, M)
    out = pl.pallas_call(
        _linear_kernel,
        out_shape=jax.ShapeDtypeStruct((M, N), jnp.float32),
        grid=(pl.cdiv(M, tm),),
        in_specs=[pl.BlockSpec((tm, K), lambda i: (i, 0)),
                  pl.BlockSpec((K, N), lambda i: (0, 0)),
                  pl.BlockSpec((1, N), lambda i: (0, 0))],
        out_specs=pl.BlockSpec((tm, N), lambda i: (i, 0)),
        compiler_params=pltpu.CompilerParams(dimension_semantics=("parallel",)),
    )(x2, w.astype(jnp.float32), b.reshape(1, N).astype(jnp.float32))
    return out.reshape(lead + (N,))


# ------------------------------ front-end kernel -----------------------------
# per batch: LN(patch_dim) -> Linear(patch_dim, D) -> LN(D) -> in_proj_x -> in_proj_z -> +pos

def _frontend_kernel(img_ref, g0_ref, b0_ref, pew_ref, peb_ref, g1_ref, b1_ref,
                     wx_ref, bx_ref, wz_ref, bz_ref, pos_ref, x_ref, z_ref):
    h = _layer_norm(img_ref[0], g0_ref[...], b0_ref[...])
    h = _mm(h, pew_ref[...]) + peb_ref[...]
    h = _layer_norm(h, g1_ref[...], b1_ref[...])
    xp = _mm(h, wx_ref[...]) + bx_ref[...]
    z_ref[0] = _mm(xp, wz_ref[...]) + bz_ref[...]
    x_ref[0] = xp + pos_ref[...]


def frontend(img, p, pos):
    B, L, pd = img.shape
    D = p['pe_w'].shape[1]
    full = lambda r, c: pl.BlockSpec((r, c), lambda b: (0, 0))
    x, z = pl.pallas_call(
        _frontend_kernel,
        out_shape=(jax.ShapeDtypeStruct((B, L, D), jnp.float32),
                   jax.ShapeDtypeStruct((B, L, D), jnp.float32)),
        grid=(B,),
        in_specs=[pl.BlockSpec((1, L, pd), lambda b: (b, 0, 0)),
                  full(1, pd), full(1, pd),
                  full(pd, D), full(1, D), full(1, D), full(1, D),
                  full(D, D), full(1, D), full(D, D), full(1, D),
                  full(L, D)],                                 # pos shared by every step
        out_specs=(pl.BlockSpec((1, L, D), lambda b: (b, 0, 0)),
                   pl.BlockSpec((1, L, D), lambda b: (b, 0, 0))),
        compiler_params=pltpu.CompilerParams(dimension_semantics=("parallel",)),
    )(img.astype(jnp.float32),
      p['pe_ln0_g'].reshape(1, pd), p['pe_ln0_b'].reshape(1, pd),
      p['pe_w'], p['pe_b'].reshape(1, D),
      p['pe_ln1_g'].reshape(1, D), p['pe_ln1_b'].reshape(1, D),
      p['in_x_w'], p['in_x_b'].reshape(1, D),
      p['in_z_w'], p['in_z_b'].reshape(1, D),
      pos)
    return x, z


# --------------------- vim-block projections (both blocks) -------------------
# grid=(2 vims, B): LN -> proj -> {silu gate, fwd/bwd conv projections}
# TODO(synk): `vim` is not defined in the reference source; this follows zeta's
# VisionEncoderMambaBlock (norm -> proj -> two k=1 convs -> softplus -> shared SSM).

def _vim_proj_kernel(x_ref, lng_ref, lnb_ref, pw_ref, pb_ref, cw_ref, cb_ref,
                     zg_ref, conv_ref):
    xn = _layer_norm(x_ref[0], lng_ref[0], lnb_ref[0])
    z1 = _mm(xn, pw_ref[0]) + pb_ref[0]
    zg_ref[0, 0] = _silu(z1)
    conv_ref[0, 0, 0] = _mm(z1, cw_ref[0, 0]) + cb_ref[0, 0]   # forward conv branch
    conv_ref[0, 1, 0] = _mm(z1, cw_ref[0, 1]) + cb_ref[0, 1]   # backward conv branch


def vim_projections(x, st):
    B, L, D = x.shape
    widx = lambda v, b: (v, 0, 0)
    return pl.pallas_call(
        _vim_proj_kernel,
        out_shape=(jax.ShapeDtypeStruct((2, B, L, D), jnp.float32),
                   jax.ShapeDtypeStruct((2, 2, B, L, D), jnp.float32)),
        grid=(2, B),
        in_specs=[pl.BlockSpec((1, L, D), lambda v, b: (b, 0, 0)),
                  pl.BlockSpec((1, 1, D), widx),
                  pl.BlockSpec((1, 1, D), widx),
                  pl.BlockSpec((1, D, D), widx),
                  pl.BlockSpec((1, 1, D), widx),
                  pl.BlockSpec((1, 2, D, D), lambda v, b: (v, 0, 0, 0)),
                  pl.BlockSpec((1, 2, 1, D), lambda v, b: (v, 0, 0, 0))],
        out_specs=(pl.BlockSpec((1, 1, L, D), lambda v, b: (v, b, 0, 0)),
                   pl.BlockSpec((1, 2, 1, L, D), lambda v, b: (v, 0, b, 0, 0))),
        compiler_params=pltpu.CompilerParams(
            dimension_semantics=("parallel", "parallel")),
    )(x, st['ln_g'], st['ln_b'], st['proj_w'], st['proj_b'],
      st['conv_w'], st['conv_b'])


# ----------------- fused SSM: projections + scan + vim epilogue --------------
# grid = (vim, batch, direction); direction is the reduction axis (accumulated in VMEM).

def _fused_ssm_kernel(conv_ref, wd_ref, dtw_ref, dtb_ref, wb_ref, wc_ref,
                      at_ref, dv_ref, zg_ref, xres_ref, o_ref,
                      acc_ref, da_ref, bx_ref, hs_ref):
    d_idx = pl.program_id(2)
    L, D = acc_ref.shape
    N = at_ref.shape[1]

    @pl.when(d_idx == 0)
    def _():
        acc_ref[...] = jnp.zeros_like(acc_ref)

    xs = _softplus(conv_ref[0, 0, 0])                               # (L, D) scan input

    # fused x -> (delta, B, C) projections (weights stay VMEM-resident across the grid)
    delta = _softplus(_mm(_mm(xs, wd_ref[0]), dtw_ref[0]) + dtb_ref[0])   # (L, D)
    dtx = delta * xs
    Bm = _mm(xs, wb_ref[0])                                         # (L, N)
    Cm = _mm(xs, wc_ref[0])                                         # (L, N)

    # batched precompute of per-step recurrence operands: exp runs once over the whole
    # (L,N,D) slab on the EUP; the sequential chain below is 2 VPU ops per step.
    da_ref[...] = jnp.exp(delta[:, None, :] * at_ref[0][None, :, :])      # (L, N, D)
    bx_ref[...] = Bm[:, :, None] * dtx[:, None, :]                        # (L, N, D)

    def step(t, h):
        h = da_ref[t] * h + bx_ref[t]                               # (N, D)
        hs_ref[t] = h
        return h

    lax.fori_loop(0, L, step, jnp.zeros((N, D), jnp.float32),
                  unroll=(True if L <= 16 else 8))

    # y[t] = C[t] . h[t] as one batched broadcast-multiply + reduce over N, then a single
    # wide accumulator update (no per-row masked stores, no M=1 matmuls).
    y = jnp.sum(Cm[:, :, None] * hs_ref[...], axis=1)               # (L, D)
    acc_ref[...] += y + dv_ref[0] * xs

    @pl.when(d_idx == pl.num_programs(2) - 1)
    def _():
        # vim epilogue: (fwd + bwd) * silu(proj) + residual, then T_Mamba's tanh
        o_ref[0, 0] = jnp.tanh(acc_ref[...] * zg_ref[0, 0] + xres_ref[0])


def fused_selective_scan(conv, zg, x_res, ssm):
    """conv: (2 vims, 2 dirs, B, L, D) raw conv outputs (pre-softplus)."""
    V, DIRS, B, L, D = conv.shape
    N = ssm['A_t'].shape[1]
    R = ssm['w_delta'].shape[2]
    vidx = lambda v, b, d: (v, 0, 0)
    return pl.pallas_call(
        _fused_ssm_kernel,
        out_shape=jax.ShapeDtypeStruct((V, B, L, D), jnp.float32),
        grid=(V, B, DIRS),
        in_specs=[
            pl.BlockSpec((1, 1, 1, L, D), lambda v, b, d: (v, d, b, 0, 0)),
            pl.BlockSpec((1, D, R), vidx),
            pl.BlockSpec((1, R, D), vidx),
            pl.BlockSpec((1, 1, D), vidx),
            pl.BlockSpec((1, D, N), vidx),
            pl.BlockSpec((1, D, N), vidx),
            pl.BlockSpec((1, N, D), vidx),
            pl.BlockSpec((1, 1, D), vidx),
            pl.BlockSpec((1, 1, L, D), lambda v, b, d: (v, b, 0, 0)),   # silu gate
            pl.BlockSpec((1, L, D), lambda v, b, d: (b, 0, 0)),         # residual
        ],
        out_specs=pl.BlockSpec((1, 1, L, D), lambda v, b, d: (v, b, 0, 0)),
        scratch_shapes=[pltpu.VMEM((L, D), jnp.float32),
                        pltpu.VMEM((L, N, D), jnp.float32),
                        pltpu.VMEM((L, N, D), jnp.float32),
                        pltpu.VMEM((L, N, D), jnp.float32)],
        compiler_params=pltpu.CompilerParams(
            dimension_semantics=("parallel", "parallel", "arbitrary")),
    )(conv, ssm['w_delta'], ssm['dt_w'], ssm['dt_b'], ssm['w_B'], ssm['w_C'],
      ssm['A_t'], ssm['D_vec'], zg, x_res)


# --------------- fused token stage: pro_to_cat + SA + STL + pool -------------

def _token_stage_kernel(saw_ref, tfsaw_ref, ycat_ref, ym_ref, z_ref,
                        catw_ref, catb_ref, u1t_ref, u2_ref, pt_ref,
                        zw_ref, zb_ref, u_ref, zhat_ref, masked_ref):
    y = _mm(ycat_ref[0], catw_ref[...]) + catb_ref[...]              # (L, C)
    s_hat = y * ym_ref[0]
    C = s_hat.shape[1]
    mx = jnp.max(s_hat, axis=1, keepdims=True)
    av = jnp.sum(s_hat, axis=1, keepdims=True) * (1.0 / C)
    gate = jax.nn.sigmoid(jnp.maximum(
        (saw_ref[0] * mx + saw_ref[1] * av + saw_ref[2]) * _BN_SCALE, 0.0))
    m_hat = s_hat * gate                                             # (L, C) channels-last

    # STL: softmax over L, then one MXU contraction over L (no Python token loop)
    A = _mm(m_hat, u1t_ref[...])                                     # (L, S)
    A = A - jnp.max(A, axis=0, keepdims=True)
    e = jnp.exp(A)
    Asm = e * pl.reciprocal(jnp.sum(e, axis=0, keepdims=True), approx=True)
    V = _mm(m_hat, u2_ref[...])                                      # (L, C)
    u_ref[0] = lax.dot_general(Asm, V, (((0,), (0,)), ((), ())),
                               preferred_element_type=jnp.float32)   # (S, C)

    # adaptive avg-pool (as matmul) + silu -> z_line, then TokenFuser z_hat / gate
    z_line = _silu(_mm(pt_ref[...], z_ref[0]))                       # (S, C)
    zhat_ref[0] = jax.nn.sigmoid(_mm(z_line, zw_ref[...]) + zb_ref[...])
    mx2 = jnp.max(z_line, axis=1, keepdims=True)
    av2 = jnp.sum(z_line, axis=1, keepdims=True) * (1.0 / C)
    gate2 = jax.nn.sigmoid(jnp.maximum(
        (tfsaw_ref[0] * mx2 + tfsaw_ref[1] * av2 + tfsaw_ref[2]) * _BN_SCALE, 0.0))
    masked_ref[0] = z_line * gate2                                   # TokenFuser m_hat^T


def token_stage(y_cat, y_mask, z_blc, tw):
    B, L, C2 = y_cat.shape
    C = tw['cat_w'].shape[1]
    S = tw['U1T'].shape[1]
    smem = pl.BlockSpec(memory_space=pltpu.MemorySpace.SMEM)
    return pl.pallas_call(
        _token_stage_kernel,
        out_shape=(jax.ShapeDtypeStruct((B, S, C), jnp.float32),
                   jax.ShapeDtypeStruct((B, S, S), jnp.float32),
                   jax.ShapeDtypeStruct((B, S, C), jnp.float32)),
        grid=(B,),
        in_specs=[smem, smem,
                  pl.BlockSpec((1, L, C2), lambda b: (b, 0, 0)),
                  pl.BlockSpec((1, L, 1), lambda b: (b, 0, 0)),
                  pl.BlockSpec((1, L, C), lambda b: (b, 0, 0)),
                  pl.BlockSpec((C2, C), lambda b: (0, 0)),
                  pl.BlockSpec((1, C), lambda b: (0, 0)),
                  pl.BlockSpec((C, S), lambda b: (0, 0)),
                  pl.BlockSpec((C, C), lambda b: (0, 0)),
                  pl.BlockSpec((S, L), lambda b: (0, 0)),
                  pl.BlockSpec((C, S), lambda b: (0, 0)),
                  pl.BlockSpec((1, S), lambda b: (0, 0))],
        out_specs=(pl.BlockSpec((1, S, C), lambda b: (b, 0, 0)),
                   pl.BlockSpec((1, S, S), lambda b: (b, 0, 0)),
                   pl.BlockSpec((1, S, C), lambda b: (b, 0, 0))),
        compiler_params=pltpu.CompilerParams(dimension_semantics=("parallel",)),
    )(tw['sa_w'], tw['tf_sa_w'], y_cat, y_mask, z_blc,
      tw['cat_w'], tw['cat_b'], tw['U1T'], tw['U2'], tw['PT'],
      tw['Z_w'], tw['Z_b'])


# ------------------ fuser: z_hat@u_p + m_line -> out_proj -> tanh ------------

def _fuser_kernel(zhat_ref, up_ref, ml_ref, ow_ref, ob_ref, o_ref):
    u_line = _mm(zhat_ref[0], up_ref[0])
    o_ref[0] = jnp.tanh(_mm(u_line + ml_ref[0], ow_ref[...]) + ob_ref[...])


def token_fuse(z_hat, u_p, m_line, out_w, out_b):
    B, S, C = u_p.shape
    return pl.pallas_call(
        _fuser_kernel,
        out_shape=jax.ShapeDtypeStruct((B, S, C), jnp.float32),
        grid=(B,),
        in_specs=[pl.BlockSpec((1, S, S), lambda b: (b, 0, 0)),
                  pl.BlockSpec((1, S, C), lambda b: (b, 0, 0)),
                  pl.BlockSpec((1, S, C), lambda b: (b, 0, 0)),
                  pl.BlockSpec((C, C), lambda b: (0, 0)),
                  pl.BlockSpec((1, C), lambda b: (0, 0))],
        out_specs=pl.BlockSpec((1, S, C), lambda b: (b, 0, 0)),
        compiler_params=pltpu.CompilerParams(dimension_semantics=("parallel",)),
    )(z_hat, u_p, m_line, out_w, out_b.reshape(1, C))


# -------------------------------- JAX glue -----------------------------------

def gaussian_mask_index(B, L):
    center = (L + 1) // 2
    idx = jnp.arange(L, dtype=jnp.float32)
    sigma = jnp.mean(jnp.abs(idx - center))
    w = jnp.exp(-0.5 * jnp.square(idx - center) / jnp.square(sigma))
    w = w / jnp.sum(w)
    return jnp.broadcast_to(w[None, :], (B, L))


def gaussian_mask_vector(seq):
    B, L, _ = seq.shape
    center = (L + 1) // 2
    ref = seq[:, center, :]
    d = jnp.sqrt(jnp.sum(jnp.square(seq - ref[:, None, :]), axis=2))   # (B, L)
    sigma = jnp.mean(d, axis=1, keepdims=True)
    w = jnp.exp(-0.5 * jnp.square(d / sigma))
    return w / jnp.sum(w, axis=1, keepdims=True)


def adaptive_pool_matrix(L, S):
    """(S, L) matrix equivalent to nn.AdaptiveAvgPool1d(S) over a length-L axis."""
    P = np.zeros((S, L), np.float32)
    for i in range(S):
        start = (i * L) // S
        end = -((-(i + 1) * L) // S)
        P[i, start:end] = 1.0 / (end - start)
    return jnp.asarray(P)


def t_mamba_forward(img, params, cfg):
    dim, L, S = cfg['dim'], cfg['seq_length'], cfg['num_tokens']
    N, R = cfg['d_state'], cfg['dt_rank']
    B = img.shape[0]
    pos = params['pos_emb'][0, :L].astype(jnp.float32)               # (L, dim), shared

    # ---- front end (patch embedding + in_proj_x/in_proj_z + pos) ----
    if img.shape[-1] == cfg['patch_dim']:
        x, z = frontend(img, params, pos)                            # (B, L, dim) x2
    else:
        # TODO(synk): rare path (input already embedded); plain linears suffice here.
        x0 = pallas_linear(img.reshape(B * L, -1), params['in_x_w'], params['in_x_b'])
        z = pallas_linear(x0, params['in_z_w'], params['in_z_b']).reshape(B, L, dim)
        x = x0.reshape(B, L, dim) + pos[None]

    # ---- the two vim blocks (reference feeds x_sub1 to BOTH vims; no flip) ----
    v1, v2 = params['vim1'], params['vim2']
    st = dict(
        ln_g=jnp.stack([v1['ln_g'], v2['ln_g']]).reshape(2, 1, dim),
        ln_b=jnp.stack([v1['ln_b'], v2['ln_b']]).reshape(2, 1, dim),
        proj_w=jnp.stack([v1['proj_w'], v2['proj_w']]),
        proj_b=jnp.stack([v1['proj_b'], v2['proj_b']]).reshape(2, 1, dim),
        conv_w=jnp.stack([jnp.stack([v1['fwd_conv_w'], v1['bwd_conv_w']]),
                          jnp.stack([v2['fwd_conv_w'], v2['bwd_conv_w']])]),  # (2,2,D,D)
        conv_b=jnp.stack([jnp.stack([v1['fwd_conv_b'], v1['bwd_conv_b']]),
                          jnp.stack([v2['fwd_conv_b'], v2['bwd_conv_b']])]
                         ).reshape(2, 2, 1, dim),
    )
    zg, conv = vim_projections(x, st)             # (2,B,L,dim), (2,2,B,L,dim)

    ssm = dict(
        w_delta=jnp.stack([v1['ssm']['dbc_w'][:, :R], v2['ssm']['dbc_w'][:, :R]]),
        w_B=jnp.stack([v1['ssm']['dbc_w'][:, R:R + N], v2['ssm']['dbc_w'][:, R:R + N]]),
        w_C=jnp.stack([v1['ssm']['dbc_w'][:, R + N:], v2['ssm']['dbc_w'][:, R + N:]]),
        dt_w=jnp.stack([v1['ssm']['dt_w'], v2['ssm']['dt_w']]),
        dt_b=jnp.stack([v1['ssm']['dt_b'], v2['ssm']['dt_b']]).reshape(2, 1, dim),
        A_t=jnp.stack([(-jnp.exp(v1['ssm']['A_log'])).T,
                       (-jnp.exp(v2['ssm']['A_log'])).T]),            # (2, N, dim)
        D_vec=jnp.stack([v1['ssm']['D'], v2['ssm']['D']]).reshape(2, 1, dim),
    )
    y_vims = fused_selective_scan(conv, zg, x, ssm)                   # (2, B, L, dim)
    y_f, y_b = y_vims[0], y_vims[1]

    # ---- gaussian masks + concat (plain JAX, tiny / data-dependent norms) ----
    gi = gaussian_mask_index(B, L)
    y_f_mask = jax.nn.softmax(gi * gaussian_mask_vector(y_f), axis=1)
    y_b_mask = jax.nn.softmax(gi * gaussian_mask_vector(y_b), axis=1)
    y_cat = jnp.concatenate(
        [y_f * y_f_mask[..., None],
         y_b * jnp.flip(y_b_mask[..., None], axis=1)], axis=-1)       # (B, L, 2*dim)
    y_mask = jax.nn.softmax(gi * gaussian_mask_vector(y_cat), axis=1)

    # ---- fused pro_to_cat + spatial attention + STL + pooling + TokenFuser pieces ----
    tw = dict(
        sa_w=params['sa_w'].astype(jnp.float32),
        tf_sa_w=params['tf']['sa_w'].astype(jnp.float32),
        cat_w=params['cat_w'], cat_b=params['cat_b'].reshape(1, dim),
        U1T=jnp.transpose(params['U1'][0]),          # (dim, S)
        U2=params['U2'][0],                          # (dim, dim)
        PT=adaptive_pool_matrix(L, S),               # (S, L)
        Z_w=params['tf']['Z_w'], Z_b=params['tf']['Z_b'].reshape(1, S),
    )
    u, z_hat, masked = token_stage(y_cat, y_mask[..., None], z, tw)

    # TokenFuser's raw .view(B,C,S)/.reshape(B,S,C) reinterpretations force these tiny
    # XLA reshapes between the projection and the fuse (reference semantics).
    u_p = pallas_linear(u.reshape(B * dim, S), params['tf']['proj_w'],
                        params['tf']['proj_b']).reshape(B, S, dim)
    m_line = jnp.transpose(masked, (0, 2, 1)).reshape(B, S, dim)
    out = token_fuse(z_hat, u_p, m_line, params['out_w'], params['out_b'])
    return out


# --------------------------- deterministic params ----------------------------

def init_params(cfg, key):
    dim, L, S = cfg['dim'], cfg['seq_length'], cfg['num_tokens']
    pd, dt_rank, N = cfg['patch_dim'], cfg['dt_rank'], cfg['d_state']
    keys = iter(jax.random.split(key, 64))

    def rnd(*shape, scale=0.1):
        return (scale * jax.random.normal(next(keys), shape)).astype(jnp.float32)

    def vim_params():
        return dict(
            ln_g=jnp.ones((dim,), jnp.float32), ln_b=jnp.zeros((dim,), jnp.float32),
            proj_w=rnd(dim, dim), proj_b=rnd(dim),
            fwd_conv_w=rnd(dim, dim), fwd_conv_b=rnd(dim),
            bwd_conv_w=rnd(dim, dim), bwd_conv_b=rnd(dim),
            ssm=dict(
                A_log=jnp.log(jnp.tile(
                    jnp.arange(1, N + 1, dtype=jnp.float32)[None, :], (dim, 1))),
                D=jnp.ones((dim,), jnp.float32),
                dbc_w=rnd(dim, dt_rank + 2 * N),
                dt_w=rnd(dt_rank, dim), dt_b=rnd(dim),
            ))

    return dict(
        pe_ln0_g=jnp.ones((pd,), jnp.float32), pe_ln0_b=jnp.zeros((pd,), jnp.float32),
        pe_w=rnd(pd, dim), pe_b=rnd(dim),
        pe_ln1_g=jnp.ones((dim,), jnp.float32), pe_ln1_b=jnp.zeros((dim,), jnp.float32),
        in_x_w=rnd(dim, dim), in_x_b=rnd(dim),
        in_z_w=rnd(dim, dim), in_z_b=rnd(dim),
        pos_emb=rnd(1, L, dim, scale=0.5),
        vim1=vim_params(), vim2=vim_params(),
        cat_w=rnd(2 * dim, dim), cat_b=rnd(dim),
        sa_w=rnd(3, scale=0.5),
        U1=rnd(1, S, dim, scale=float(np.sqrt(2.0 / (S + dim)))),     # xavier_normal-like
        U2=rnd(1, dim, dim, scale=float(np.sqrt(2.0 / (dim + dim)))),
        tf=dict(proj_w=rnd(S, S), proj_b=rnd(S),
                Z_w=rnd(dim, S), Z_b=rnd(S),
                sa_w=rnd(3, scale=0.5)),
        out_w=rnd(dim, dim), out_b=rnd(dim),
    )


if __name__ == "__main__":
    # small shapes: batch=2, channels(=patch_dim)=4, seq_length=9, num_tokens=5, dim=32
    cfg = dict(dim=32, seq_length=9, num_tokens=5, patch_dim=4, dt_rank=32, d_state=16)
    key = jax.random.PRNGKey(0)
    k_img, k_par = jax.random.split(key)
    params = init_params(cfg, k_par)
    B = 2
    # TODO(synk): `snake_flatten` (4D NCHW -> snake-ordered (B, L, C)) is not defined in
    # the reference source; the example input is supplied already flattened (B, L, patch_dim).
    img = jax.random.normal(k_img, (B, cfg['seq_length'], cfg['patch_dim']),
                            dtype=jnp.float32)

    fwd = jax.jit(functools.partial(t_mamba_forward, cfg=cfg))
    out = jax.block_until_ready(fwd(img, params))
    assert out.shape == (B, cfg['num_tokens'], cfg['dim'])
    assert bool(jnp.all(jnp.isfinite(out)))
    print("KERNEL_OK")
</pallas_src>

<mosaic_0001>
module attributes {stable_mosaic.version = 11 : i64} {
  func.func @_frontend_kernel(%arg0: i32, %arg1: memref<1x9x4xf32, #tpu.memory_space<vmem>>, %arg2: memref<1x4xf32, #tpu.memory_space<vmem>>, %arg3: memref<1x4xf32, #tpu.memory_space<vmem>>, %arg4: memref<4x32xf32, #tpu.memory_space<vmem>>, %arg5: memref<1x32xf32, #tpu.memory_space<vmem>>, %arg6: memref<1x32xf32, #tpu.memory_space<vmem>>, %arg7: memref<1x32xf32, #tpu.memory_space<vmem>>, %arg8: memref<32x32xf32, #tpu.memory_space<vmem>>, %arg9: memref<1x32xf32, #tpu.memory_space<vmem>>, %arg10: memref<32x32xf32, #tpu.memory_space<vmem>>, %arg11: memref<1x32xf32, #tpu.memory_space<vmem>>, %arg12: memref<9x32xf32, #tpu.memory_space<vmem>>, %arg13: memref<1x9x32xf32, #tpu.memory_space<vmem>>, %arg14: memref<1x9x32xf32, #tpu.memory_space<vmem>>) attributes {dimension_semantics = [#tpu.dimension_semantics<parallel>], iteration_bounds = array<i64: 2>, scalar_prefetch = 0 : i64, scratch_operands = 0 : i64, tpu.core_type = #tpu.core_type<tc>, window_params = [{transform_indices = @transform_0, window_bounds = array<i64: 1, 9, 4>}, {pipeline_mode = #tpu.pipeline_mode<synchronous>, transform_indices = @transform_1, window_bounds = array<i64: 1, 4>}, {pipeline_mode = #tpu.pipeline_mode<synchronous>, transform_indices = @transform_2, window_bounds = array<i64: 1, 4>}, {pipeline_mode = #tpu.pipeline_mode<synchronous>, transform_indices = @transform_3, window_bounds = array<i64: 4, 32>}, {pipeline_mode = #tpu.pipeline_mode<synchronous>, transform_indices = @transform_4, window_bounds = array<i64: 1, 32>}, {pipeline_mode = #tpu.pipeline_mode<synchronous>, transform_indices = @transform_5, window_bounds = array<i64: 1, 32>}, {pipeline_mode = #tpu.pipeline_mode<synchronous>, transform_indices = @transform_6, window_bounds = array<i64: 1, 32>}, {pipeline_mode = #tpu.pipeline_mode<synchronous>, transform_indices = @transform_7, window_bounds = array<i64: 32, 32>}, {pipeline_mode = #tpu.pipeline_mode<synchronous>, transform_indices = @transform_8, window_bounds = array<i64: 1, 32>}, {pipeline_mode = #tpu.pipeline_mode<synchronous>, transform_indices = @transform_9, window_bounds = array<i64: 32, 32>}, {pipeline_mode = #tpu.pipeline_mode<synchronous>, transform_indices = @transform_10, window_bounds = array<i64: 1, 32>}, {pipeline_mode = #tpu.pipeline_mode<synchronous>, transform_indices = @transform_11, window_bounds = array<i64: 9, 32>}, {transform_indices = @transform_12, window_bounds = array<i64: 1, 9, 32>}, {transform_indices = @transform_13, window_bounds = array<i64: 1, 9, 32>}]} {
    %c0 = arith.constant 0 : index
    %c0_0 = arith.constant 0 : index
    %c0_1 = arith.constant 0 : index
    %0 = vector.load %arg1[%c0, %c0_0, %c0_1] : memref<1x9x4xf32, #tpu.memory_space<vmem>>, vector<1x9x4xf32>
    %1 = vector.shape_cast %0 : vector<1x9x4xf32> to vector<9x4xf32>
    %c0_2 = arith.constant 0 : index
    %c0_3 = arith.constant 0 : index
    %2 = vector.load %arg2[%c0_2, %c0_3] : memref<1x4xf32, #tpu.memory_space<vmem>>, vector<1x4xf32>
    %c0_4 = arith.constant 0 : index
    %c0_5 = arith.constant 0 : index
    %3 = vector.load %arg3[%c0_4, %c0_5] : memref<1x4xf32, #tpu.memory_space<vmem>>, vector<1x4xf32>
    %cst = arith.constant dense<0.000000e+00> : vector<9xf32>
    %4 = vector.multi_reduction <add>, %1, %cst [1] : vector<9x4xf32> to vector<9xf32>
    %5 = vector.shape_cast %4 : vector<9xf32> to vector<9x1xf32>
    %cst_6 = arith.constant 4.000000e+00 : f32
    %6 = vector.broadcast %cst_6 : f32 to vector<9x1xf32>
    %7 = arith.divf %5, %6 : vector<9x1xf32>
    %8 = vector.broadcast %7 : vector<9x1xf32> to vector<9x4xf32>
    %9 = arith.subf %1, %8 : vector<9x4xf32>
    %10 = arith.mulf %9, %9 : vector<9x4xf32>
    %cst_7 = arith.constant dense<0.000000e+00> : vector<9xf32>
    %11 = vector.multi_reduction <add>, %10, %cst_7 [1] : vector<9x4xf32> to vector<9xf32>
    %12 = vector.shape_cast %11 : vector<9xf32> to vector<9x1xf32>
    %cst_8 = arith.constant 4.000000e+00 : f32
    %13 = vector.broadcast %cst_8 : f32 to vector<9x1xf32>
    %14 = arith.divf %12, %13 : vector<9x1xf32>
    %15 = vector.broadcast %7 : vector<9x1xf32> to vector<9x4xf32>
    %16 = arith.subf %1, %15 : vector<9x4xf32>
    %cst_9 = arith.constant 9.99999974E-6 : f32
    %17 = vector.broadcast %cst_9 : f32 to vector<9x1xf32>
    %18 = arith.addf %14, %17 : vector<9x1xf32>
    %19 = math.rsqrt %18 : vector<9x1xf32>
    %20 = vector.broadcast %19 : vector<9x1xf32> to vector<9x4xf32>
    %21 = arith.mulf %16, %20 : vector<9x4xf32>
    %22 = vector.broadcast %2 : vector<1x4xf32> to vector<9x4xf32>
    %23 = arith.mulf %21, %22 : vector<9x4xf32>
    %24 = vector.broadcast %3 : vector<1x4xf32> to vector<9x4xf32>
    %25 = arith.addf %23, %24 : vector<9x4xf32>
    %c0_10 = arith.constant 0 : index
    %c0_11 = arith.constant 0 : index
    %26 = vector.load %arg4[%c0_10, %c0_11] : memref<4x32xf32, #tpu.memory_space<vmem>>, vector<4x32xf32>
    %cst_12 = arith.constant dense<0.000000e+00> : vector<9x32xf32>
    %27 = tpu.matmul %25, %26, %cst_12 {dimension_numbers = #tpu.dot_dimension_numbers<[1], [0], [0], [1], [0, 0, 1, 1], [], []>} : vector<9x4xf32>, vector<4x32xf32>, vector<9x32xf32> -> vector<9x32xf32>
    %c0_13 = arith.constant 0 : index
    %c0_14 = arith.constant 0 : index
    %28 = vector.load %arg5[%c0_13, %c0_14] : memref<1x32xf32, #tpu.memory_space<vmem>>, vector<1x32xf32>
    %29 = vector.broadcast %28 : vector<1x32xf32> to vector<9x32xf32>
    %30 = arith.addf %27, %29 : vector<9x32xf32>
    %c0_15 = arith.constant 0 : index
    %c0_16 = arith.constant 0 : index
    %31 = vector.load %arg6[%c0_15, %c0_16] : memref<1x32xf32, #tpu.memory_space<vmem>>, vector<1x32xf32>
    %c0_17 = arith.constant 0 : index
    %c0_18 = arith.constant 0 : index
    %32 = vector.load %arg7[%c0_17, %c0_18] : memref<1x32xf32, #tpu.memory_space<vmem>>, vector<1x32xf32>
    %cst_19 = arith.constant dense<0.000000e+00> : vector<9xf32>
    %33 = vector.multi_reduction <add>, %30, %cst_19 [1] : vector<9x32xf32> to vector<9xf32>
    %34 = vector.shape_cast %33 : vector<9xf32> to vector<9x1xf32>
    %cst_20 = arith.constant 3.200000e+01 : f32
    %35 = vector.broadcast %cst_20 : f32 to vector<9x1xf32>
    %36 = arith.divf %34, %35 : vector<9x1xf32>
    %37 = vector.broadcast %36 : vector<9x1xf32> to vector<9x32xf32>
    %38 = arith.subf %30, %37 : vector<9x32xf32>
    %39 = arith.mulf %38, %38 : vector<9x32xf32>
    %cst_21 = arith.constant dense<0.000000e+00> : vector<9xf32>
    %40 = vector.multi_reduction <add>, %39, %cst_21 [1] : vector<9x32xf32> to vector<9xf32>
    %41 = vector.shape_cast %40 : vector<9xf32> to vector<9x1xf32>
    %cst_22 = arith.constant 3.200000e+01 : f32
    %42 = vector.broadcast %cst_22 : f32 to vector<9x1xf32>
    %43 = arith.divf %41, %42 : vector<9x1xf32>
    %44 = vector.broadcast %36 : vector<9x1xf32> to vector<9x32xf32>
    %45 = arith.subf %30, %44 : vector<9x32xf32>
    %cst_23 = arith.constant 9.99999974E-6 : f32
    %46 = vector.broadcast %cst_23 : f32 to vector<9x1xf32>
    %47 = arith.addf %43, %46 : vector<9x1xf32>
    %48 = math.rsqrt %47 : vector<9x1xf32>
    %49 = vector.broadcast %48 : vector<9x1xf32> to vector<9x32xf32>
    %50 = arith.mulf %45, %49 : vector<9x32xf32>
    %51 = vector.broadcast %31 : vector<1x32xf32> to vector<9x32xf32>
    %52 = arith.mulf %50, %51 : vector<9x32xf32>
    %53 = vector.broadcast %32 : vector<1x32xf32> to vector<9x32xf32>
    %54 = arith.addf %52, %53 : vector<9x32xf32>
    %c0_24 = arith.constant 0 : index
    %c0_25 = arith.constant 0 : index
    %55 = vector.load %arg8[%c0_24, %c0_25] : memref<32x32xf32, #tpu.memory_space<vmem>>, vector<32x32xf32>
    %cst_26 = arith.constant dense<0.000000e+00> : vector<9x32xf32>
    %56 = tpu.matmul %54, %55, %cst_26 {dimension_numbers = #tpu.dot_dimension_numbers<[1], [0], [0], [1], [0, 0, 1, 1], [], []>} : vector<9x32xf32>, vector<32x32xf32>, vector<9x32xf32> -> vector<9x32xf32>
    %c0_27 = arith.constant 0 : index
    %c0_28 = arith.constant 0 : index
    %57 = vector.load %arg9[%c0_27, %c0_28] : memref<1x32xf32, #tpu.memory_space<vmem>>, vector<1x32xf32>
    %58 = vector.broadcast %57 : vector<1x32xf32> to vector<9x32xf32>
    %59 = arith.addf %56, %58 : vector<9x32xf32>
    %c0_29 = arith.constant 0 : index
    %c0_30 = arith.constant 0 : index
    %60 = vector.load %arg10[%c0_29, %c0_30] : memref<32x32xf32, #tpu.memory_space<vmem>>, vector<32x32xf32>
    %cst_31 = arith.constant dense<0.000000e+00> : vector<9x32xf32>
    %61 = tpu.matmul %59, %60, %cst_31 {dimension_numbers = #tpu.dot_dimension_numbers<[1], [0], [0], [1], [0, 0, 1, 1], [], []>} : vector<9x32xf32>, vector<32x32xf32>, vector<9x32xf32> -> vector<9x32xf32>
    %c0_32 = arith.constant 0 : index
    %c0_33 = arith.constant 0 : index
    %62 = vector.load %arg11[%c0_32, %c0_33] : memref<1x32xf32, #tpu.memory_space<vmem>>, vector<1x32xf32>
    %63 = vector.broadcast %62 : vector<1x32xf32> to vector<9x32xf32>
    %64 = arith.addf %61, %63 : vector<9x32xf32>
    %c0_34 = arith.constant 0 : index
    %c0_35 = arith.constant 0 : index
    %c0_36 = arith.constant 0 : index
    %65 = vector.load %arg14[%c0_34, %c0_35, %c0_36] : memref<1x9x32xf32, #tpu.memory_space<vmem>>, vector<1x9x32xf32>
    %66 = vector.shape_cast %65 : vector<1x9x32xf32> to vector<9x32xf32>
    %67 = vector.shape_cast %64 : vector<9x32xf32> to vector<1x9x32xf32>
    tpu.vector_store %arg14[%c0_34, %c0_35, %c0_36], %67 {strides = array<i32>} : memref<1x9x32xf32, #tpu.memory_space<vmem>>, vector<1x9x32xf32>,
    %c0_37 = arith.constant 0 : index
    %c0_38 = arith.constant 0 : index
    %68 = vector.load %arg12[%c0_37, %c0_38] : memref<9x32xf32, #tpu.memory_space<vmem>>, vector<9x32xf32>
    %69 = arith.addf %59, %68 : vector<9x32xf32>
    %c0_39 = arith.constant 0 : index
    %c0_40 = arith.constant 0 : index
    %c0_41 = arith.constant 0 : index
    %70 = vector.load %arg13[%c0_39, %c0_40, %c0_41] : memref<1x9x32xf32, #tpu.memory_space<vmem>>, vector<1x9x32xf32>
    %71 = vector.shape_cast %70 : vector<1x9x32xf32> to vector<9x32xf32>
    %72 = vector.shape_cast %69 : vector<9x32xf32> to vector<1x9x32xf32>
    tpu.vector_store %arg13[%c0_39, %c0_40, %c0_41], %72 {strides = array<i32>} : memref<1x9x32xf32, #tpu.memory_space<vmem>>, vector<1x9x32xf32>,
    return
  }
  func.func @transform_0(%arg0: i32) -> (i32, i32, i32) {
    %c0_i32 = arith.constant 0 : i32
    %c0_i32_0 = arith.constant 0 : i32
    %c0_i32_1 = arith.constant 0 : i32
    return %arg0, %c0_i32, %c0_i32_0 : i32, i32, i32
  }
  func.func @transform_1(%arg0: i32) -> (i32, i32) {
    %c0_i32 = arith.constant 0 : i32
    %c0_i32_0 = arith.constant 0 : i32
    %c0_i32_1 = arith.constant 0 : i32
    return %c0_i32, %c0_i32_0 : i32, i32
  }
  func.func @transform_2(%arg0: i32) -> (i32, i32) {
    %c0_i32 = arith.constant 0 : i32
    %c0_i32_0 = arith.constant 0 : i32
    %c0_i32_1 = arith.constant 0 : i32
    return %c0_i32, %c0_i32_0 : i32, i32
  }
  func.func @transform_3(%arg0: i32) -> (i32, i32) {
    %c0_i32 = arith.constant 0 : i32
    %c0_i32_0 = arith.constant 0 : i32
    %c0_i32_1 = arith.constant 0 : i32
    return %c0_i32, %c0_i32_0 : i32, i32
  }
  func.func @transform_4(%arg0: i32) -> (i32, i32) {
    %c0_i32 = arith.constant 0 : i32
    %c0_i32_0 = arith.constant 0 : i32
    %c0_i32_1 = arith.constant 0 : i32
    return %c0_i32, %c0_i32_0 : i32, i32
  }
  func.func @transform_5(%arg0: i32) -> (i32, i32) {
    %c0_i32 = arith.constant 0 : i32
    %c0_i32_0 = arith.constant 0 : i32
    %c0_i32_1 = arith.constant 0 : i32
    return %c0_i32, %c0_i32_0 : i32, i32
  }
  func.func @transform_6(%arg0: i32) -> (i32, i32) {
    %c0_i32 = arith.constant 0 : i32
    %c0_i32_0 = arith.constant 0 : i32
    %c0_i32_1 = arith.constant 0 : i32
    return %c0_i32, %c0_i32_0 : i32, i32
  }
  func.func @transform_7(%arg0: i32) -> (i32, i32) {
    %c0_i32 = arith.constant 0 : i32
    %c0_i32_0 = arith.constant 0 : i32
    %c0_i32_1 = arith.constant 0 : i32
    return %c0_i32, %c0_i32_0 : i32, i32
  }
  func.func @transform_8(%arg0: i32) -> (i32, i32) {
    %c0_i32 = arith.constant 0 : i32
    %c0_i32_0 = arith.constant 0 : i32
    %c0_i32_1 = arith.constant 0 : i32
    return %c0_i32, %c0_i32_0 : i32, i32
  }
  func.func @transform_9(%arg0: i32) -> (i32, i32) {
    %c0_i32 = arith.constant 0 : i32
    %c0_i32_0 = arith.constant 0 : i32
    %c0_i32_1 = arith.constant 0 : i32
    return %c0_i32, %c0_i32_0 : i32, i32
  }
  func.func @transform_10(%arg0: i32) -> (i32, i32) {
    %c0_i32 = arith.constant 0 : i32
    %c0_i32_0 = arith.constant 0 : i32
    %c0_i32_1 = arith.constant 0 : i32
    return %c0_i32, %c0_i32_0 : i32, i32
  }
  func.func @transform_11(%arg0: i32) -> (i32, i32) {
    %c0_i32 = arith.constant 0 : i32
    %c0_i32_0 = arith.constant 0 : i32
    %c0_i32_1 = arith.constant 0 : i32
    return %c0_i32, %c0_i32_0 : i32, i32
  }
  func.func @transform_12(%arg0: i32) -> (i32, i32, i32) {
    %c0_i32 = arith.constant 0 : i32
    %c0_i32_0 = arith.constant 0 : i32
    %c0_i32_1 = arith.constant 0 : i32
    return %arg0, %c0_i32, %c0_i32_0 : i32, i32, i32
  }
  func.func @transform_13(%arg0: i32) -> (i32, i32, i32) {
    %c0_i32 = arith.constant 0 : i32
    %c0_i32_0 = arith.constant 0 : i32
    %c0_i32_1 = arith.constant 0 : i32
    return %arg0, %c0_i32, %c0_i32_0 : i32, i32, i32
  }
}

module attributes {stable_mosaic.version = 11 : i64} {
  func.func @_vim_proj_kernel(%arg0: i32, %arg1: i32, %arg2: memref<1x9x32xf32, #tpu.memory_space<vmem>>, %arg3: memref<1x1x32xf32, #tpu.memory_space<vmem>>, %arg4: memref<1x1x32xf32, #tpu.memory_space<vmem>>, %arg5: memref<1x32x32xf32, #tpu.memory_space<vmem>>, %arg6: memref<1x1x32xf32, #tpu.memory_space<vmem>>, %arg7: memref<1x2x32x32xf32, #tpu.memory_space<vmem>>, %arg8: memref<1x2x1x32xf32, #tpu.memory_space<vmem>>, %arg9: memref<1x1x9x32xf32, #tpu.memory_space<vmem>>, %arg10: memref<1x2x1x9x32xf32, #tpu.memory_space<vmem>>) attributes {dimension_semantics = [#tpu.dimension_semantics<parallel>, #tpu.dimension_semantics<parallel>], iteration_bounds = array<i64: 2, 2>, scalar_prefetch = 0 : i64, scratch_operands = 0 : i64, tpu.core_type = #tpu.core_type<tc>, window_params = [{transform_indices = @transform_0, window_bounds = array<i64: 1, 9, 32>}, {transform_indices = @transform_1, window_bounds = array<i64: 1, 1, 32>}, {transform_indices = @transform_2, window_bounds = array<i64: 1, 1, 32>}, {transform_indices = @transform_3, window_bounds = array<i64: 1, 32, 32>}, {transform_indices = @transform_4, window_bounds = array<i64: 1, 1, 32>}, {transform_indices = @transform_5, window_bounds = array<i64: 1, 2, 32, 32>}, {transform_indices = @transform_6, window_bounds = array<i64: 1, 2, 1, 32>}, {transform_indices = @transform_7, window_bounds = array<i64: 1, 1, 9, 32>}, {transform_indices = @transform_8, window_bounds = array<i64: 1, 2, 1, 9, 32>}]} {
    %c0 = arith.constant 0 : index
    %c0_0 = arith.constant 0 : index
    %c0_1 = arith.constant 0 : index
    %0 = vector.load %arg2[%c0, %c0_0, %c0_1] : memref<1x9x32xf32, #tpu.memory_space<vmem>>, vector<1x9x32xf32>
    %1 = vector.shape_cast %0 : vector<1x9x32xf32> to vector<9x32xf32>
    %c0_2 = arith.constant 0 : index
    %c0_3 = arith.constant 0 : index
    %c0_4 = arith.constant 0 : index
    %2 = vector.load %arg3[%c0_2, %c0_3, %c0_4] : memref<1x1x32xf32, #tpu.memory_space<vmem>>, vector<1x1x32xf32>
    %3 = vector.shape_cast %2 : vector<1x1x32xf32> to vector<1x32xf32>
    %c0_5 = arith.constant 0 : index
    %c0_6 = arith.constant 0 : index
    %c0_7 = arith.constant 0 : index
    %4 = vector.load %arg4[%c0_5, %c0_6, %c0_7] : memref<1x1x32xf32, #tpu.memory_space<vmem>>, vector<1x1x32xf32>
    %5 = vector.shape_cast %4 : vector<1x1x32xf32> to vector<1x32xf32>
    %cst = arith.constant dense<0.000000e+00> : vector<9xf32>
    %6 = vector.multi_reduction <add>, %1, %cst [1] : vector<9x32xf32> to vector<9xf32>
    %7 = vector.shape_cast %6 : vector<9xf32> to vector<9x1xf32>
    %cst_8 = arith.constant 3.200000e+01 : f32
    %8 = vector.broadcast %cst_8 : f32 to vector<9x1xf32>
    %9 = arith.divf %7, %8 : vector<9x1xf32>
    %10 = vector.broadcast %9 : vector<9x1xf32> to vector<9x32xf32>
    %11 = arith.subf %1, %10 : vector<9x32xf32>
    %12 = arith.mulf %11, %11 : vector<9x32xf32>
    %cst_9 = arith.constant dense<0.000000e+00> : vector<9xf32>
    %13 = vector.multi_reduction <add>, %12, %cst_9 [1] : vector<9x32xf32> to vector<9xf32>
    %14 = vector.shape_cast %13 : vector<9xf32> to vector<9x1xf32>
    %cst_10 = arith.constant 3.200000e+01 : f32
    %15 = vector.broadcast %cst_10 : f32 to vector<9x1xf32>
    %16 = arith.divf %14, %15 : vector<9x1xf32>
    %17 = vector.broadcast %9 : vector<9x1xf32> to vector<9x32xf32>
    %18 = arith.subf %1, %17 : vector<9x32xf32>
    %cst_11 = arith.constant 9.99999974E-6 : f32
    %19 = vector.broadcast %cst_11 : f32 to vector<9x1xf32>
    %20 = arith.addf %16, %19 : vector<9x1xf32>
    %21 = math.rsqrt %20 : vector<9x1xf32>
    %22 = vector.broadcast %21 : vector<9x1xf32> to vector<9x32xf32>
    %23 = arith.mulf %18, %22 : vector<9x32xf32>
    %24 = vector.broadcast %3 : vector<1x32xf32> to vector<9x32xf32>
    %25 = arith.mulf %23, %24 : vector<9x32xf32>
    %26 = vector.broadcast %5 : vector<1x32xf32> to vector<9x32xf32>
    %27 = arith.addf %25, %26 : vector<9x32xf32>
    %c0_12 = arith.constant 0 : index
    %c0_13 = arith.constant 0 : index
    %c0_14 = arith.constant 0 : index
    %28 = vector.load %arg5[%c0_12, %c0_13, %c0_14] : memref<1x32x32xf32, #tpu.memory_space<vmem>>, vector<1x32x32xf32>
    %29 = vector.shape_cast %28 : vector<1x32x32xf32> to vector<32x32xf32>
    %cst_15 = arith.constant dense<0.000000e+00> : vector<9x32xf32>
    %30 = tpu.matmul %27, %29, %cst_15 {dimension_numbers = #tpu.dot_dimension_numbers<[1], [0], [0], [1], [0, 0, 1, 1], [], []>} : vector<9x32xf32>, vector<32x32xf32>, vector<9x32xf32> -> vector<9x32xf32>
    %c0_16 = arith.constant 0 : index
    %c0_17 = arith.constant 0 : index
    %c0_18 = arith.constant 0 : index
    %31 = vector.load %arg6[%c0_16, %c0_17, %c0_18] : memref<1x1x32xf32, #tpu.memory_space<vmem>>, vector<1x1x32xf32>
    %32 = vector.shape_cast %31 : vector<1x1x32xf32> to vector<1x32xf32>
    %33 = vector.broadcast %32 : vector<1x32xf32> to vector<9x32xf32>
    %34 = arith.addf %30, %33 : vector<9x32xf32>
    %35 = arith.negf %34 : vector<9x32xf32>
    %36 = math.exp %35 : vector<9x32xf32>
    %cst_19 = arith.constant 1.000000e+00 : f32
    %37 = vector.broadcast %cst_19 : f32 to vector<9x32xf32>
    %38 = arith.addf %37, %36 : vector<9x32xf32>
    %39 = arith.divf %37, %38 : vector<9x32xf32>
    %40 = arith.mulf %34, %39 : vector<9x32xf32>
    %c0_20 = arith.constant 0 : index
    %c0_21 = arith.constant 0 : index
    %c0_22 = arith.constant 0 : index
    %c0_23 = arith.constant 0 : index
    %41 = vector.load %arg9[%c0_20, %c0_21, %c0_22, %c0_23] : memref<1x1x9x32xf32, #tpu.memory_space<vmem>>, vector<1x1x9x32xf32>
    %42 = vector.shape_cast %41 : vector<1x1x9x32xf32> to vector<9x32xf32>
    %43 = vector.shape_cast %40 : vector<9x32xf32> to vector<1x1x9x32xf32>
    tpu.vector_store %arg9[%c0_20, %c0_21, %c0_22, %c0_23], %43 {strides = array<i32>} : memref<1x1x9x32xf32, #tpu.memory_space<vmem>>, vector<1x1x9x32xf32>,
    %c0_24 = arith.constant 0 : index
    %c0_25 = arith.constant 0 : index
    %c0_26 = arith.constant 0 : index
    %c0_27 = arith.constant 0 : index
    %44 = vector.load %arg7[%c0_24, %c0_25, %c0_26, %c0_27] : memref<1x2x32x32xf32, #tpu.memory_space<vmem>>, vector<1x1x32x32xf32>
    %45 = vector.shape_cast %44 : vector<1x1x32x32xf32> to vector<32x32xf32>
    %cst_28 = arith.constant dense<0.000000e+00> : vector<9x32xf32>
    %46 = tpu.matmul %34, %45, %cst_28 {dimension_numbers = #tpu.dot_dimension_numbers<[1], [0], [0], [1], [0, 0, 1, 1], [], []>} : vector<9x32xf32>, vector<32x32xf32>, vector<9x32xf32> -> vector<9x32xf32>
    %c0_29 = arith.constant 0 : index
    %c0_30 = arith.constant 0 : index
    %c0_31 = arith.constant 0 : index
    %c0_32 = arith.constant 0 : index
    %47 = vector.load %arg8[%c0_29, %c0_30, %c0_31, %c0_32] : memref<1x2x1x32xf32, #tpu.memory_space<vmem>>, vector<1x1x1x32xf32>
    %48 = vector.shape_cast %47 : vector<1x1x1x32xf32> to vector<1x32xf32>
    %49 = vector.broadcast %48 : vector<1x32xf32> to vector<9x32xf32>
    %50 = arith.addf %46, %49 : vector<9x32xf32>
    %c0_33 = arith.constant 0 : index
    %c0_34 = arith.constant 0 : index
    %c0_35 = arith.constant 0 : index
    %c0_36 = arith.constant 0 : index
    %c0_37 = arith.constant 0 : index
    %51 = vector.load %arg10[%c0_33, %c0_34, %c0_35, %c0_36, %c0_37] : memref<1x2x1x9x32xf32, #tpu.memory_space<vmem>>, vector<1x1x1x9x32xf32>
    %52 = vector.shape_cast %51 : vector<1x1x1x9x32xf32> to vector<9x32xf32>
    %53 = vector.shape_cast %50 : vector<9x32xf32> to vector<1x1x1x9x32xf32>
    tpu.vector_store %arg10[%c0_33, %c0_34, %c0_35, %c0_36, %c0_37], %53 {strides = array<i32>} : memref<1x2x1x9x32xf32, #tpu.memory_space<vmem>>, vector<1x1x1x9x32xf32>,
    %c0_38 = arith.constant 0 : index
    %c1 = arith.constant 1 : index
    %c0_39 = arith.constant 0 : index
    %c0_40 = arith.constant 0 : index
    %54 = vector.load %arg7[%c0_38, %c1, %c0_39, %c0_40] : memref<1x2x32x32xf32, #tpu.memory_space<vmem>>, vector<1x1x32x32xf32>
    %55 = vector.shape_cast %54 : vector<1x1x32x32xf32> to vector<32x32xf32>
    %cst_41 = arith.constant dense<0.000000e+00> : vector<9x32xf32>
    %56 = tpu.matmul %34, %55, %cst_41 {dimension_numbers = #tpu.dot_dimension_numbers<[1], [0], [0], [1], [0, 0, 1, 1], [], []>} : vector<9x32xf32>, vector<32x32xf32>, vector<9x32xf32> -> vector<9x32xf32>
    %c0_42 = arith.constant 0 : index
    %c1_43 = arith.constant 1 : index
    %c0_44 = arith.constant 0 : index
    %c0_45 = arith.constant 0 : index
    %57 = vector.load %arg8[%c0_42, %c1_43, %c0_44, %c0_45] : memref<1x2x1x32xf32, #tpu.memory_space<vmem>>, vector<1x1x1x32xf32>
    %58 = vector.shape_cast %57 : vector<1x1x1x32xf32> to vector<1x32xf32>
    %59 = vector.broadcast %58 : vector<1x32xf32> to vector<9x32xf32>
    %60 = arith.addf %56, %59 : vector<9x32xf32>
    %c0_46 = arith.constant 0 : index
    %c1_47 = arith.constant 1 : index
    %c0_48 = arith.constant 0 : index
    %c0_49 = arith.constant 0 : index
    %c0_50 = arith.constant 0 : index
    %61 = vector.load %arg10[%c0_46, %c1_47, %c0_48, %c0_49, %c0_50] : memref<1x2x1x9x32xf32, #tpu.memory_space<vmem>>, vector<1x1x1x9x32xf32>
    %62 = vector.shape_cast %61 : vector<1x1x1x9x32xf32> to vector<9x32xf32>
    %63 = vector.shape_cast %60 : vector<9x32xf32> to vector<1x1x1x9x32xf32>
    tpu.vector_store %arg10[%c0_46, %c1_47, %c0_48, %c0_49, %c0_50], %63 {strides = array<i32>} : memref<1x2x1x9x32xf32, #tpu.memory_space<vmem>>, vector<1x1x1x9x32xf32>,
    return
  }
  func.func @transform_0(%arg0: i32, %arg1: i32) -> (i32, i32, i32) {
    %c0_i32 = arith.constant 0 : i32
    %c0_i32_0 = arith.constant 0 : i32
    %c0_i32_1 = arith.constant 0 : i32
    return %arg1, %c0_i32, %c0_i32_0 : i32, i32, i32
  }
  func.func @transform_1(%arg0: i32, %arg1: i32) -> (i32, i32, i32) {
    %c0_i32 = arith.constant 0 : i32
    %c0_i32_0 = arith.constant 0 : i32
    %c0_i32_1 = arith.constant 0 : i32
    return %arg0, %c0_i32, %c0_i32_0 : i32, i32, i32
  }
  func.func @transform_2(%arg0: i32, %arg1: i32) -> (i32, i32, i32) {
    %c0_i32 = arith.constant 0 : i32
    %c0_i32_0 = arith.constant 0 : i32
    %c0_i32_1 = arith.constant 0 : i32
    return %arg0, %c0_i32, %c0_i32_0 : i32, i32, i32
  }
  func.func @transform_3(%arg0: i32, %arg1: i32) -> (i32, i32, i32) {
    %c0_i32 = arith.constant 0 : i32
    %c0_i32_0 = arith.constant 0 : i32
    %c0_i32_1 = arith.constant 0 : i32
    return %arg0, %c0_i32, %c0_i32_0 : i32, i32, i32
  }
  func.func @transform_4(%arg0: i32, %arg1: i32) -> (i32, i32, i32) {
    %c0_i32 = arith.constant 0 : i32
    %c0_i32_0 = arith.constant 0 : i32
    %c0_i32_1 = arith.constant 0 : i32
    return %arg0, %c0_i32, %c0_i32_0 : i32, i32, i32
  }
  func.func @transform_5(%arg0: i32, %arg1: i32) -> (i32, i32, i32, i32) {
    %c0_i32 = arith.constant 0 : i32
    %c0_i32_0 = arith.constant 0 : i32
    %c0_i32_1 = arith.constant 0 : i32
    %c0_i32_2 = arith.constant 0 : i32
    return %arg0, %c0_i32, %c0_i32_0, %c0_i32_1 : i32, i32, i32, i32
  }
  func.func @transform_6(%arg0: i32, %arg1: i32) -> (i32, i32, i32, i32) {
    %c0_i32 = arith.constant 0 : i32
    %c0_i32_0 = arith.constant 0 : i32
    %c0_i32_1 = arith.constant 0 : i32
    %c0_i32_2 = arith.constant 0 : i32
    return %arg0, %c0_i32, %c0_i32_0, %c0_i32_1 : i32, i32, i32, i32
  }
  func.func @transform_7(%arg0: i32, %arg1: i32) -> (i32, i32, i32, i32) {
    %c0_i32 = arith.constant 0 : i32
    %c0_i32_0 = arith.constant 0 : i32
    %c0_i32_1 = arith.constant 0 : i32
    return %arg0, %arg1, %c0_i32, %c0_i32_0 : i32, i32, i32, i32
  }
  func.func @transform_8(%arg0: i32, %arg1: i32) -> (i32, i32, i32, i32, i32) {
    %c0_i32 = arith.constant 0 : i32
    %c0_i32_0 = arith.constant 0 : i32
    %c0_i32_1 = arith.constant 0 : i32
    %c0_i32_2 = arith.constant 0 : i32
    return %arg0, %c0_i32, %arg1, %c0_i32_0, %c0_i32_1 : i32, i32, i32, i32, i32
  }
}

module attributes {stable_mosaic.version = 11 : i64} {
  func.func @_fused_ssm_kernel(%arg0: i32, %arg1: i32, %arg2: i32, %arg3: memref<1x1x1x9x32xf32, #tpu.memory_space<vmem>>, %arg4: memref<1x32x32xf32, #tpu.memory_space<vmem>>, %arg5: memref<1x32x32xf32, #tpu.memory_space<vmem>>, %arg6: memref<1x1x32xf32, #tpu.memory_space<vmem>>, %arg7: memref<1x32x16xf32, #tpu.memory_space<vmem>>, %arg8: memref<1x32x16xf32, #tpu.memory_space<vmem>>, %arg9: memref<1x16x32xf32, #tpu.memory_space<vmem>>, %arg10: memref<1x1x32xf32, #tpu.memory_space<vmem>>, %arg11: memref<1x1x9x32xf32, #tpu.memory_space<vmem>>, %arg12: memref<1x9x32xf32, #tpu.memory_space<vmem>>, %arg13: memref<1x1x9x32xf32, #tpu.memory_space<vmem>>, %arg14: memref<9x32xf32, #tpu.memory_space<vmem>>, %arg15: memref<9x16x32xf32, #tpu.memory_space<vmem>>, %arg16: memref<9x16x32xf32, #tpu.memory_space<vmem>>, %arg17: memref<9x16x32xf32, #tpu.memory_space<vmem>>) attributes {dimension_semantics = [#tpu.dimension_semantics<parallel>, #tpu.dimension_semantics<parallel>, #tpu.dimension_semantics<arbitrary>], iteration_bounds = array<i64: 2, 2, 2>, scalar_prefetch = 0 : i64, scratch_operands = 4 : i64, tpu.core_type = #tpu.core_type<tc>, window_params = [{transform_indices = @transform_0, window_bounds = array<i64: 1, 1, 1, 9, 32>}, {transform_indices = @transform_1, window_bounds = array<i64: 1, 32, 32>}, {transform_indices = @transform_2, window_bounds = array<i64: 1, 32, 32>}, {transform_indices = @transform_3, window_bounds = array<i64: 1, 1, 32>}, {transform_indices = @transform_4, window_bounds = array<i64: 1, 32, 16>}, {transform_indices = @transform_5, window_bounds = array<i64: 1, 32, 16>}, {transform_indices = @transform_6, window_bounds = array<i64: 1, 16, 32>}, {transform_indices = @transform_7, window_bounds = array<i64: 1, 1, 32>}, {transform_indices = @transform_8, window_bounds = array<i64: 1, 1, 9, 32>}, {transform_indices = @transform_9, window_bounds = array<i64: 1, 9, 32>}, {transform_indices = @transform_10, window_bounds = array<i64: 1, 1, 9, 32>}]} {
    %c0_i32 = arith.constant 0 : i32
    %0 = arith.cmpi eq, %arg2, %c0_i32 : i32
    %1 = arith.extui %0 : i1 to i32
    %c0_i32_0 = arith.constant 0 : i32
    %2 = arith.cmpi ne, %1, %c0_i32_0 : i32
    scf.if %2 {
      %cst_107 = arith.constant 0.000000e+00 : f32
      %182 = vector.broadcast %cst_107 : f32 to vector<9x32xf32>
      %c0_108 = arith.constant 0 : index
      %c0_109 = arith.constant 0 : index
      %183 = vector.load %arg14[%c0_108, %c0_109] : memref<9x32xf32, #tpu.memory_space<vmem>>, vector<9x32xf32>
      tpu.vector_store %arg14[%c0_108, %c0_109], %182 {strides = array<i32>} : memref<9x32xf32, #tpu.memory_space<vmem>>, vector<9x32xf32>,
    } else {
    }
    %c0 = arith.constant 0 : index
    %c0_1 = arith.constant 0 : index
    %c0_2 = arith.constant 0 : index
    %c0_3 = arith.constant 0 : index
    %c0_4 = arith.constant 0 : index
    %3 = vector.load %arg3[%c0, %c0_1, %c0_2, %c0_3, %c0_4] : memref<1x1x1x9x32xf32, #tpu.memory_space<vmem>>, vector<1x1x1x9x32xf32>
    %4 = vector.shape_cast %3 : vector<1x1x1x9x32xf32> to vector<9x32xf32>
    %cst = arith.constant 0.000000e+00 : f32
    %5 = vector.broadcast %cst : f32 to vector<9x32xf32>
    %6 = arith.maximumf %4, %5 : vector<9x32xf32>
    %7 = math.absf %4 : vector<9x32xf32>
    %cst_5 = arith.constant 0.000000e+00 : f32
    %8 = vector.broadcast %cst_5 : f32 to vector<9x32xf32>
    %9 = arith.subf %8, %7 : vector<9x32xf32>
    %10 = math.exp %9 : vector<9x32xf32>
    %cst_6 = arith.constant 1.000000e+00 : f32
    %11 = vector.broadcast %cst_6 : f32 to vector<9x32xf32>
    %12 = arith.addf %11, %10 : vector<9x32xf32>
    %13 = math.log %12 : vector<9x32xf32>
    %14 = arith.addf %6, %13 : vector<9x32xf32>
    %c0_7 = arith.constant 0 : index
    %c0_8 = arith.constant 0 : index
    %c0_9 = arith.constant 0 : index
    %15 = vector.load %arg4[%c0_7, %c0_8, %c0_9] : memref<1x32x32xf32, #tpu.memory_space<vmem>>, vector<1x32x32xf32>
    %16 = vector.shape_cast %15 : vector<1x32x32xf32> to vector<32x32xf32>
    %cst_10 = arith.constant dense<0.000000e+00> : vector<9x32xf32>
    %17 = tpu.matmul %14, %16, %cst_10 {dimension_numbers = #tpu.dot_dimension_numbers<[1], [0], [0], [1], [0, 0, 1, 1], [], []>} : vector<9x32xf32>, vector<32x32xf32>, vector<9x32xf32> -> vector<9x32xf32>
    %c0_11 = arith.constant 0 : index
    %c0_12 = arith.constant 0 : index
    %c0_13 = arith.constant 0 : index
    %18 = vector.load %arg5[%c0_11, %c0_12, %c0_13] : memref<1x32x32xf32, #tpu.memory_space<vmem>>, vector<1x32x32xf32>
    %19 = vector.shape_cast %18 : vector<1x32x32xf32> to vector<32x32xf32>
    %cst_14 = arith.constant dense<0.000000e+00> : vector<9x32xf32>
    %20 = tpu.matmul %17, %19, %cst_14 {dimension_numbers = #tpu.dot_dimension_numbers<[1], [0], [0], [1], [0, 0, 1, 1], [], []>} : vector<9x32xf32>, vector<32x32xf32>, vector<9x32xf32> -> vector<9x32xf32>
    %c0_15 = arith.constant 0 : index
    %c0_16 = arith.constant 0 : index
    %c0_17 = arith.constant 0 : index
    %21 = vector.load %arg6[%c0_15, %c0_16, %c0_17] : memref<1x1x32xf32, #tpu.memory_space<vmem>>, vector<1x1x32xf32>
    %22 = vector.shape_cast %21 : vector<1x1x32xf32> to vector<1x32xf32>
    %23 = vector.broadcast %22 : vector<1x32xf32> to vector<9x32xf32>
    %24 = arith.addf %20, %23 : vector<9x32xf32>
    %cst_18 = arith.constant 0.000000e+00 : f32
    %25 = vector.broadcast %cst_18 : f32 to vector<9x32xf32>
    %26 = arith.maximumf %24, %25 : vector<9x32xf32>
    %27 = math.absf %24 : vector<9x32xf32>
    %cst_19 = arith.constant 0.000000e+00 : f32
    %28 = vector.broadcast %cst_19 : f32 to vector<9x32xf32>
    %29 = arith.subf %28, %27 : vector<9x32xf32>
    %30 = math.exp %29 : vector<9x32xf32>
    %cst_20 = arith.constant 1.000000e+00 : f32
    %31 = vector.broadcast %cst_20 : f32 to vector<9x32xf32>
    %32 = arith.addf %31, %30 : vector<9x32xf32>
    %33 = math.log %32 : vector<9x32xf32>
    %34 = arith.addf %26, %33 : vector<9x32xf32>
    %35 = arith.mulf %34, %14 : vector<9x32xf32>
    %c0_21 = arith.constant 0 : index
    %c0_22 = arith.constant 0 : index
    %c0_23 = arith.constant 0 : index
    %36 = vector.load %arg7[%c0_21, %c0_22, %c0_23] : memref<1x32x16xf32, #tpu.memory_space<vmem>>, vector<1x32x16xf32>
    %37 = vector.shape_cast %36 : vector<1x32x16xf32> to vector<32x16xf32>
    %cst_24 = arith.constant dense<0.000000e+00> : vector<9x16xf32>
    %38 = tpu.matmul %14, %37, %cst_24 {dimension_numbers = #tpu.dot_dimension_numbers<[1], [0], [0], [1], [0, 0, 1, 1], [], []>} : vector<9x32xf32>, vector<32x16xf32>, vector<9x16xf32> -> vector<9x16xf32>
    %c0_25 = arith.constant 0 : index
    %c0_26 = arith.constant 0 : index
    %c0_27 = arith.constant 0 : index
    %39 = vector.load %arg8[%c0_25, %c0_26, %c0_27] : memref<1x32x16xf32, #tpu.memory_space<vmem>>, vector<1x32x16xf32>
    %40 = vector.shape_cast %39 : vector<1x32x16xf32> to vector<32x16xf32>
    %cst_28 = arith.constant dense<0.000000e+00> : vector<9x16xf32>
    %41 = tpu.matmul %14, %40, %cst_28 {dimension_numbers = #tpu.dot_dimension_numbers<[1], [0], [0], [1], [0, 0, 1, 1], [], []>} : vector<9x32xf32>, vector<32x16xf32>, vector<9x16xf32> -> vector<9x16xf32>
    %42 = vector.shape_cast %34 : vector<9x32xf32> to vector<9x1x32xf32>
    %c0_29 = arith.constant 0 : index
    %c0_30 = arith.constant 0 : index
    %c0_31 = arith.constant 0 : index
    %43 = vector.load %arg9[%c0_29, %c0_30, %c0_31] : memref<1x16x32xf32, #tpu.memory_space<vmem>>, vector<1x16x32xf32>
    %44 = vector.shape_cast %43 : vector<1x16x32xf32> to vector<16x32xf32>
    %45 = vector.shape_cast %44 : vector<16x32xf32> to vector<1x16x32xf32>
    %46 = vector.broadcast %42 : vector<9x1x32xf32> to vector<9x16x32xf32>
    %47 = vector.broadcast %45 : vector<1x16x32xf32> to vector<9x16x32xf32>
    %48 = arith.mulf %46, %47 : vector<9x16x32xf32>
    %49 = math.exp %48 : vector<9x16x32xf32>
    %c0_32 = arith.constant 0 : index
    %c0_33 = arith.constant 0 : index
    %c0_34 = arith.constant 0 : index
    %50 = vector.load %arg15[%c0_32, %c0_33, %c0_34] : memref<9x16x32xf32, #tpu.memory_space<vmem>>, vector<9x16x32xf32>
    tpu.vector_store %arg15[%c0_32, %c0_33, %c0_34], %49 {strides = array<i32>} : memref<9x16x32xf32, #tpu.memory_space<vmem>>, vector<9x16x32xf32>,
    %51 = vector.shape_cast %38 : vector<9x16xf32> to vector<9x16x1xf32>
    %52 = vector.shape_cast %35 : vector<9x32xf32> to vector<9x1x32xf32>
    %53 = vector.broadcast %51 : vector<9x16x1xf32> to vector<9x16x32xf32>
    %54 = vector.broadcast %52 : vector<9x1x32xf32> to vector<9x16x32xf32>
    %55 = arith.mulf %53, %54 : vector<9x16x32xf32>
    %c0_35 = arith.constant 0 : index
    %c0_36 = arith.constant 0 : index
    %c0_37 = arith.constant 0 : index
    %56 = vector.load %arg16[%c0_35, %c0_36, %c0_37] : memref<9x16x32xf32, #tpu.memory_space<vmem>>, vector<9x16x32xf32>
    tpu.vector_store %arg16[%c0_35, %c0_36, %c0_37], %55 {strides = array<i32>} : memref<9x16x32xf32, #tpu.memory_space<vmem>>, vector<9x16x32xf32>,
    %cst_38 = arith.constant 0.000000e+00 : f32
    %57 = vector.broadcast %cst_38 : f32 to vector<16x32xf32>
    %c0_i32_39 = arith.constant 0 : i32
    %58 = arith.index_cast %c0_i32_39 : i32 to index
    %c0_40 = arith.constant 0 : index
    %c0_41 = arith.constant 0 : index
    %59 = vector.load %arg15[%58, %c0_40, %c0_41] : memref<9x16x32xf32, #tpu.memory_space<vmem>>, vector<1x16x32xf32>
    %60 = vector.shape_cast %59 : vector<1x16x32xf32> to vector<16x32xf32>
    %61 = arith.mulf %60, %57 : vector<16x32xf32>
    %62 = arith.index_cast %c0_i32_39 : i32 to index
    %c0_42 = arith.constant 0 : index
    %c0_43 = arith.constant 0 : index
    %63 = vector.load %arg16[%62, %c0_42, %c0_43] : memref<9x16x32xf32, #tpu.memory_space<vmem>>, vector<1x16x32xf32>
    %64 = vector.shape_cast %63 : vector<1x16x32xf32> to vector<16x32xf32>
    %65 = arith.addf %61, %64 : vector<16x32xf32>
    %66 = arith.index_cast %c0_i32_39 : i32 to index
    %c0_44 = arith.constant 0 : index
    %c0_45 = arith.constant 0 : index
    %67 = vector.load %arg17[%66, %c0_44, %c0_45] : memref<9x16x32xf32, #tpu.memory_space<vmem>>, vector<1x16x32xf32>
    %68 = vector.shape_cast %67 : vector<1x16x32xf32> to vector<16x32xf32>
    %69 = vector.shape_cast %65 : vector<16x32xf32> to vector<1x16x32xf32>
    tpu.vector_store %arg17[%66, %c0_44, %c0_45], %69 {strides = array<i32>} : memref<9x16x32xf32, #tpu.memory_space<vmem>>, vector<1x16x32xf32>,
    %c1_i32 = arith.constant 1 : i32
    %70 = arith.index_cast %c1_i32 : i32 to index
    %c0_46 = arith.constant 0 : index
    %c0_47 = arith.constant 0 : index
    %71 = vector.load %arg15[%70, %c0_46, %c0_47] : memref<9x16x32xf32, #tpu.memory_space<vmem>>, vector<1x16x32xf32>
    %72 = vector.shape_cast %71 : vector<1x16x32xf32> to vector<16x32xf32>
    %73 = arith.mulf %72, %65 : vector<16x32xf32>
    %74 = arith.index_cast %c1_i32 : i32 to index
    %c0_48 = arith.constant 0 : index
    %c0_49 = arith.constant 0 : index
    %75 = vector.load %arg16[%74, %c0_48, %c0_49] : memref<9x16x32xf32, #tpu.memory_space<vmem>>, vector<1x16x32xf32>
    %76 = vector.shape_cast %75 : vector<1x16x32xf32> to vector<16x32xf32>
    %77 = arith.addf %73, %76 : vector<16x32xf32>
    %78 = arith.index_cast %c1_i32 : i32 to index
    %c0_50 = arith.constant 0 : index
    %c0_51 = arith.constant 0 : index
    %79 = vector.load %arg17[%78, %c0_50, %c0_51] : memref<9x16x32xf32, #tpu.memory_space<vmem>>, vector<1x16x32xf32>
    %80 = vector.shape_cast %79 : vector<1x16x32xf32> to vector<16x32xf32>
    %81 = vector.shape_cast %77 : vector<16x32xf32> to vector<1x16x32xf32>
    tpu.vector_store %arg17[%78, %c0_50, %c0_51], %81 {strides = array<i32>} : memref<9x16x32xf32, #tpu.memory_space<vmem>>, vector<1x16x32xf32>,
    %c2_i32 = arith.constant 2 : i32
    %82 = arith.index_cast %c2_i32 : i32 to index
    %c0_52 = arith.constant 0 : index
    %c0_53 = arith.constant 0 : index
    %83 = vector.load %arg15[%82, %c0_52, %c0_53] : memref<9x16x32xf32, #tpu.memory_space<vmem>>, vector<1x16x32xf32>
    %84 = vector.shape_cast %83 : vector<1x16x32xf32> to vector<16x32xf32>
    %85 = arith.mulf %84, %77 : vector<16x32xf32>
    %86 = arith.index_cast %c2_i32 : i32 to index
    %c0_54 = arith.constant 0 : index
    %c0_55 = arith.constant 0 : index
    %87 = vector.load %arg16[%86, %c0_54, %c0_55] : memref<9x16x32xf32, #tpu.memory_space<vmem>>, vector<1x16x32xf32>
    %88 = vector.shape_cast %87 : vector<1x16x32xf32> to vector<16x32xf32>
    %89 = arith.addf %85, %88 : vector<16x32xf32>
    %90 = arith.index_cast %c2_i32 : i32 to index
    %c0_56 = arith.constant 0 : index
    %c0_57 = arith.constant 0 : index
    %91 = vector.load %arg17[%90, %c0_56, %c0_57] : memref<9x16x32xf32, #tpu.memory_space<vmem>>, vector<1x16x32xf32>
    %92 = vector.shape_cast %91 : vector<1x16x32xf32> to vector<16x32xf32>
    %93 = vector.shape_cast %89 : vector<16x32xf32> to vector<1x16x32xf32>
    tpu.vector_store %arg17[%90, %c0_56, %c0_57], %93 {strides = array<i32>} : memref<9x16x32xf32, #tpu.memory_space<vmem>>, vector<1x16x32xf32>,
    %c3_i32 = arith.constant 3 : i32
    %94 = arith.index_cast %c3_i32 : i32 to index
    %c0_58 = arith.constant 0 : index
    %c0_59 = arith.constant 0 : index
    %95 = vector.load %arg15[%94, %c0_58, %c0_59] : memref<9x16x32xf32, #tpu.memory_space<vmem>>, vector<1x16x32xf32>
    %96 = vector.shape_cast %95 : vector<1x16x32xf32> to vector<16x32xf32>
    %97 = arith.mulf %96, %89 : vector<16x32xf32>
    %98 = arith.index_cast %c3_i32 : i32 to index
    %c0_60 = arith.constant 0 : index
    %c0_61 = arith.constant 0 : index
    %99 = vector.load %arg16[%98, %c0_60, %c0_61] : memref<9x16x32xf32, #tpu.memory_space<vmem>>, vector<1x16x32xf32>
    %100 = vector.shape_cast %99 : vector<1x16x32xf32> to vector<16x32xf32>
    %101 = arith.addf %97, %100 : vector<16x32xf32>
    %102 = arith.index_cast %c3_i32 : i32 to index
    %c0_62 = arith.constant 0 : index
    %c0_63 = arith.constant 0 : index
    %103 = vector.load %arg17[%102, %c0_62, %c0_63] : memref<9x16x32xf32, #tpu.memory_space<vmem>>, vector<1x16x32xf32>
    %104 = vector.shape_cast %103 : vector<1x16x32xf32> to vector<16x32xf32>
    %105 = vector.shape_cast %101 : vector<16x32xf32> to vector<1x16x32xf32>
    tpu.vector_store %arg17[%102, %c0_62, %c0_63], %105 {strides = array<i32>} : memref<9x16x32xf32, #tpu.memory_space<vmem>>, vector<1x16x32xf32>,
    %c4_i32 = arith.constant 4 : i32
    %106 = arith.index_cast %c4_i32 : i32 to index
    %c0_64 = arith.constant 0 : index
    %c0_65 = arith.constant 0 : index
    %107 = vector.load %arg15[%106, %c0_64, %c0_65] : memref<9x16x32xf32, #tpu.memory_space<vmem>>, vector<1x16x32xf32>
    %108 = vector.shape_cast %107 : vector<1x16x32xf32> to vector<16x32xf32>
    %109 = arith.mulf %108, %101 : vector<16x32xf32>
    %110 = arith.index_cast %c4_i32 : i32 to index
    %c0_66 = arith.constant 0 : index
    %c0_67 = arith.constant 0 : index
    %111 = vector.load %arg16[%110, %c0_66, %c0_67] : memref<9x16x32xf32, #tpu.memory_space<vmem>>, vector<1x16x32xf32>
    %112 = vector.shape_cast %111 : vector<1x16x32xf32> to vector<16x32xf32>
    %113 = arith.addf %109, %112 : vector<16x32xf32>
    %114 = arith.index_cast %c4_i32 : i32 to index
    %c0_68 = arith.constant 0 : index
    %c0_69 = arith.constant 0 : index
    %115 = vector.load %arg17[%114, %c0_68, %c0_69] : memref<9x16x32xf32, #tpu.memory_space<vmem>>, vector<1x16x32xf32>
    %116 = vector.shape_cast %115 : vector<1x16x32xf32> to vector<16x32xf32>
    %117 = vector.shape_cast %113 : vector<16x32xf32> to vector<1x16x32xf32>
    tpu.vector_store %arg17[%114, %c0_68, %c0_69], %117 {strides = array<i32>} : memref<9x16x32xf32, #tpu.memory_space<vmem>>, vector<1x16x32xf32>,
    %c5_i32 = arith.constant 5 : i32
    %118 = arith.index_cast %c5_i32 : i32 to index
    %c0_70 = arith.constant 0 : index
    %c0_71 = arith.constant 0 : index
    %119 = vector.load %arg15[%118, %c0_70, %c0_71] : memref<9x16x32xf32, #tpu.memory_space<vmem>>, vector<1x16x32xf32>
    %120 = vector.shape_cast %119 : vector<1x16x32xf32> to vector<16x32xf32>
    %121 = arith.mulf %120, %113 : vector<16x32xf32>
    %122 = arith.index_cast %c5_i32 : i32 to index
    %c0_72 = arith.constant 0 : index
    %c0_73 = arith.constant 0 : index
    %123 = vector.load %arg16[%122, %c0_72, %c0_73] : memref<9x16x32xf32, #tpu.memory_space<vmem>>, vector<1x16x32xf32>
    %124 = vector.shape_cast %123 : vector<1x16x32xf32> to vector<16x32xf32>
    %125 = arith.addf %121, %124 : vector<16x32xf32>
    %126 = arith.index_cast %c5_i32 : i32 to index
    %c0_74 = arith.constant 0 : index
    %c0_75 = arith.constant 0 : index
    %127 = vector.load %arg17[%126, %c0_74, %c0_75] : memref<9x16x32xf32, #tpu.memory_space<vmem>>, vector<1x16x32xf32>
    %128 = vector.shape_cast %127 : vector<1x16x32xf32> to vector<16x32xf32>
    %129 = vector.shape_cast %125 : vector<16x32xf32> to vector<1x16x32xf32>
    tpu.vector_store %arg17[%126, %c0_74, %c0_75], %129 {strides = array<i32>} : memref<9x16x32xf32, #tpu.memory_space<vmem>>, vector<1x16x32xf32>,
    %c6_i32 = arith.constant 6 : i32
    %130 = arith.index_cast %c6_i32 : i32 to index
    %c0_76 = arith.constant 0 : index
    %c0_77 = arith.constant 0 : index
    %131 = vector.load %arg15[%130, %c0_76, %c0_77] : memref<9x16x32xf32, #tpu.memory_space<vmem>>, vector<1x16x32xf32>
    %132 = vector.shape_cast %131 : vector<1x16x32xf32> to vector<16x32xf32>
    %133 = arith.mulf %132, %125 : vector<16x32xf32>
    %134 = arith.index_cast %c6_i32 : i32 to index
    %c0_78 = arith.constant 0 : index
    %c0_79 = arith.constant 0 : index
    %135 = vector.load %arg16[%134, %c0_78, %c0_79] : memref<9x16x32xf32, #tpu.memory_space<vmem>>, vector<1x16x32xf32>
    %136 = vector.shape_cast %135 : vector<1x16x32xf32> to vector<16x32xf32>
    %137 = arith.addf %133, %136 : vector<16x32xf32>
    %138 = arith.index_cast %c6_i32 : i32 to index
    %c0_80 = arith.constant 0 : index
    %c0_81 = arith.constant 0 : index
    %139 = vector.load %arg17[%138, %c0_80, %c0_81] : memref<9x16x32xf32, #tpu.memory_space<vmem>>, vector<1x16x32xf32>
    %140 = vector.shape_cast %139 : vector<1x16x32xf32> to vector<16x32xf32>
    %141 = vector.shape_cast %137 : vector<16x32xf32> to vector<1x16x32xf32>
    tpu.vector_store %arg17[%138, %c0_80, %c0_81], %141 {strides = array<i32>} : memref<9x16x32xf32, #tpu.memory_space<vmem>>, vector<1x16x32xf32>,
    %c7_i32 = arith.constant 7 : i32
    %142 = arith.index_cast %c7_i32 : i32 to index
    %c0_82 = arith.constant 0 : index
    %c0_83 = arith.constant 0 : index
    %143 = vector.load %arg15[%142, %c0_82, %c0_83] : memref<9x16x32xf32, #tpu.memory_space<vmem>>, vector<1x16x32xf32>
    %144 = vector.shape_cast %143 : vector<1x16x32xf32> to vector<16x32xf32>
    %145 = arith.mulf %144, %137 : vector<16x32xf32>
    %146 = arith.index_cast %c7_i32 : i32 to index
    %c0_84 = arith.constant 0 : index
    %c0_85 = arith.constant 0 : index
    %147 = vector.load %arg16[%146, %c0_84, %c0_85] : memref<9x16x32xf32, #tpu.memory_space<vmem>>, vector<1x16x32xf32>
    %148 = vector.shape_cast %147 : vector<1x16x32xf32> to vector<16x32xf32>
    %149 = arith.addf %145, %148 : vector<16x32xf32>
    %150 = arith.index_cast %c7_i32 : i32 to index
    %c0_86 = arith.constant 0 : index
    %c0_87 = arith.constant 0 : index
    %151 = vector.load %arg17[%150, %c0_86, %c0_87] : memref<9x16x32xf32, #tpu.memory_space<vmem>>, vector<1x16x32xf32>
    %152 = vector.shape_cast %151 : vector<1x16x32xf32> to vector<16x32xf32>
    %153 = vector.shape_cast %149 : vector<16x32xf32> to vector<1x16x32xf32>
    tpu.vector_store %arg17[%150, %c0_86, %c0_87], %153 {strides = array<i32>} : memref<9x16x32xf32, #tpu.memory_space<vmem>>, vector<1x16x32xf32>,
    %c8_i32 = arith.constant 8 : i32
    %154 = arith.index_cast %c8_i32 : i32 to index
    %c0_88 = arith.constant 0 : index
    %c0_89 = arith.constant 0 : index
    %155 = vector.load %arg15[%154, %c0_88, %c0_89] : memref<9x16x32xf32, #tpu.memory_space<vmem>>, vector<1x16x32xf32>
    %156 = vector.shape_cast %155 : vector<1x16x32xf32> to vector<16x32xf32>
    %157 = arith.mulf %156, %149 : vector<16x32xf32>
    %158 = arith.index_cast %c8_i32 : i32 to index
    %c0_90 = arith.constant 0 : index
    %c0_91 = arith.constant 0 : index
    %159 = vector.load %arg16[%158, %c0_90, %c0_91] : memref<9x16x32xf32, #tpu.memory_space<vmem>>, vector<1x16x32xf32>
    %160 = vector.shape_cast %159 : vector<1x16x32xf32> to vector<16x32xf32>
    %161 = arith.addf %157, %160 : vector<16x32xf32>
    %162 = arith.index_cast %c8_i32 : i32 to index
    %c0_92 = arith.constant 0 : index
    %c0_93 = arith.constant 0 : index
    %163 = vector.load %arg17[%162, %c0_92, %c0_93] : memref<9x16x32xf32, #tpu.memory_space<vmem>>, vector<1x16x32xf32>
    %164 = vector.shape_cast %163 : vector<1x16x32xf32> to vector<16x32xf32>
    %165 = vector.shape_cast %161 : vector<16x32xf32> to vector<1x16x32xf32>
    tpu.vector_store %arg17[%162, %c0_92, %c0_93], %165 {strides = array<i32>} : memref<9x16x32xf32, #tpu.memory_space<vmem>>, vector<1x16x32xf32>,
    %c9_i32 = arith.constant 9 : i32
    %166 = vector.shape_cast %41 : vector<9x16xf32> to vector<9x16x1xf32>
    %c0_94 = arith.constant 0 : index
    %c0_95 = arith.constant 0 : index
    %c0_96 = arith.constant 0 : index
    %167 = vector.load %arg17[%c0_94, %c0_95, %c0_96] : memref<9x16x32xf32, #tpu.memory_space<vmem>>, vector<9x16x32xf32>
    %168 = vector.broadcast %166 : vector<9x16x1xf32> to vector<9x16x32xf32>
    %169 = arith.mulf %168, %167 : vector<9x16x32xf32>
    %cst_97 = arith.constant dense<0.000000e+00> : vector<9x32xf32>
    %170 = vector.multi_reduction <add>, %169, %cst_97 [1] : vector<9x16x32xf32> to vector<9x32xf32>
    %c0_98 = arith.constant 0 : index
    %c0_99 = arith.constant 0 : index
    %171 = vector.load %arg14[%c0_98, %c0_99] : memref<9x32xf32, #tpu.memory_space<vmem>>, vector<9x32xf32>
    %c0_100 = arith.constant 0 : index
    %c0_101 = arith.constant 0 : index
    %c0_102 = arith.constant 0 : index
    %172 = vector.load %arg10[%c0_100, %c0_101, %c0_102] : memref<1x1x32xf32, #tpu.memory_space<vmem>>, vector<1x1x32xf32>
    %173 = vector.shape_cast %172 : vector<1x1x32xf32> to vector<1x32xf32>
    %174 = vector.broadcast %173 : vector<1x32xf32> to vector<9x32xf32>
    %175 = arith.mulf %174, %14 : vector<9x32xf32>
    %176 = arith.addf %170, %175 : vector<9x32xf32>
    %177 = arith.addf %171, %176 : vector<9x32xf32>
    %c0_103 = arith.constant 0 : index
    %c0_104 = arith.constant 0 : index
    %178 = vector.load %arg14[%c0_103, %c0_104] : memref<9x32xf32, #tpu.memory_space<vmem>>, vector<9x32xf32>
    tpu.vector_store %arg14[%c0_103, %c0_104], %177 {strides = array<i32>} : memref<9x32xf32, #tpu.memory_space<vmem>>, vector<9x32xf32>,
    %c1_i32_105 = arith.constant 1 : i32
    %179 = arith.cmpi eq, %arg2, %c1_i32_105 : i32
    %180 = arith.extui %179 : i1 to i32
    %c0_i32_106 = arith.constant 0 : i32
    %181 = arith.cmpi ne, %180, %c0_i32_106 : i32
    scf.if %181 {
      %c0_107 = arith.constant 0 : index
      %c0_108 = arith.constant 0 : index
      %182 = vector.load %arg14[%c0_107, %c0_108] : memref<9x32xf32, #tpu.memory_space<vmem>>, vector<9x32xf32>
      %c0_109 = arith.constant 0 : index
      %c0_110 = arith.constant 0 : index
      %c0_111 = arith.constant 0 : index
      %c0_112 = arith.constant 0 : index
      %183 = vector.load %arg11[%c0_109, %c0_110, %c0_111, %c0_112] : memref<1x1x9x32xf32, #tpu.memory_space<vmem>>, vector<1x1x9x32xf32>
      %184 = vector.shape_cast %183 : vector<1x1x9x32xf32> to vector<9x32xf32>
      %185 = arith.mulf %182, %184 : vector<9x32xf32>
      %c0_113 = arith.constant 0 : index
      %c0_114 = arith.constant 0 : index
      %c0_115 = arith.constant 0 : index
      %186 = vector.load %arg12[%c0_113, %c0_114, %c0_115] : memref<1x9x32xf32, #tpu.memory_space<vmem>>, vector<1x9x32xf32>
      %187 = vector.shape_cast %186 : vector<1x9x32xf32> to vector<9x32xf32>
      %188 = arith.addf %185, %187 : vector<9x32xf32>
      %189 = math.tanh %188 : vector<9x32xf32>
      %c0_116 = arith.constant 0 : index
      %c0_117 = arith.constant 0 : index
      %c0_118 = arith.constant 0 : index
      %c0_119 = arith.constant 0 : index
      %190 = vector.load %arg13[%c0_116, %c0_117, %c0_118, %c0_119] : memref<1x1x9x32xf32, #tpu.memory_space<vmem>>, vector<1x1x9x32xf32>
      %191 = vector.shape_cast %190 : vector<1x1x9x32xf32> to vector<9x32xf32>
      %192 = vector.shape_cast %189 : vector<9x32xf32> to vector<1x1x9x32xf32>
      tpu.vector_store %arg13[%c0_116, %c0_117, %c0_118, %c0_119], %192 {strides = array<i32>} : memref<1x1x9x32xf32, #tpu.memory_space<vmem>>, vector<1x1x9x32xf32>,
    } else {
    }
    return
  }
  func.func @transform_0(%arg0: i32, %arg1: i32, %arg2: i32) -> (i32, i32, i32, i32, i32) {
    %c0_i32 = arith.constant 0 : i32
    %c0_i32_0 = arith.constant 0 : i32
    %c0_i32_1 = arith.constant 0 : i32
    return %arg0, %arg2, %arg1, %c0_i32, %c0_i32_0 : i32, i32, i32, i32, i32
  }
  func.func @transform_1(%arg0: i32, %arg1: i32, %arg2: i32) -> (i32, i32, i32) {
    %c0_i32 = arith.constant 0 : i32
    %c0_i32_0 = arith.constant 0 : i32
    %c0_i32_1 = arith.constant 0 : i32
    return %arg0, %c0_i32, %c0_i32_0 : i32, i32, i32
  }
  func.func @transform_2(%arg0: i32, %arg1: i32, %arg2: i32) -> (i32, i32, i32) {
    %c0_i32 = arith.constant 0 : i32
    %c0_i32_0 = arith.constant 0 : i32
    %c0_i32_1 = arith.constant 0 : i32
    return %arg0, %c0_i32, %c0_i32_0 : i32, i32, i32
  }
  func.func @transform_3(%arg0: i32, %arg1: i32, %arg2: i32) -> (i32, i32, i32) {
    %c0_i32 = arith.constant 0 : i32
    %c0_i32_0 = arith.constant 0 : i32
    %c0_i32_1 = arith.constant 0 : i32
    return %arg0, %c0_i32, %c0_i32_0 : i32, i32, i32
  }
  func.func @transform_4(%arg0: i32, %arg1: i32, %arg2: i32) -> (i32, i32, i32) {
    %c0_i32 = arith.constant 0 : i32
    %c0_i32_0 = arith.constant 0 : i32
    %c0_i32_1 = arith.constant 0 : i32
    return %arg0, %c0_i32, %c0_i32_0 : i32, i32, i32
  }
  func.func @transform_5(%arg0: i32, %arg1: i32, %arg2: i32) -> (i32, i32, i32) {
    %c0_i32 = arith.constant 0 : i32
    %c0_i32_0 = arith.constant 0 : i32
    %c0_i32_1 = arith.constant 0 : i32
    return %arg0, %c0_i32, %c0_i32_0 : i32, i32, i32
  }
  func.func @transform_6(%arg0: i32, %arg1: i32, %arg2: i32) -> (i32, i32, i32) {
    %c0_i32 = arith.constant 0 : i32
    %c0_i32_0 = arith.constant 0 : i32
    %c0_i32_1 = arith.constant 0 : i32
    return %arg0, %c0_i32, %c0_i32_0 : i32, i32, i32
  }
  func.func @transform_7(%arg0: i32, %arg1: i32, %arg2: i32) -> (i32, i32, i32) {
    %c0_i32 = arith.constant 0 : i32
    %c0_i32_0 = arith.constant 0 : i32
    %c0_i32_1 = arith.constant 0 : i32
    return %arg0, %c0_i32, %c0_i32_0 : i32, i32, i32
  }
  func.func @transform_8(%arg0: i32, %arg1: i32, %arg2: i32) -> (i32, i32, i32, i32) {
    %c0_i32 = arith.constant 0 : i32
    %c0_i32_0 = arith.constant 0 : i32
    %c0_i32_1 = arith.constant 0 : i32
    return %arg0, %arg1, %c0_i32, %c0_i32_0 : i32, i32, i32, i32
  }
  func.func @transform_9(%arg0: i32, %arg1: i32, %arg2: i32) -> (i32, i32, i32) {
    %c0_i32 = arith.constant 0 : i32
    %c0_i32_0 = arith.constant 0 : i32
    %c0_i32_1 = arith.constant 0 : i32
    return %arg1, %c0_i32, %c0_i32_0 : i32, i32, i32
  }
  func.func @transform_10(%arg0: i32, %arg1: i32, %arg2: i32) -> (i32, i32, i32, i32) {
    %c0_i32 = arith.constant 0 : i32
    %c0_i32_0 = arith.constant 0 : i32
    %c0_i32_1 = arith.constant 0 : i32
    return %arg0, %arg1, %c0_i32, %c0_i32_0 : i32, i32, i32, i32
  }
}

module attributes {stable_mosaic.version = 11 : i64} {
  func.func @_linear_kernel(%arg0: i32, %arg1: memref<64x5xf32, #tpu.memory_space<vmem>>, %arg2: memref<5x5xf32, #tpu.memory_space<vmem>>, %arg3: memref<1x5xf32, #tpu.memory_space<vmem>>, %arg4: memref<64x5xf32, #tpu.memory_space<vmem>>) attributes {dimension_semantics = [#tpu.dimension_semantics<parallel>], iteration_bounds = array<i64: 1>, scalar_prefetch = 0 : i64, scratch_operands = 0 : i64, tpu.core_type = #tpu.core_type<tc>, window_params = [{transform_indices = @transform_0, window_bounds = array<i64: 64, 5>}, {pipeline_mode = #tpu.pipeline_mode<synchronous>, transform_indices = @transform_1, window_bounds = array<i64: 5, 5>}, {pipeline_mode = #tpu.pipeline_mode<synchronous>, transform_indices = @transform_2, window_bounds = array<i64: 1, 5>}, {transform_indices = @transform_3, window_bounds = array<i64: 64, 5>}]} {
    %c0 = arith.constant 0 : index
    %c0_0 = arith.constant 0 : index
    %0 = vector.load %arg1[%c0, %c0_0] : memref<64x5xf32, #tpu.memory_space<vmem>>, vector<64x5xf32>
    %c0_1 = arith.constant 0 : index
    %c0_2 = arith.constant 0 : index
    %1 = vector.load %arg2[%c0_1, %c0_2] : memref<5x5xf32, #tpu.memory_space<vmem>>, vector<5x5xf32>
    %cst = arith.constant dense<0.000000e+00> : vector<64x5xf32>
    %2 = tpu.matmul %0, %1, %cst {dimension_numbers = #tpu.dot_dimension_numbers<[1], [0], [0], [1], [0, 0, 1, 1], [], []>} : vector<64x5xf32>, vector<5x5xf32>, vector<64x5xf32> -> vector<64x5xf32>
    %c0_3 = arith.constant 0 : index
    %c0_4 = arith.constant 0 : index
    %3 = vector.load %arg3[%c0_3, %c0_4] : memref<1x5xf32, #tpu.memory_space<vmem>>, vector<1x5xf32>
    %4 = vector.broadcast %3 : vector<1x5xf32> to vector<64x5xf32>
    %5 = arith.addf %2, %4 : vector<64x5xf32>
    %c0_5 = arith.constant 0 : index
    %c0_6 = arith.constant 0 : index
    %6 = vector.load %arg4[%c0_5, %c0_6] : memref<64x5xf32, #tpu.memory_space<vmem>>, vector<64x5xf32>
    tpu.vector_store %arg4[%c0_5, %c0_6], %5 {strides = array<i32>} : memref<64x5xf32, #tpu.memory_space<vmem>>, vector<64x5xf32>,
    return
  }
  func.func @transform_0(%arg0: i32) -> (i32, i32) {
    %c0_i32 = arith.constant 0 : i32
    %c0_i32_0 = arith.constant 0 : i32
    return %arg0, %c0_i32 : i32, i32
  }
  func.func @transform_1(%arg0: i32) -> (i32, i32) {
    %c0_i32 = arith.constant 0 : i32
    %c0_i32_0 = arith.constant 0 : i32
    %c0_i32_1 = arith.constant 0 : i32
    return %c0_i32, %c0_i32_0 : i32, i32
  }
  func.func @transform_2(%arg0: i32) -> (i32, i32) {
    %c0_i32 = arith.constant 0 : i32
    %c0_i32_0 = arith.constant 0 : i32
    %c0_i32_1 = arith.constant 0 : i32
    return %c0_i32, %c0_i32_0 : i32, i32
  }
  func.func @transform_3(%arg0: i32) -> (i32, i32) {
    %c0_i32 = arith.constant 0 : i32
    %c0_i32_0 = arith.constant 0 : i32
    return %arg0, %c0_i32 : i32, i32
  }
}

module attributes {stable_mosaic.version = 11 : i64} {
  func.func @_token_stage_kernel(%arg0: i32, %arg1: memref<3xf32, #tpu.memory_space<smem>>, %arg2: memref<3xf32, #tpu.memory_space<smem>>, %arg3: memref<1x9x64xf32, #tpu.memory_space<vmem>>, %arg4: memref<1x9x1xf32, #tpu.memory_space<vmem>>, %arg5: memref<1x9x32xf32, #tpu.memory_space<vmem>>, %arg6: memref<64x32xf32, #tpu.memory_space<vmem>>, %arg7: memref<1x32xf32, #tpu.memory_space<vmem>>, %arg8: memref<32x5xf32, #tpu.memory_space<vmem>>, %arg9: memref<32x32xf32, #tpu.memory_space<vmem>>, %arg10: memref<5x9xf32, #tpu.memory_space<vmem>>, %arg11: memref<32x5xf32, #tpu.memory_space<vmem>>, %arg12: memref<1x5xf32, #tpu.memory_space<vmem>>, %arg13: memref<1x5x32xf32, #tpu.memory_space<vmem>>, %arg14: memref<1x5x5xf32, #tpu.memory_space<vmem>>, %arg15: memref<1x5x32xf32, #tpu.memory_space<vmem>>) attributes {dimension_semantics = [#tpu.dimension_semantics<parallel>], iteration_bounds = array<i64: 2>, scalar_prefetch = 0 : i64, scratch_operands = 0 : i64, tpu.core_type = #tpu.core_type<tc>, window_params = [{transform_indices = @transform_0, window_bounds = array<i64: 3>}, {transform_indices = @transform_1, window_bounds = array<i64: 3>}, {transform_indices = @transform_2, window_bounds = array<i64: 1, 9, 64>}, {transform_indices = @transform_3, window_bounds = array<i64: 1, 9, 1>}, {transform_indices = @transform_4, window_bounds = array<i64: 1, 9, 32>}, {pipeline_mode = #tpu.pipeline_mode<synchronous>, transform_indices = @transform_5, window_bounds = array<i64: 64, 32>}, {pipeline_mode = #tpu.pipeline_mode<synchronous>, transform_indices = @transform_6, window_bounds = array<i64: 1, 32>}, {pipeline_mode = #tpu.pipeline_mode<synchronous>, transform_indices = @transform_7, window_bounds = array<i64: 32, 5>}, {pipeline_mode = #tpu.pipeline_mode<synchronous>, transform_indices = @transform_8, window_bounds = array<i64: 32, 32>}, {pipeline_mode = #tpu.pipeline_mode<synchronous>, transform_indices = @transform_9, window_bounds = array<i64: 5, 9>}, {pipeline_mode = #tpu.pipeline_mode<synchronous>, transform_indices = @transform_10, window_bounds = array<i64: 32, 5>}, {pipeline_mode = #tpu.pipeline_mode<synchronous>, transform_indices = @transform_11, window_bounds = array<i64: 1, 5>}, {transform_indices = @transform_12, window_bounds = array<i64: 1, 5, 32>}, {transform_indices = @transform_13, window_bounds = array<i64: 1, 5, 5>}, {transform_indices = @transform_14, window_bounds = array<i64: 1, 5, 32>}]} {
    %c0 = arith.constant 0 : index
    %c0_0 = arith.constant 0 : index
    %c0_1 = arith.constant 0 : index
    %0 = vector.load %arg3[%c0, %c0_0, %c0_1] : memref<1x9x64xf32, #tpu.memory_space<vmem>>, vector<1x9x64xf32>
    %1 = vector.shape_cast %0 : vector<1x9x64xf32> to vector<9x64xf32>
    %c0_2 = arith.constant 0 : index
    %c0_3 = arith.constant 0 : index
    %2 = vector.load %arg6[%c0_2, %c0_3] : memref<64x32xf32, #tpu.memory_space<vmem>>, vector<64x32xf32>
    %cst = arith.constant dense<0.000000e+00> : vector<9x32xf32>
    %3 = tpu.matmul %1, %2, %cst {dimension_numbers = #tpu.dot_dimension_numbers<[1], [0], [0], [1], [0, 0, 1, 1], [], []>} : vector<9x64xf32>, vector<64x32xf32>, vector<9x32xf32> -> vector<9x32xf32>
    %c0_4 = arith.constant 0 : index
    %c0_5 = arith.constant 0 : index
    %4 = vector.load %arg7[%c0_4, %c0_5] : memref<1x32xf32, #tpu.memory_space<vmem>>, vector<1x32xf32>
    %5 = vector.broadcast %4 : vector<1x32xf32> to vector<9x32xf32>
    %6 = arith.addf %3, %5 : vector<9x32xf32>
    %c0_6 = arith.constant 0 : index
    %c0_7 = arith.constant 0 : index
    %c0_8 = arith.constant 0 : index
    %7 = vector.load %arg4[%c0_6, %c0_7, %c0_8] : memref<1x9x1xf32, #tpu.memory_space<vmem>>, vector<1x9x1xf32>
    %8 = vector.shape_cast %7 : vector<1x9x1xf32> to vector<9x1xf32>
    %9 = vector.broadcast %8 : vector<9x1xf32> to vector<9x32xf32>
    %10 = arith.mulf %6, %9 : vector<9x32xf32>
    %cst_9 = arith.constant dense<0xFF800000> : vector<9xf32>
    %11 = vector.multi_reduction <maximumf>, %10, %cst_9 [1] : vector<9x32xf32> to vector<9xf32>
    %12 = vector.shape_cast %11 : vector<9xf32> to vector<9x1xf32>
    %cst_10 = arith.constant dense<0.000000e+00> : vector<9xf32>
    %13 = vector.multi_reduction <add>, %10, %cst_10 [1] : vector<9x32xf32> to vector<9xf32>
    %14 = vector.shape_cast %13 : vector<9xf32> to vector<9x1xf32>
    %cst_11 = arith.constant 3.125000e-02 : f32
    %15 = vector.broadcast %cst_11 : f32 to vector<9x1xf32>
    %16 = arith.mulf %14, %15 : vector<9x1xf32>
    %c0_12 = arith.constant 0 : index
    %17 = memref.load %arg1[%c0_12] : memref<3xf32, #tpu.memory_space<smem>>
    %18 = vector.broadcast %17 : f32 to vector<9x1xf32>
    %19 = arith.mulf %18, %12 : vector<9x1xf32>
    %c1 = arith.constant 1 : index
    %20 = memref.load %arg1[%c1] : memref<3xf32, #tpu.memory_space<smem>>
    %21 = vector.broadcast %20 : f32 to vector<9x1xf32>
    %22 = arith.mulf %21, %16 : vector<9x1xf32>
    %23 = arith.addf %19, %22 : vector<9x1xf32>
    %c2 = arith.constant 2 : index
    %24 = memref.load %arg1[%c2] : memref<3xf32, #tpu.memory_space<smem>>
    %25 = vector.broadcast %24 : f32 to vector<9x1xf32>
    %26 = arith.addf %23, %25 : vector<9x1xf32>
    %cst_13 = arith.constant 0.999994993 : f32
    %27 = vector.broadcast %cst_13 : f32 to vector<9x1xf32>
    %28 = arith.mulf %26, %27 : vector<9x1xf32>
    %cst_14 = arith.constant 0.000000e+00 : f32
    %29 = vector.broadcast %cst_14 : f32 to vector<9x1xf32>
    %30 = arith.maximumf %28, %29 : vector<9x1xf32>
    %31 = arith.negf %30 : vector<9x1xf32>
    %32 = math.exp %31 : vector<9x1xf32>
    %cst_15 = arith.constant 1.000000e+00 : f32
    %33 = vector.broadcast %cst_15 : f32 to vector<9x1xf32>
    %34 = arith.addf %33, %32 : vector<9x1xf32>
    %35 = arith.divf %33, %34 : vector<9x1xf32>
    %36 = vector.broadcast %35 : vector<9x1xf32> to vector<9x32xf32>
    %37 = arith.mulf %10, %36 : vector<9x32xf32>
    %c0_16 = arith.constant 0 : index
    %c0_17 = arith.constant 0 : index
    %38 = vector.load %arg8[%c0_16, %c0_17] : memref<32x5xf32, #tpu.memory_space<vmem>>, vector<32x5xf32>
    %cst_18 = arith.constant dense<0.000000e+00> : vector<9x5xf32>
    %39 = tpu.matmul %37, %38, %cst_18 {dimension_numbers = #tpu.dot_dimension_numbers<[1], [0], [0], [1], [0, 0, 1, 1], [], []>} : vector<9x32xf32>, vector<32x5xf32>, vector<9x5xf32> -> vector<9x5xf32>
    %cst_19 = arith.constant dense<0xFF800000> : vector<5xf32>
    %40 = vector.multi_reduction <maximumf>, %39, %cst_19 [0] : vector<9x5xf32> to vector<5xf32>
    %41 = vector.shape_cast %40 : vector<5xf32> to vector<1x5xf32>
    %42 = vector.broadcast %41 : vector<1x5xf32> to vector<9x5xf32>
    %43 = arith.subf %39, %42 : vector<9x5xf32>
    %44 = math.exp %43 : vector<9x5xf32>
    %cst_20 = arith.constant dense<0.000000e+00> : vector<5xf32>
    %45 = vector.multi_reduction <add>, %44, %cst_20 [0] : vector<9x5xf32> to vector<5xf32>
    %46 = vector.shape_cast %45 : vector<5xf32> to vector<1x5xf32>
    %47 = tpu.reciprocal %46 {approx = true} : vector<1x5xf32> -> vector<1x5xf32>
    %48 = vector.broadcast %47 : vector<1x5xf32> to vector<9x5xf32>
    %49 = arith.mulf %44, %48 : vector<9x5xf32>
    %c0_21 = arith.constant 0 : index
    %c0_22 = arith.constant 0 : index
    %50 = vector.load %arg9[%c0_21, %c0_22] : memref<32x32xf32, #tpu.memory_space<vmem>>, vector<32x32xf32>
    %cst_23 = arith.constant dense<0.000000e+00> : vector<9x32xf32>
    %51 = tpu.matmul %37, %50, %cst_23 {dimension_numbers = #tpu.dot_dimension_numbers<[1], [0], [0], [1], [0, 0, 1, 1], [], []>} : vector<9x32xf32>, vector<32x32xf32>, vector<9x32xf32> -> vector<9x32xf32>
    %cst_24 = arith.constant dense<0.000000e+00> : vector<5x32xf32>
    %52 = tpu.matmul %49, %51, %cst_24 {dimension_numbers = #tpu.dot_dimension_numbers<[0], [0], [1], [1], [0, 1, 1, 1], [], []>} : vector<9x5xf32>, vector<9x32xf32>, vector<5x32xf32> -> vector<5x32xf32>
    %c0_25 = arith.constant 0 : index
    %c0_26 = arith.constant 0 : index
    %c0_27 = arith.constant 0 : index
    %53 = vector.load %arg13[%c0_25, %c0_26, %c0_27] : memref<1x5x32xf32, #tpu.memory_space<vmem>>, vector<1x5x32xf32>
    %54 = vector.shape_cast %53 : vector<1x5x32xf32> to vector<5x32xf32>
    %55 = vector.shape_cast %52 : vector<5x32xf32> to vector<1x5x32xf32>
    tpu.vector_store %arg13[%c0_25, %c0_26, %c0_27], %55 {strides = array<i32>} : memref<1x5x32xf32, #tpu.memory_space<vmem>>, vector<1x5x32xf32>,
    %c0_28 = arith.constant 0 : index
    %c0_29 = arith.constant 0 : index
    %56 = vector.load %arg10[%c0_28, %c0_29] : memref<5x9xf32, #tpu.memory_space<vmem>>, vector<5x9xf32>
    %c0_30 = arith.constant 0 : index
    %c0_31 = arith.constant 0 : index
    %c0_32 = arith.constant 0 : index
    %57 = vector.load %arg5[%c0_30, %c0_31, %c0_32] : memref<1x9x32xf32, #tpu.memory_space<vmem>>, vector<1x9x32xf32>
    %58 = vector.shape_cast %57 : vector<1x9x32xf32> to vector<9x32xf32>
    %cst_33 = arith.constant dense<0.000000e+00> : vector<5x32xf32>
    %59 = tpu.matmul %56, %58, %cst_33 {dimension_numbers = #tpu.dot_dimension_numbers<[1], [0], [0], [1], [0, 0, 1, 1], [], []>} : vector<5x9xf32>, vector<9x32xf32>, vector<5x32xf32> -> vector<5x32xf32>
    %60 = arith.negf %59 : vector<5x32xf32>
    %61 = math.exp %60 : vector<5x32xf32>
    %cst_34 = arith.constant 1.000000e+00 : f32
    %62 = vector.broadcast %cst_34 : f32 to vector<5x32xf32>
    %63 = arith.addf %62, %61 : vector<5x32xf32>
    %64 = arith.divf %62, %63 : vector<5x32xf32>
    %65 = arith.mulf %59, %64 : vector<5x32xf32>
    %c0_35 = arith.constant 0 : index
    %c0_36 = arith.constant 0 : index
    %66 = vector.load %arg11[%c0_35, %c0_36] : memref<32x5xf32, #tpu.memory_space<vmem>>, vector<32x5xf32>
    %cst_37 = arith.constant dense<0.000000e+00> : vector<5x5xf32>
    %67 = tpu.matmul %65, %66, %cst_37 {dimension_numbers = #tpu.dot_dimension_numbers<[1], [0], [0], [1], [0, 0, 1, 1], [], []>} : vector<5x32xf32>, vector<32x5xf32>, vector<5x5xf32> -> vector<5x5xf32>
    %c0_38 = arith.constant 0 : index
    %c0_39 = arith.constant 0 : index
    %68 = vector.load %arg12[%c0_38, %c0_39] : memref<1x5xf32, #tpu.memory_space<vmem>>, vector<1x5xf32>
    %69 = vector.broadcast %68 : vector<1x5xf32> to vector<5x5xf32>
    %70 = arith.addf %67, %69 : vector<5x5xf32>
    %71 = arith.negf %70 : vector<5x5xf32>
    %72 = math.exp %71 : vector<5x5xf32>
    %cst_40 = arith.constant 1.000000e+00 : f32
    %73 = vector.broadcast %cst_40 : f32 to vector<5x5xf32>
    %74 = arith.addf %73, %72 : vector<5x5xf32>
    %75 = arith.divf %73, %74 : vector<5x5xf32>
    %c0_41 = arith.constant 0 : index
    %c0_42 = arith.constant 0 : index
    %c0_43 = arith.constant 0 : index
    %76 = vector.load %arg14[%c0_41, %c0_42, %c0_43] : memref<1x5x5xf32, #tpu.memory_space<vmem>>, vector<1x5x5xf32>
    %77 = vector.shape_cast %76 : vector<1x5x5xf32> to vector<5x5xf32>
    %78 = vector.shape_cast %75 : vector<5x5xf32> to vector<1x5x5xf32>
    tpu.vector_store %arg14[%c0_41, %c0_42, %c0_43], %78 {strides = array<i32>} : memref<1x5x5xf32, #tpu.memory_space<vmem>>, vector<1x5x5xf32>,
    %cst_44 = arith.constant dense<0xFF800000> : vector<5xf32>
    %79 = vector.multi_reduction <maximumf>, %65, %cst_44 [1] : vector<5x32xf32> to vector<5xf32>
    %80 = vector.shape_cast %79 : vector<5xf32> to vector<5x1xf32>
    %cst_45 = arith.constant dense<0.000000e+00> : vector<5xf32>
    %81 = vector.multi_reduction <add>, %65, %cst_45 [1] : vector<5x32xf32> to vector<5xf32>
    %82 = vector.shape_cast %81 : vector<5xf32> to vector<5x1xf32>
    %cst_46 = arith.constant 3.125000e-02 : f32
    %83 = vector.broadcast %cst_46 : f32 to vector<5x1xf32>
    %84 = arith.mulf %82, %83 : vector<5x1xf32>
    %c0_47 = arith.constant 0 : index
    %85 = memref.load %arg2[%c0_47] : memref<3xf32, #tpu.memory_space<smem>>
    %86 = vector.broadcast %85 : f32 to vector<5x1xf32>
    %87 = arith.mulf %86, %80 : vector<5x1xf32>
    %c1_48 = arith.constant 1 : index
    %88 = memref.load %arg2[%c1_48] : memref<3xf32, #tpu.memory_space<smem>>
    %89 = vector.broadcast %88 : f32 to vector<5x1xf32>
    %90 = arith.mulf %89, %84 : vector<5x1xf32>
    %91 = arith.addf %87, %90 : vector<5x1xf32>
    %c2_49 = arith.constant 2 : index
    %92 = memref.load %arg2[%c2_49] : memref<3xf32, #tpu.memory_space<smem>>
    %93 = vector.broadcast %92 : f32 to vector<5x1xf32>
    %94 = arith.addf %91, %93 : vector<5x1xf32>
    %cst_50 = arith.constant 0.999994993 : f32
    %95 = vector.broadcast %cst_50 : f32 to vector<5x1xf32>
    %96 = arith.mulf %94, %95 : vector<5x1xf32>
    %cst_51 = arith.constant 0.000000e+00 : f32
    %97 = vector.broadcast %cst_51 : f32 to vector<5x1xf32>
    %98 = arith.maximumf %96, %97 : vector<5x1xf32>
    %99 = arith.negf %98 : vector<5x1xf32>
    %100 = math.exp %99 : vector<5x1xf32>
    %cst_52 = arith.constant 1.000000e+00 : f32
    %101 = vector.broadcast %cst_52 : f32 to vector<5x1xf32>
    %102 = arith.addf %101, %100 : vector<5x1xf32>
    %103 = arith.divf %101, %102 : vector<5x1xf32>
    %104 = vector.broadcast %103 : vector<5x1xf32> to vector<5x32xf32>
    %105 = arith.mulf %65, %104 : vector<5x32xf32>
    %c0_53 = arith.constant 0 : index
    %c0_54 = arith.constant 0 : index
    %c0_55 = arith.constant 0 : index
    %106 = vector.load %arg15[%c0_53, %c0_54, %c0_55] : memref<1x5x32xf32, #tpu.memory_space<vmem>>, vector<1x5x32xf32>
    %107 = vector.shape_cast %106 : vector<1x5x32xf32> to vector<5x32xf32>
    %108 = vector.shape_cast %105 : vector<5x32xf32> to vector<1x5x32xf32>
    tpu.vector_store %arg15[%c0_53, %c0_54, %c0_55], %108 {strides = array<i32>} : memref<1x5x32xf32, #tpu.memory_space<vmem>>, vector<1x5x32xf32>,
    return
  }
  func.func @transform_0(%arg0: i32) -> i32 {
    %c0_i32 = arith.constant 0 : i32
    %c0_i32_0 = arith.constant 0 : i32
    return %c0_i32 : i32
  }
  func.func @transform_1(%arg0: i32) -> i32 {
    %c0_i32 = arith.constant 0 : i32
    %c0_i32_0 = arith.constant 0 : i32
    return %c0_i32 : i32
  }
  func.func @transform_2(%arg0: i32) -> (i32, i32, i32) {
    %c0_i32 = arith.constant 0 : i32
    %c0_i32_0 = arith.constant 0 : i32
    %c0_i32_1 = arith.constant 0 : i32
    return %arg0, %c0_i32, %c0_i32_0 : i32, i32, i32
  }
  func.func @transform_3(%arg0: i32) -> (i32, i32, i32) {
    %c0_i32 = arith.constant 0 : i32
    %c0_i32_0 = arith.constant 0 : i32
    %c0_i32_1 = arith.constant 0 : i32
    return %arg0, %c0_i32, %c0_i32_0 : i32, i32, i32
  }
  func.func @transform_4(%arg0: i32) -> (i32, i32, i32) {
    %c0_i32 = arith.constant 0 : i32
    %c0_i32_0 = arith.constant 0 : i32
    %c0_i32_1 = arith.constant 0 : i32
    return %arg0, %c0_i32, %c0_i32_0 : i32, i32, i32
  }
  func.func @transform_5(%arg0: i32) -> (i32, i32) {
    %c0_i32 = arith.constant 0 : i32
    %c0_i32_0 = arith.constant 0 : i32
    %c0_i32_1 = arith.constant 0 : i32
    return %c0_i32, %c0_i32_0 : i32, i32
  }
  func.func @transform_6(%arg0: i32) -> (i32, i32) {
    %c0_i32 = arith.constant 0 : i32
    %c0_i32_0 = arith.constant 0 : i32
    %c0_i32_1 = arith.constant 0 : i32
    return %c0_i32, %c0_i32_0 : i32, i32
  }
  func.func @transform_7(%arg0: i32) -> (i32, i32) {
    %c0_i32 = arith.constant 0 : i32
    %c0_i32_0 = arith.constant 0 : i32
    %c0_i32_1 = arith.constant 0 : i32
    return %c0_i32, %c0_i32_0 : i32, i32
  }
  func.func @transform_8(%arg0: i32) -> (i32, i32) {
    %c0_i32 = arith.constant 0 : i32
    %c0_i32_0 = arith.constant 0 : i32
    %c0_i32_1 = arith.constant 0 : i32
    return %c0_i32, %c0_i32_0 : i32, i32
  }
  func.func @transform_9(%arg0: i32) -> (i32, i32) {
    %c0_i32 = arith.constant 0 : i32
    %c0_i32_0 = arith.constant 0 : i32
    %c0_i32_1 = arith.constant 0 : i32
    return %c0_i32, %c0_i32_0 : i32, i32
  }
  func.func @transform_10(%arg0: i32) -> (i32, i32) {
    %c0_i32 = arith.constant 0 : i32
    %c0_i32_0 = arith.constant 0 : i32
    %c0_i32_1 = arith.constant 0 : i32
    return %c0_i32, %c0_i32_0 : i32, i32
  }
  func.func @transform_11(%arg0: i32) -> (i32, i32) {
    %c0_i32 = arith.constant 0 : i32
    %c0_i32_0 = arith.constant 0 : i32
    %c0_i32_1 = arith.constant 0 : i32
    return %c0_i32, %c0_i32_0 : i32, i32
  }
  func.func @transform_12(%arg0: i32) -> (i32, i32, i32) {
    %c0_i32 = arith.constant 0 : i32
    %c0_i32_0 = arith.constant 0 : i32
    %c0_i32_1 = arith.constant 0 : i32
    return %arg0, %c0_i32, %c0_i32_0 : i32, i32, i32
  }
  func.func @transform_13(%arg0: i32) -> (i32, i32, i32) {
    %c0_i32 = arith.constant 0 : i32
    %c0_i32_0 = arith.constant 0 : i32
    %c0_i32_1 = arith.constant 0 : i32
    return %arg0, %c0_i32, %c0_i32_0 : i32, i32, i32
  }
  func.func @transform_14(%arg0: i32) -> (i32, i32, i32) {
    %c0_i32 = arith.constant 0 : i32
    %c0_i32_0 = arith.constant 0 : i32
    %c0_i32_1 = arith.constant 0 : i32
    return %arg0, %c0_i32, %c0_i32_0 : i32, i32, i32
  }
}

module attributes {stable_mosaic.version = 11 : i64} {
  func.func @_fuser_kernel(%arg0: i32, %arg1: memref<1x5x5xf32, #tpu.memory_space<vmem>>, %arg2: memref<1x5x32xf32, #tpu.memory_space<vmem>>, %arg3: memref<1x5x32xf32, #tpu.memory_space<vmem>>, %arg4: memref<32x32xf32, #tpu.memory_space<vmem>>, %arg5: memref<1x32xf32, #tpu.memory_space<vmem>>, %arg6: memref<1x5x32xf32, #tpu.memory_space<vmem>>) attributes {dimension_semantics = [#tpu.dimension_semantics<parallel>], iteration_bounds = array<i64: 2>, scalar_prefetch = 0 : i64, scratch_operands = 0 : i64, tpu.core_type = #tpu.core_type<tc>, window_params = [{transform_indices = @transform_0, window_bounds = array<i64: 1, 5, 5>}, {transform_indices = @transform_1, window_bounds = array<i64: 1, 5, 32>}, {transform_indices = @transform_2, window_bounds = array<i64: 1, 5, 32>}, {pipeline_mode = #tpu.pipeline_mode<synchronous>, transform_indices = @transform_3, window_bounds = array<i64: 32, 32>}, {pipeline_mode = #tpu.pipeline_mode<synchronous>, transform_indices = @transform_4, window_bounds = array<i64: 1, 32>}, {transform_indices = @transform_5, window_bounds = array<i64: 1, 5, 32>}]} {
    %c0 = arith.constant 0 : index
    %c0_0 = arith.constant 0 : index
    %c0_1 = arith.constant 0 : index
    %0 = vector.load %arg1[%c0, %c0_0, %c0_1] : memref<1x5x5xf32, #tpu.memory_space<vmem>>, vector<1x5x5xf32>
    %1 = vector.shape_cast %0 : vector<1x5x5xf32> to vector<5x5xf32>
    %c0_2 = arith.constant 0 : index
    %c0_3 = arith.constant 0 : index
    %c0_4 = arith.constant 0 : index
    %2 = vector.load %arg2[%c0_2, %c0_3, %c0_4] : memref<1x5x32xf32, #tpu.memory_space<vmem>>, vector<1x5x32xf32>
    %3 = vector.shape_cast %2 : vector<1x5x32xf32> to vector<5x32xf32>
    %cst = arith.constant dense<0.000000e+00> : vector<5x32xf32>
    %4 = tpu.matmul %1, %3, %cst {dimension_numbers = #tpu.dot_dimension_numbers<[1], [0], [0], [1], [0, 0, 1, 1], [], []>} : vector<5x5xf32>, vector<5x32xf32>, vector<5x32xf32> -> vector<5x32xf32>
    %c0_5 = arith.constant 0 : index
    %c0_6 = arith.constant 0 : index
    %c0_7 = arith.constant 0 : index
    %5 = vector.load %arg3[%c0_5, %c0_6, %c0_7] : memref<1x5x32xf32, #tpu.memory_space<vmem>>, vector<1x5x32xf32>
    %6 = vector.shape_cast %5 : vector<1x5x32xf32> to vector<5x32xf32>
    %7 = arith.addf %4, %6 : vector<5x32xf32>
    %c0_8 = arith.constant 0 : index
    %c0_9 = arith.constant 0 : index
    %8 = vector.load %arg4[%c0_8, %c0_9] : memref<32x32xf32, #tpu.memory_space<vmem>>, vector<32x32xf32>
    %cst_10 = arith.constant dense<0.000000e+00> : vector<5x32xf32>
    %9 = tpu.matmul %7, %8, %cst_10 {dimension_numbers = #tpu.dot_dimension_numbers<[1], [0], [0], [1], [0, 0, 1, 1], [], []>} : vector<5x32xf32>, vector<32x32xf32>, vector<5x32xf32> -> vector<5x32xf32>
    %c0_11 = arith.constant 0 : index
    %c0_12 = arith.constant 0 : index
    %10 = vector.load %arg5[%c0_11, %c0_12] : memref<1x32xf32, #tpu.memory_space<vmem>>, vector<1x32xf32>
    %11 = vector.broadcast %10 : vector<1x32xf32> to vector<5x32xf32>
    %12 = arith.addf %9, %11 : vector<5x32xf32>
    %13 = math.tanh %12 : vector<5x32xf32>
    %c0_13 = arith.constant 0 : index
    %c0_14 = arith.constant 0 : index
    %c0_15 = arith.constant 0 : index
    %14 = vector.load %arg6[%c0_13, %c0_14, %c0_15] : memref<1x5x32xf32, #tpu.memory_space<vmem>>, vector<1x5x32xf32>
    %15 = vector.shape_cast %14 : vector<1x5x32xf32> to vector<5x32xf32>
    %16 = vector.shape_cast %13 : vector<5x32xf32> to vector<1x5x32xf32>
    tpu.vector_store %arg6[%c0_13, %c0_14, %c0_15], %16 {strides = array<i32>} : memref<1x5x32xf32, #tpu.memory_space<vmem>>, vector<1x5x32xf32>,
    return
  }
  func.func @transform_0(%arg0: i32) -> (i32, i32, i32) {
    %c0_i32 = arith.constant 0 : i32
    %c0_i32_0 = arith.constant 0 : i32
    %c0_i32_1 = arith.constant 0 : i32
    return %arg0, %c0_i32, %c0_i32_0 : i32, i32, i32
  }
  func.func @transform_1(%arg0: i32) -> (i32, i32, i32) {
    %c0_i32 = arith.constant 0 : i32
    %c0_i32_0 = arith.constant 0 : i32
    %c0_i32_1 = arith.constant 0 : i32
    return %arg0, %c0_i32, %c0_i32_0 : i32, i32, i32
  }
  func.func @transform_2(%arg0: i32) -> (i32, i32, i32) {
    %c0_i32 = arith.constant 0 : i32
    %c0_i32_0 = arith.constant 0 : i32
    %c0_i32_1 = arith.constant 0 : i32
    return %arg0, %c0_i32, %c0_i32_0 : i32, i32, i32
  }
  func.func @transform_3(%arg0: i32) -> (i32, i32) {
    %c0_i32 = arith.constant 0 : i32
    %c0_i32_0 = arith.constant 0 : i32
    %c0_i32_1 = arith.constant 0 : i32
    return %c0_i32, %c0_i32_0 : i32, i32
  }
  func.func @transform_4(%arg0: i32) -> (i32, i32) {
    %c0_i32 = arith.constant 0 : i32
    %c0_i32_0 = arith.constant 0 : i32
    %c0_i32_1 = arith.constant 0 : i32
    return %c0_i32, %c0_i32_0 : i32, i32
  }
  func.func @transform_5(%arg0: i32) -> (i32, i32, i32) {
    %c0_i32 = arith.constant 0 : i32
    %c0_i32_0 = arith.constant 0 : i32
    %c0_i32_1 = arith.constant 0 : i32
    return %arg0, %c0_i32, %c0_i32_0 : i32, i32, i32
  }
}

</mosaic_0001>

<bundles_post_ra>
// kernel: t_mamba_forward.7
= control target key start
LH: loop header
LB: loop body
LE: loop exit
PB: predicated region body
PF: predicated region fallthrough
CT: control target
= control target key end

     0   :  { %s1459_s0 = inlined_call_operand.vmem [shape: f32[2,9,32], index: 0, kind: input, shape index: {}]   ;;  %s1460_s1 = inlined_call_operand.vmem [shape: f32[2,1,32], index: 1, kind: input, shape index: {}]   ;;  %s1461_s2 = inlined_call_operand.vmem [shape: f32[2,1,32], index: 2, kind: input, shape index: {}]   ;;  %s1462_s3 = inlined_call_operand.vmem [shape: f32[2,32,32], index: 3, kind: input, shape index: {}]   ;;  %s1463_s4 = inlined_call_operand.vmem [shape: f32[2,1,32], index: 4, kind: input, shape index: {}]   ;;  %s1464_s5 = inlined_call_operand.vmem [shape: f32[2,2,32,32], index: 5, kind: input, shape index: {}]   ;;  %s1465_s6 = inlined_call_operand.vmem [shape: f32[2,2,1,32], index: 6, kind: input, shape index: {}]   ;;  %s1466_s7 = inlined_call_operand.vmem [shape: f32[2,2,9,32], index: 7, kind: output, shape index: {0}]   ;;  %s1467_s8 = inlined_call_operand.vmem [shape: f32[2,2,2,9,32], index: 8, kind: output, shape index: {1}]  }
   0x1   :  { %1468 = sst [smem:[#allocation3_spill]] %s1459_s0 }
   0x2   :  { %1469 = sst [smem:[#allocation4_spill]] %s1460_s1 }
   0x3   :  { %s1304_s27 = smov 0   ;;  %s1306_s28 = smov 0  }
   0x4   :  { %s1308_s29 = smov 0   ;;  %s1310_s30 = smov 0  }
   0x5   :  { %s1312_s9 = smov 0   ;;  %s1314_s10 = smov 0  }
   0x6   :  { %s1316_s11 = smov 0  }
   0x7 LB: > { %s28_s12 = sadd.s32 1, %s1249_s9  ;;  %s31_s13 = sadd.s32 1, %s1253_s10  ;;  %s1257_s11 = sphi %s1316_s11, %s19_s11   ;;  %s1253_s10 = sphi %s1314_s10, %s1478_s10   ;;  %s1249_s9 = sphi %s1312_s9, %s1477_s9   ;;  %s1245_s30 = sphi %s1310_s30, %s1476_s30   ;;  %s1241_s29 = sphi %s1308_s29, %s1475_s29   ;;  %s1237_s28 = sphi %s1306_s28, %s1474_s28   ;;  %s1233_s27 = sphi %s1304_s27, %s1473_s27  }
   0x8   : > { %p29_p0 = scmp.ge.s32.totalorder %s28_s12, 2  ;;  %s1015_s14 = sadd.s32 4294967295, %s1257_s11  }
   0x9   : > { %p260_p1 = scmp.ne.s32.totalorder %s1237_s28, %s1233_s27  ;;  %p261_p2 = scmp.eq.s32.totalorder %s1015_s14, 3 }
   0xa   : > { %s1480_s12 = smov (%p29_p0, %s28_s12), 0  ;;  %s1482_s13 = smov (!%p29_p0, %s31_s13), %s1253_s10 }
   0xb   : > { %s246_s15 = ssub.s32 %s1249_s9, %s1480_s12  ;;  %p33_p3 = scmp.ge.s32.totalorder %s1482_s13, 2 }
   0xc   : > { %p1019_p4 = scmp.ge.s32.totalorder %s1257_s11, 1  ;;  %p1350_p5 = por %p261_p2, %p260_p1 }
   0xd   : > { %p334_p6 = scmp.lt.s32.totalorder %s1257_s11, 5  ;;  %s1484_s13 = smov (%p33_p3, %s1482_s13), 0 }
   0xe   : > { %s245_s17 = ssub.s32 %s1253_s10, %s1484_s13  ;;  %s250_s19 = sadd.s32 1, %s1237_s28 }
   0xf   : > { %p335_p7 = pnand %p1019_p4, %p334_p6  ;;  %s247_s18 = sor.u32 %s246_s15, %s245_s17 }
  0x10   : > { %p248_p8 = scmp.eq.s32.totalorder %s247_s18, 0  ;;  %p399_p9 = scmp.lt.s32.totalorder (!%p335_p7), %s1241_s29, 1  ;;  %vm440_vm0 = vcmask (!%p335_p7), 261120   ;;  %vm444_vm1 = vcmask (!%p335_p7), 253952  }
  0x11   : > { %338 = sbr.rel (%p335_p7) target bundleno = 786 (0x312), region = 48  ;;  %s1471_s0 = sld [smem:[#allocation3_spill]] (!%p335_p7) }
  0x12   : > { %s1361_s20 = scalar_select %p248_p8, %s1237_s28, %s250_s19  }
  0x13   : > { %p404_p10 = scmp.lt.s32.totalorder (!%p335_p7), %s1245_s30, 1  ;;  %s1472_s1 = sld [smem:[#allocation4_spill]] (!%p335_p7) }
  0x18   : > { %s1365_s21 = scalar_select %p399_p9, %s1241_s29, 1 }
  0x19   : > { %s1377_s26 = scalar_select %p404_p10, %s1245_s30, 1 }
  0x1a   : > { %s1057_s22 = sshll.u32 %s1365_s21, 4 }
  0x1b   : > { %s403_s25 = scalar_lea.vmem %s1471_s0, %s1057_s22  ;;  %s1058_s14 = sshll.u32 %s1377_s26, 5 }
  0x1c   : > { %v436_v0 = vld [vmem:[%s403_s25] sm:$0xff]  ;;  %v437_v1 = vld [vmem:[%s403_s25 + $0x8] sm:$0x1]  ;;  %s414_s18 = scalar_lea.vmem %s1462_s3, %s1058_s14  ;;  %s1059_s19 = sshll.u32 %s1377_s26, 6 }
  0x1d   : > { %v441_v2 = vsel %vm440_vm0, %v436_v0, 0.0  ;;  %v445_v3 = vsel %vm444_vm1, %v437_v1, 0.0  ;;  %v485_v14 = vld [vmem:[%s414_s18] sm:$0xff]  ;;  %v486_v15 = vld [vmem:[%s414_s18 + $0x8] sm:$0xff]  ;;  %v487_v16 = vld [vmem:[%s414_s18 + $0x10] sm:$0xff]  ;;  %s1387_s24 = scalar_lea.vmem %s1464_s5, %s1059_s19  ;;  %s406_s15 = scalar_lea.vmem %s1472_s1, %s1377_s26 }
  0x1e   : > { %442 = vadd.xlane.f32.xlu0 %v441_v2  ;;  %v1111_v17 = vpack.c.bf16 %v486_v15, %v485_v14  ;;  %v488_v18 = vld [vmem:[%s414_s18 + $0x18] sm:$0xff]  ;;  %v593_v20 = vld [vmem:[%s1387_s24] sm:$0xff]  ;;  %v594_v21 = vld [vmem:[%s1387_s24 + $0x8] sm:$0xff]  ;;  %s409_s19 = scalar_lea.vmem %s1461_s2, %s1377_s26  ;;  %s417_s25 = scalar_lea.vmem %s1463_s4, %s1377_s26 }
  0x1f   : > { %v1115_v19 = vpack.c.bf16 %v488_v18, %v487_v16  ;;  %v1041_v22 = vld [vmem:[%s1387_s24 + $0x20] sm:$0xff]  ;;  %v1119_v23 = vpack.c.bf16 %v594_v21, %v593_v20  ;;  %v1042_v24 = vld [vmem:[%s1387_s24 + $0x28] sm:$0xff]  ;;  %v595_v42 = vld [vmem:[%s1387_s24 + $0x10] sm:$0xff]  ;;  %s1029_s14 = sshll.u32 %s1377_s26, 2  ;;  %s1027_s23 = sshll.u32 %s1377_s26, 1 }
  0x20   : > { %1112 = vmatprep.subr.bf16.mxu0 %v1111_v17  ;;  %v1127_v25 = vpack.c.bf16 %v1042_v24, %v1041_v22  ;;  %v1031_v33 = vld [vmem:[%s406_s15] ss:$0 sm:$0xff]  ;;  %v596_v43 = vld [vmem:[%s1387_s24 + $0x18] sm:$0xff]  ;;  %v1043_v44 = vld [vmem:[%s1387_s24 + $0x30] sm:$0xff]  ;;  %s426_s1 = scalar_lea.vmem %s1465_s6, %s1027_s23  ;;  %s1052_s0 = sshll.u32 (%p1350_p5), %s1241_s29, 1 }
  0x21   : > { %1114 = vmatpush3.bf16.msra.mxu0 %v1111_v17  ;;  %1120 = vmatprep.subr.bf16.mxu1 %v1119_v23  ;;  %v1032_v35 = vld [vmem:[%s409_s19] ss:$0 sm:$0xff]  ;;  %v1123_v45 = vpack.c.bf16 %v596_v43, %v595_v42  ;;  %v1044_v46 = vld [vmem:[%s1387_s24 + $0x38] sm:$0xff]  ;;  %s1028_s24 = sshll.u32 %s1365_s21, 1 }
  0x22   : > { %446 = vadd.xlane.f32.xlu0 %v445_v3  ;;  %1116 = vmatprep.subr.bf16.mxu0 %v1115_v19  ;;  %v1131_v47 = vpack.c.bf16 %v1044_v46, %v1043_v44  ;;  %v1033_v48 = vld [vmem:[%s417_s25] ss:$0 sm:$0xff]  ;;  %s433_s15 = sadd.s32 %s1029_s14, %s1028_s24  ;;  %s396_s25 = sand.u32 1, %s1233_s27  }
  0x23   : > { %1122 = vmatpush3.bf16.msra.mxu1 %v1119_v23  ;;  %s1030_s17 = sshll.u32 %s433_s15, 3  ;;  %s1020_s24 = sshll.u32 %s396_s25, 5  ;;  %v1038_v63 = vld [vmem:[%s426_s1] ss:$0 sm:$0xff] }
  0x24   : > { %1124 = vmatprep.subr.bf16.mxu1 %v1123_v45  ;;  %s435_s22 = scalar_lea.vmem %s1466_s7, %s1030_s17  ;;  %s398_s14 = scalar_lea.vmem [#allocation2], %s1020_s24 }
  0x25   : > { %1118 = vmatpush3.bf16.msra.mxu0 %v1115_v19 }
  0x26   : > { %1128 = vmatprep.subr.bf16.mxu0 %v1127_v25 }
  0x27   : > { %1126 = vmatpush3.bf16.msra.mxu1 %v1123_v45 }
  0xab   : > { %v443_v4 = vpop.xlane.xlu0 %442 }
  0xac   : > { %v449_v5 = vmul.f32 0.03125, %v443_v4 }
  0xae   : > { %v451_v6 = vsub.f32 %v436_v0, %v449_v5  ;;  %v1046_v0 = vld [vmem:[%s426_s1 + $0x1] ss:$0 sm:$0xff]  ;;  %s1053_s1 = sshll.u32 (%p1350_p5), %s1245_s30, 3 }
  0xaf   : > { %v447_v7 = vpop.xlane.xlu0 %446  ;;  %s799_s27 = sadd.s32 (%p1350_p5), %s1053_s1, %s1052_s0 }
  0xb0   : > { %v450_v8 = vmul.f32 0.03125, %v447_v7  ;;  %v453_v9 = vmul.f32 %v451_v6, %v451_v6  ;;  %s1054_s26 = sshll.u32 (%p1350_p5), %s799_s27, 3 }
  0xb1   : > { %s801_s18 = scalar_lea.vmem (%p1350_p5), %s1467_s8, %s1054_s26 }
  0xb2   : > { %v452_v10 = vsub.f32 %v437_v1, %v450_v8  ;;  %v455_v11 = vsel %vm440_vm0, %v453_v9, 0.0 }
  0xb3   : > { %456 = vadd.xlane.f32.xlu1 %v455_v11 }
  0xb4   : > { %v454_v12 = vmul.f32 %v452_v10, %v452_v10 }
  0xb6   : > { %v458_v13 = vsel %vm444_vm1, %v454_v12, 0.0 }
  0xb7   : > { %459 = vadd.xlane.f32.xlu1 %v458_v13 }
 0x140   : > { %v457_v26 = vpop.xlane.xlu1 %456 }
 0x141   : > { %v461_v27 = vmul.f32 0.03125, %v457_v26 }
 0x143   : > { %v463_v28 = vadd.f32 1e-05, %v461_v27 }
 0x144   : > { %v460_v29 = vpop.xlane.xlu1 %459 }
 0x145   : > { %1191 = vrsqrt.f32 %v463_v28  ;;  %v462_v30 = vmul.f32 0.03125, %v460_v29 }
 0x147   : > { %v464_v31 = vadd.f32 1e-05, %v462_v30 }
 0x149   : > { %1193 = vrsqrt.f32 %v464_v31 }
 0x14f   : > { %v1192_v32 = vpop.eup %1191 }
 0x150   : > { %v467_v34 = vmul.f32 %v1192_v32, %v451_v6 }
 0x152   : > { %v475_v36 = vmul.f32 %v1031_v33, %v467_v34 }
 0x153   : > { %v1194_v37 = vpop.eup %1193 }
 0x154   : > { %v468_v38 = vmul.f32 %v1194_v37, %v452_v10  ;;  %v483_v39 = vadd.f32 %v1032_v35, %v475_v36 }
 0x156   : > { %v476_v40 = vmul.f32 %v1031_v33, %v468_v38  ;;  %1086 = vmatprep.mubr.msk.f32.mxu0 %vm440_vm0, %v483_v39 }
 0x158   : > { %v484_v41 = vadd.f32 %v1032_v35, %v476_v40 }
 0x15a   : > { %1087 = vmatmul.mubr.msk.f32.vlgmr.msra.gmra.mrb[0].mxu0 %vm440_vm0, %v484_v41 }
 0x15b   : > { %1130 = vmatpush3.bf16.msra.mxu0 %v1127_v25 }
 0x15c   : > { %1132 = vmatprep.subr.bf16.mxu0 %v1131_v47 }
 0x15f   : > { %1134 = vmatpush3.bf16.msra.mxu0 %v1131_v47 }
 0x22d   : > { %v1088_v49 = vpop.f32.mrb[0].mxu0 }
 0x22e   : > { %v574_v50 = vadd.f32 %v1088_v49, %v1033_v48  ;;  %v568_v51 = vpop.f32.mrb[1].mxu0 }
 0x22f   : > { %v569_v52 = vadd.f32 %v1033_v48, %v568_v51 }
 0x230   : > { %v1037_v53 = vmul.f32 -1.442695, %v574_v50 }
 0x231   : > { %v1036_v54 = vmul.f32 -1.442695, %v569_v52  ;;  %1097 = vmatprep.mubr.msk.f32.mxu1 %vm440_vm0, %v569_v52  ;;  %1108 = vmatprep.mubr.msk.f32.mxu0 %vm440_vm0, %v569_v52 }
 0x232   : > { %1195 = vpow2.f32 %v1037_v53  ;;  %1098 = vmatmul.mubr.msk.f32.vlgmr.msra.gmra.mrb[0].mxu1 %vm440_vm0, %v574_v50  ;;  %1109 = vmatmul.mubr.msk.f32.vlgmr.msra.gmra.mrb[2].mxu0 %vm440_vm0, %v574_v50 }
 0x233   : > { %1197 = vpow2.f32 %v1036_v54 }
 0x23c   : > { %v1196_v55 = vpop.eup %1195 }
 0x23d   : > { %v1198_v56 = vpop.eup %1197  ;;  %v584_v57 = vadd.f32 1.0, %v1196_v55 }
 0x23e   : > { %v583_v58 = vadd.f32 1.0, %v1198_v56 }
 0x23f   : > { %1199 = vrcp.f32 %v584_v57 }
 0x240   : > { %1201 = vrcp.f32 %v583_v58 }
 0x249   : > { %v1200_v59 = vpop.eup %1199 }
 0x24a   : > { %v1202_v60 = vpop.eup %1201  ;;  %v590_v61 = vmul.f32 %v1200_v59, %v574_v50 }
 0x24b   : > { %v589_v62 = vmul.f32 %v1202_v60, %v569_v52 }
 0x24c   : > { %592 = vst.msk [vmem:[%s435_s22 + $0x8] sm:$0x1] %vm444_vm1, %v590_v61 }
 0x24d   : > { %591 = vst.msk [vmem:[%s435_s22] sm:$0xff] %vm440_vm0, %v589_v62 }
 0x303   : > { %796 = sbr.rel (!%p1350_p5) target bundleno = 786 (0x312), region = 56 }
 0x305   : > { %v1099_v1 = vpop.f32.mrb[0].mxu1  ;;  %v1110_v2 = vpop.f32.mrb[2].mxu0 }
 0x306   : > { %v682_v3 = vadd.f32 %v1099_v1, %v1038_v63  ;;  %v772_v4 = vadd.f32 %v1110_v2, %v1046_v0  ;;  %v676_v5 = vpop.f32.mrb[1].mxu1  ;;  %v766_v6 = vpop.f32.mrb[3].mxu0 }
 0x307   : > { %v677_v7 = vadd.f32 %v1038_v63, %v676_v5  ;;  %v767_v8 = vadd.f32 %v1046_v0, %v766_v6 }
 0x308   : > { %686 = vst.msk [vmem:[%s398_s14 + $0x8] sm:$0x1] %vm444_vm1, %v682_v3  ;;  %1050 = vst.msk [vmem:[%s398_s14 + $0x18] sm:$0x1] %vm444_vm1, %v772_v4 }
 0x309   : > { %685 = vst.msk [vmem:[%s398_s14] sm:$0xff] %vm440_vm0, %v677_v7  ;;  %1049 = vst.msk [vmem:[%s398_s14 + $0x10] sm:$0xff] %vm440_vm0, %v767_v8 }
 0x30f   : > { %v837_v10 = vld [vmem:[%s398_s14 + $0x8] sm:$0xff]  ;;  %v841_v12 = vld [vmem:[%s398_s14 + $0x18] sm:$0xff] }
 0x310   : > { %v835_v9 = vld [vmem:[%s398_s14] sm:$0xff]  ;;  %v839_v11 = vld [vmem:[%s398_s14 + $0x10] sm:$0xff]  ;;  %838 = vst [vmem:[%s801_s18 + $0x8] sm:$0xff] %v837_v10  ;;  %842 = vst [vmem:[%s801_s18 + $0x28] sm:$0xff] %v841_v12 }
 0x311   : > { %836 = vst [vmem:[%s801_s18] sm:$0xff] %v835_v9  ;;  %840 = vst [vmem:[%s801_s18 + $0x20] sm:$0xff] %v839_v11 }
 0x312 PF: > { %s19_s11 = sadd.s32 1, %s1257_s11   ;;  %s1473_s27 = smov %s1237_s28 }
 0x313   : > { %p16_p11 = scmp.ge.s32.totalorder %s19_s11, 6   ;;  %s1474_s28 = smov %s1361_s20 }
 0x314   : > { %s1475_s29 = smov %s1249_s9  ;;  %s1476_s30 = smov %s1253_s10 }
 0x315   : > { %s1477_s9 = smov %s1480_s12  ;;  %s1478_s10 = smov %s1484_s13 }
 0x316   :  { %18 = sbr.rel (!%p16_p11) target bundleno = 7 (0x7), region = 149 }

// kernel: t_mamba_forward.6
= control target key start
LH: loop header
LB: loop body
LE: loop exit
PB: predicated region body
PF: predicated region fallthrough
CT: control target
= control target key end

     0   :  { %s1105_s25 = smov 0   ;;  %s1200_s0 = inlined_call_operand.vmem [shape: f32[2,9,4], index: 0, kind: input, shape index: {}]   ;;  %s1201_s1 = inlined_call_operand.vmem [shape: f32[1,4], index: 1, kind: input, shape index: {}]   ;;  %s1202_s2 = inlined_call_operand.vmem [shape: f32[1,4], index: 2, kind: input, shape index: {}]   ;;  %s1203_s3 = inlined_call_operand.vmem [shape: f32[4,32], index: 3, kind: input, shape index: {}]   ;;  %s1204_s4 = inlined_call_operand.vmem [shape: f32[1,32], index: 4, kind: input, shape index: {}]   ;;  %s1205_s5 = inlined_call_operand.vmem [shape: f32[1,32], index: 5, kind: input, shape index: {}]   ;;  %s1206_s6 = inlined_call_operand.vmem [shape: f32[1,32], index: 6, kind: input, shape index: {}]   ;;  %s1207_s7 = inlined_call_operand.vmem [shape: f32[32,32], index: 7, kind: input, shape index: {}]   ;;  %s1208_s8 = inlined_call_operand.vmem [shape: f32[1,32], index: 8, kind: input, shape index: {}]   ;;  %s1209_s9 = inlined_call_operand.vmem [shape: f32[32,32], index: 9, kind: input, shape index: {}]   ;;  %s1210_s10 = inlined_call_operand.vmem [shape: f32[1,32], index: 10, kind: input, shape index: {}]   ;;  %s1211_s11 = inlined_call_operand.vmem [shape: f32[9,32], index: 11, kind: input, shape index: {}]   ;;  %s1212_s12 = inlined_call_operand.vmem [shape: f32[2,9,32], index: 12, kind: output, shape index: {0}]   ;;  %s1213_s13 = inlined_call_operand.vmem [shape: f32[2,9,32], index: 13, kind: output, shape index: {1}]  }
   0x1 LB: > { %s923_s26 = sadd.s32 4294967295, %s1033_s25   ;;  %p927_p0 = scmp.ge.s32.totalorder %s1033_s25, 1  ;;  %s1033_s25 = sphi %s1105_s25, %s24_s25  }
   0x2   : > { %p390_p1 = scmp.lt.s32.totalorder %s1033_s25, 3 }
   0x4   : > { %p391_p2 = pnand %p927_p0, %p390_p1 }
   0x5   : > { %p439_p3 = scmp.lt.s32.totalorder (!%p391_p2), %s923_s26, 1  ;;  %vm458_vm0 = vcmask (!%p391_p2), 31744   ;;  %vm462_vm1 = vcmask (!%p391_p2), 24576   ;;  %v503_v14 = vld [vmem:[%s1203_s3] sm:$0xf] (!%p391_p2)  ;;  %vm517_vm2 = vcmask (!%p391_p2), 1043456  }
   0x6   : > { %394 = sbr.rel (%p391_p2) target bundleno = 1295 (0x50f), region = 68  ;;  %968 = vmatprep.subr.msk.mxu0 (!%p391_p2), %vm517_vm2, %v503_v14  ;;  %v934_v22 = vld [vmem:[%s1201_s1] ss:$0 sm:$0xff] (!%p391_p2)  ;;  %vm602_vm3 = vcmask (!%p391_p2), 253952   ;;  %vm598_vm4 = vcmask (!%p391_p2), 261120   ;;  %v644_v49 = vld [vmem:[%s1207_s7 + $0x8] sm:$0xff] (!%p391_p2) }
   0x7   : > { %969 = vmatpush3.msk.msra.mxu0 (!%p391_p2), %vm517_vm2, %v503_v14  ;;  %v935_v24 = vld [vmem:[%s1202_s2] ss:$0 sm:$0xff] (!%p391_p2)  ;;  %v645_v50 = vld [vmem:[%s1207_s7 + $0x10] sm:$0xff] (!%p391_p2)  ;;  %v646_v52 = vld [vmem:[%s1207_s7 + $0x18] sm:$0xff] (!%p391_p2) }
   0x8   : > { %v936_v31 = vld [vmem:[%s1204_s4] ss:$0 sm:$0xff] (!%p391_p2)  ;;  %v999_v53 = vpack.c.bf16 (!%p391_p2), %v646_v52, %v645_v50  ;;  %v736_v55 = vld [vmem:[%s1209_s9 + $0x8] sm:$0xff] (!%p391_p2) }
   0x9   : > { %v643_v48 = vld [vmem:[%s1207_s7] sm:$0xff] (!%p391_p2)  ;;  %v830_v14 = vld [vmem:[%s1211_s11 + $0x8] sm:$0x1] (!%p391_p2) }
   0xa   : > { %v995_v51 = vpack.c.bf16 (!%p391_p2), %v644_v49, %v643_v48  ;;  %v735_v54 = vld [vmem:[%s1209_s9] sm:$0xff] (!%p391_p2) }
   0xb   : > { %v1003_v56 = vpack.c.bf16 (!%p391_p2), %v736_v55, %v735_v54 }
   0xc   : > { %996 = vmatprep.subr.bf16.mxu1 (!%p391_p2), %v995_v51 }
   0xd   : > { %s1215_s26 = smov (!%p439_p3, %s923_s26), 1  ;;  %998 = vmatpush3.bf16.msra.mxu1 %v995_v51  ;;  %1004 = vmatprep.subr.bf16.mxu0 %v1003_v56 }
   0xe   : > { %s1113_s27 = sshll.u32 %s1215_s26, 4  ;;  %1000 = vmatprep.subr.bf16.mxu1 %v999_v53 }
   0xf   : > { %s443_s30 = scalar_lea.vmem %s1200_s0, %s1113_s27  ;;  %s448_s20 = scalar_lea.vmem %s1212_s12, %s1113_s27 }
  0x10   : > { %v454_v0 = vld [vmem:[%s443_s30] sm:$0xff]  ;;  %v455_v1 = vld [vmem:[%s443_s30 + $0x8] sm:$0x1]  ;;  %s453_s26 = scalar_lea.vmem %s1213_s13, %s1113_s27 }
  0x11   : > { %v459_v2 = vsel %vm458_vm0, %v454_v0, 0.0  ;;  %v463_v3 = vsel %vm462_vm1, %v455_v1, 0.0  ;;  %1002 = vmatpush3.bf16.msra.mxu1 %v999_v53 }
  0x12   : > { %460 = vadd.xlane.f32.xlu0 %v459_v2 }
  0x16   : > { %464 = vadd.xlane.f32.xlu0 %v463_v3 }
  0x9f   : > { %v461_v4 = vpop.xlane.xlu0 %460 }
  0xa0   : > { %v467_v5 = vmul.f32 0.25, %v461_v4  ;;  %v941_v4 = vld [vmem:[%s1206_s6] ss:$0 sm:$0xff] }
  0xa2   : > { %v469_v6 = vsub.f32 %v454_v0, %v467_v5  ;;  %v940_v0 = vld [vmem:[%s1205_s5] ss:$0 sm:$0xff] }
  0xa3   : > { %v465_v7 = vpop.xlane.xlu0 %464 }
  0xa4   : > { %v468_v8 = vmul.f32 0.25, %v465_v7  ;;  %v471_v9 = vmul.f32 %v469_v6, %v469_v6 }
  0xa6   : > { %v470_v10 = vsub.f32 %v455_v1, %v468_v8  ;;  %v473_v11 = vsel %vm458_vm0, %v471_v9, 0.0  ;;  %v737_v9 = vld [vmem:[%s1209_s9 + $0x10] sm:$0xff] }
  0xa7   : > { %474 = vadd.xlane.f32.xlu1 %v473_v11 }
  0xa8   : > { %v472_v12 = vmul.f32 %v470_v10, %v470_v10 }
  0xaa   : > { %v476_v13 = vsel %vm462_vm1, %v472_v12, 0.0  ;;  %v942_v12 = vld [vmem:[%s1208_s8] ss:$0 sm:$0xff] }
  0xab   : > { %477 = vadd.xlane.f32.xlu1 %v476_v13 }
 0x134   : > { %v475_v15 = vpop.xlane.xlu1 %474 }
 0x135   : > { %v479_v16 = vmul.f32 0.25, %v475_v15 }
 0x137   : > { %v481_v17 = vadd.f32 1e-05, %v479_v16 }
 0x138   : > { %v478_v18 = vpop.xlane.xlu1 %477 }
 0x139   : > { %1019 = vrsqrt.f32 %v481_v17  ;;  %v480_v19 = vmul.f32 0.25, %v478_v18  ;;  %v829_v17 = vld [vmem:[%s1211_s11] sm:$0xff] }
 0x13b   : > { %v482_v20 = vadd.f32 1e-05, %v480_v19 }
 0x13d   : > { %1021 = vrsqrt.f32 %v482_v20 }
 0x143   : > { %v1020_v21 = vpop.eup %1019 }
 0x144   : > { %v485_v23 = vmul.f32 %v1020_v21, %v469_v6  ;;  %v945_v21 = vld [vmem:[%s1210_s10] ss:$0 sm:$0xff] }
 0x146   : > { %v493_v25 = vmul.f32 %v934_v22, %v485_v23 }
 0x147   : > { %v1022_v26 = vpop.eup %1021 }
 0x148   : > { %v486_v27 = vmul.f32 %v1022_v26, %v470_v10  ;;  %v501_v28 = vadd.f32 %v935_v24, %v493_v25  ;;  %v738_v10 = vld [vmem:[%s1209_s9 + $0x18] sm:$0xff] }
 0x149   : > { %v1007_v11 = vpack.c.bf16 %v738_v10, %v737_v9 }
 0x14a   : > { %v494_v29 = vmul.f32 %v934_v22, %v486_v27  ;;  %970 = vmatprep.mubr.msk.f32.mxu0 %vm458_vm0, %v501_v28 }
 0x14c   : > { %v502_v30 = vadd.f32 %v935_v24, %v494_v29 }
 0x14e   : > { %971 = vmatmul.mubr.msk.f32.vlgmr.msra.gmra.mrb[0].mxu0 %vm458_vm0, %v502_v30 }
 0x14f   : > { %1006 = vmatpush3.bf16.msra.mxu0 %v1003_v56 }
 0x150   : > { %1008 = vmatprep.subr.bf16.mxu0 %v1007_v11 }
 0x153   : > { %1010 = vmatpush3.bf16.msra.mxu0 %v1007_v11 }
 0x221   : > { %v972_v32 = vpop.f32.mrb[0].mxu0 }
 0x222   : > { %v593_v33 = vadd.f32 %v972_v32, %v936_v31  ;;  %v587_v34 = vpop.f32.mrb[1].mxu0 }
 0x223   : > { %v588_v35 = vadd.f32 %v936_v31, %v587_v34 }
 0x224   : > { %v603_v36 = vsel %vm602_vm3, %v593_v33, 0.0 }
 0x225   : > { %604 = vadd.xlane.f32.xlu1 %v603_v36  ;;  %v599_v37 = vsel %vm598_vm4, %v588_v35, 0.0 }
 0x226   : > { %600 = vadd.xlane.f32.xlu0 %v599_v37 }
 0x2b2   : > { %v605_v38 = vpop.xlane.xlu1 %604 }
 0x2b3   : > { %v608_v39 = vmul.f32 0.03125, %v605_v38  ;;  %v601_v40 = vpop.xlane.xlu0 %600 }
 0x2b4   : > { %v607_v41 = vmul.f32 0.03125, %v601_v40 }
 0x2b5   : > { %v610_v42 = vsub.f32 %v593_v33, %v608_v39 }
 0x2b6   : > { %v609_v43 = vsub.f32 %v588_v35, %v607_v41 }
 0x2b7   : > { %v612_v44 = vmul.f32 %v610_v42, %v610_v42 }
 0x2b8   : > { %v611_v45 = vmul.f32 %v609_v43, %v609_v43 }
 0x2b9   : > { %v616_v46 = vsel %vm602_vm3, %v612_v44, 0.0 }
 0x2ba   : > { %617 = vadd.xlane.f32.xlu1 %v616_v46  ;;  %v613_v47 = vsel %vm598_vm4, %v611_v45, 0.0 }
 0x2bb   : > { %614 = vadd.xlane.f32.xlu0 %v613_v47 }
 0x347   : > { %v618_v57 = vpop.xlane.xlu1 %617 }
 0x348   : > { %v620_v58 = vmul.f32 0.03125, %v618_v57  ;;  %v615_v59 = vpop.xlane.xlu0 %614 }
 0x349   : > { %v619_v60 = vmul.f32 0.03125, %v615_v59 }
 0x34a   : > { %v622_v61 = vadd.f32 1e-05, %v620_v58 }
 0x34b   : > { %v621_v62 = vadd.f32 1e-05, %v619_v60 }
 0x34c   : > { %1023 = vrsqrt.f32 %v622_v61 }
 0x34d   : > { %1025 = vrsqrt.f32 %v621_v62 }
 0x356   : > { %v1024_v63 = vpop.eup %1023 }
 0x357   : > { %v1026_v1 = vpop.eup %1025  ;;  %v626_v2 = vmul.f32 %v1024_v63, %v610_v42 }
 0x358   : > { %v625_v3 = vmul.f32 %v1026_v1, %v609_v43 }
 0x359   : > { %v634_v5 = vmul.f32 %v940_v0, %v626_v2 }
 0x35a   : > { %v633_v6 = vmul.f32 %v940_v0, %v625_v3 }
 0x35b   : > { %v642_v8 = vadd.f32 %v941_v4, %v634_v5 }
 0x35c   : > { %v641_v7 = vadd.f32 %v941_v4, %v633_v6 }
 0x35e   : > { %981 = vmatprep.mubr.msk.f32.mxu1 %vm598_vm4, %v641_v7 }
 0x35f   : > { %982 = vmatmul.mubr.msk.f32.vlgmr.msra.gmra.mrb[0].mxu1 %vm598_vm4, %v642_v8 }
 0x432   : > { %v983_v13 = vpop.f32.mrb[0].mxu1 }
 0x433   : > { %v732_v15 = vadd.f32 %v983_v13, %v942_v12  ;;  %v726_v16 = vpop.f32.mrb[1].mxu1 }
 0x434   : > { %v727_v18 = vadd.f32 %v942_v12, %v726_v16 }
 0x435   : > { %v832_v19 = vadd.f32 %v830_v14, %v732_v15 }
 0x436   : > { %v831_v20 = vadd.f32 %v829_v17, %v727_v18  ;;  %992 = vmatprep.mubr.msk.f32.mxu0 %vm598_vm4, %v727_v18 }
 0x437   : > { %834 = vst.msk [vmem:[%s448_s20 + $0x8] sm:$0x1] %vm602_vm3, %v832_v19  ;;  %993 = vmatmul.mubr.msk.f32.vlgmr.msra.gmra.mrb[2].mxu0 %vm598_vm4, %v732_v15 }
 0x438   : > { %833 = vst.msk [vmem:[%s448_s20] sm:$0xff] %vm598_vm4, %v831_v20 }
 0x50a   : > { %v994_v22 = vpop.f32.mrb[2].mxu0 }
 0x50b   : > { %v824_v23 = vadd.f32 %v994_v22, %v945_v21  ;;  %v818_v24 = vpop.f32.mrb[3].mxu0 }
 0x50c   : > { %v819_v25 = vadd.f32 %v945_v21, %v818_v24 }
 0x50d   : > { %828 = vst.msk [vmem:[%s453_s26 + $0x8] sm:$0x1] %vm602_vm3, %v824_v23 }
 0x50e   : > { %827 = vst.msk [vmem:[%s453_s26] sm:$0xff] %vm598_vm4, %v819_v25 }
 0x50f PF: > { %s24_s25 = sadd.s32 1, %s1033_s25  }
 0x510   : > { %p21_p4 = scmp.ge.s32.totalorder %s24_s25, 4  }
 0x512   :  { %23 = sbr.rel (!%p21_p4) target bundleno = 1 (0x1), region = 110 }

// kernel: reverse
= control target key start
LH: loop header
LB: loop body
LE: loop exit
PB: predicated region body
PF: predicated region fallthrough
CT: control target
= control target key end

     0   :  { %v2_v0 = vlaneseq  ;;  %s105_s0 = inlined_call_operand.vmem [shape: f32[2,9], index: 0, kind: input, shape index: {}]   ;;  %s106_s1 = inlined_call_operand.vmem [shape: f32[2,9], index: 1, kind: output, shape index: {}]  }
   0x2   :  { %v3_v1 = vsub.s32 8, %v2_v0 }
   0x4   :  { %4 = vset.pattern.permute.xlu0 %v3_v1 }
   0x5   :  { %v20_v2 = vld [vmem:[%s105_s0] sm:$0x3] }
   0x6   :  { %21 = vst [vmem:[#allocation1] sm:$0x3] %v20_v2 }
   0xd   :  { %v38_v3 = vld [vmem:[#allocation1] sm:$0x3] }
   0xe   :  { %39 = vst [vmem:[#allocation0] sm:$0x3] %v38_v3 }
  0x15   :  { %v40_v4 = vld [vmem:[#allocation0] sm:$0xff] }
  0x16   :  { %41 = vperm.xlu0 %4, %v40_v4  }
  0x95   :  { %v42_v5 = vpop.permute.xlu0 %41 }
  0x96   :  { %43 = vst [vmem:[#allocation2] sm:$0xff] %v42_v5 }
  0x9d   :  { %v47_v6 = vld [vmem:[#allocation2] sm:$0x3] }
  0x9e   :  { %49 = vst [vmem:[#allocation3] sm:$0x3] %v47_v6 }
  0xa5   :  { %v65_v7 = vld [vmem:[#allocation3] sm:$0x3] }
  0xa6   :  { %66 = vst [vmem:[%s106_s1] sm:$0x3] %v65_v7 }

// kernel: t_mamba_forward.8
= control target key start
LH: loop header
LB: loop body
LE: loop exit
PB: predicated region body
PF: predicated region fallthrough
CT: control target
= control target key end

     0   :  { %s2427_s13 = smov 0   ;;  %s2429_s14 = smov 0   ;;  %s2820_s0 = inlined_call_operand.vmem [shape: f32[2,2,2,9,32], index: 0, kind: input, shape index: {}]   ;;  %s2821_s1 = inlined_call_operand.vmem [shape: f32[2,32,32], index: 1, kind: input, shape index: {}]   ;;  %s2822_s2 = inlined_call_operand.vmem [shape: f32[2,32,32], index: 2, kind: input, shape index: {}]   ;;  %s2823_s3 = inlined_call_operand.vmem [shape: f32[2,1,32], index: 3, kind: input, shape index: {}]   ;;  %s2824_s4 = inlined_call_operand.vmem [shape: f32[2,32,16], index: 4, kind: input, shape index: {}]   ;;  %s2825_s5 = inlined_call_operand.vmem [shape: f32[2,32,16], index: 5, kind: input, shape index: {}]   ;;  %s2826_s6 = inlined_call_operand.vmem [shape: f32[2,16,32], index: 6, kind: input, shape index: {}]   ;;  %s2827_s7 = inlined_call_operand.vmem [shape: f32[2,1,32], index: 7, kind: input, shape index: {}]   ;;  %s2828_s8 = inlined_call_operand.vmem [shape: f32[2,2,9,32], index: 8, kind: input, shape index: {}]   ;;  %s2829_s9 = inlined_call_operand.vmem [shape: f32[2,9,32], index: 9, kind: input, shape index: {}]   ;;  %s2830_s10 = inlined_call_operand.vmem [shape: f32[2,2,9,32], index: 10, kind: output, shape index: {}]  }
   0x1   :  { %2836 = sst [smem:[#allocation14_spill]] %s2820_s0  ;;  %s2431_s15 = smov 0  }
   0x2   :  { %2837 = sst [smem:[#allocation15_spill]] %s2821_s1  ;;  %s2433_s16 = smov 0  }
   0x3   :  { %2838 = sst [smem:[#allocation16_spill]] %s2822_s2  ;;  %s2435_s17 = smov 0  }
   0x4   :  { %2839 = sst [smem:[#allocation17_spill]] %s2824_s4  ;;  %s2437_s18 = smov 0  }
   0x5   :  { %2840 = sst [smem:[#allocation18_spill]] %s2825_s5  ;;  %s2439_s19 = smov 0  }
   0x6   :  { %2841 = sst [smem:[#allocation19_spill]] %s2828_s8 }
   0x7   :  { %2842 = sst [smem:[#allocation20_spill]] %s2830_s10 }
   0x8 LB: > { %2843 = sst [smem:[#allocation6_spill]] %s2344_s13  ;;  %s32_s20 = sadd.s32 1, %s2356_s16  ;;  %s2368_s19 = sphi %s2439_s19, %s20_s19   ;;  %s2364_s18 = sphi %s2437_s18, %s2867_s18   ;;  %s2360_s17 = sphi %s2435_s17, %s2866_s17   ;;  %s2356_s16 = sphi %s2433_s16, %s2865_s16   ;;  %s2352_s15 = sphi %s2431_s15, %s2864_s15   ;;  %s2348_s14 = sphi %s2429_s14, %s2863_s14   ;;  %s2344_s13 = sphi %s2427_s13, %s2862_s13  }
   0x9   : > { %2844 = sst [smem:[#allocation7_spill]] %s2356_s16  ;;  %p33_p0 = scmp.ge.s32.totalorder %s32_s20, 2 }
   0xa   : > { %2845 = sst [smem:[#allocation8_spill]] %s2360_s17  ;;  %s35_s21 = sadd.s32 1, %s2360_s17 }
   0xb   : > { %2846 = sst [smem:[#allocation9_spill]] %s2364_s18  ;;  %p2057_p1 = scmp.ge.s32.totalorder %s2368_s19, 1 }
   0xc   : > { %2847 = sst [smem:[#allocation10_spill]] %s2368_s19  ;;  %p437_p2 = scmp.lt.s32.totalorder %s2368_s19, 9 }
   0xd   : > { %s2869_s20 = smov (%p33_p0, %s32_s20), 0  ;;  %s2871_s21 = smov (!%p33_p0, %s35_s21), %s2360_s17 }
   0xe   : > { %2848 = sst [smem:[#allocation11_spill]] %s2869_s20  ;;  %p438_p3 = pnand %p2057_p1, %p437_p2 }
   0xf   : > { %p37_p4 = scmp.ge.s32.totalorder %s2871_s21, 2  ;;  %s39_s22 = sadd.s32 1, %s2364_s18 }
  0x10   : > { %441 = sbr.rel (%p438_p3) target bundleno = 717 (0x2cd), region = 60  ;;  %p532_p6 = scmp.lt.s32.totalorder (!%p438_p3), %s2352_s15, 1 }
  0x11   : > { %s2873_s21 = smov (%p37_p4, %s2871_s21), 0  ;;  %s2875_s22 = smov (!%p37_p4, %s39_s22), %s2364_s18 }
  0x12   : > { %2849 = sst [smem:[#allocation12_spill]] %s2873_s21  ;;  %p41_p5 = scmp.ge.s32.totalorder %s2875_s22, 2 }
  0x13   : > { %p534_p7 = scmp.lt.s32.totalorder (!%p438_p3), %s2344_s13, 1  ;;  %p536_p8 = scmp.lt.s32.totalorder (!%p438_p3), %s2348_s14, 1 }
  0x14   : > { %s2877_s22 = smov (%p41_p5, %s2875_s22), 0  ;;  %s2851_s1 = sld [smem:[#allocation15_spill]] (!%p438_p3) }
  0x15   : > { %2850 = sst [smem:[#allocation13_spill]] %s2877_s22  ;;  %s2852_s2 = sld [smem:[#allocation16_spill]] (!%p438_p3) }
  0x16   : > { %s2853_s0 = sld [smem:[#allocation14_spill]] (!%p438_p3)  ;;  %s2854_s4 = sld [smem:[#allocation17_spill]] (!%p438_p3) }
  0x17   : > { %s2879_s15 = smov (!%p532_p6, %s2352_s15), 1  ;;  %s2881_s14 = smov (!%p536_p8, %s2348_s14), 1 }
  0x18   : > { %s535_s23 = scalar_select %p534_p7, %s2344_s13, 1 }
  0x19   : > { %s2060_s25 = sshll.u32 %s2879_s15, 3  ;;  %s2058_s26 = sshll.u32 %s2881_s14, 1 }
  0x1a   : > { %s2059_s24 = sshll.u32 %s535_s23, 2  ;;  %s2094_s27 = sshll.u32 %s2879_s15, 5 }
  0x1b   : > { %s540_s28 = sadd.s32 %s2059_s24, %s2058_s26  ;;  %s549_s11 = scalar_lea.vmem %s2851_s1, %s2094_s27 }
  0x1c   : > { %s542_s12 = sadd.s32 %s2060_s25, %s540_s28  ;;  %s2483_s20 = scalar_lea.vmem %s2852_s2, %s2094_s27 }
  0x1d   : > { %s2061_s18 = sshll.u32 %s542_s12, 3  ;;  %s2495_s29 = scalar_lea.vmem %s2854_s4, %s2094_s27 }
  0x1e   : > { %s544_s10 = scalar_lea.vmem %s2853_s0, %s2061_s18  ;;  %s2855_s5 = sld [smem:[#allocation18_spill]] }
  0x1f   : > { %s2098_s22 = sshll.u32 %s2879_s15, 4  ;;  %s575_s13 = scalar_lea.vmem %s2827_s7, %s2879_s15 }
  0x20   : > { %s2506_s16 = scalar_lea.vmem %s2826_s6, %s2098_s22  ;;  %s2073_s18 = sshll.u32 %s2879_s15, 2 }
  0x21   : > { %s2099_s19 = sshll.u32 %s2881_s14, 4  ;;  %s582_s8 = sadd.s32 %s2073_s18, %s2058_s26 }
  0x22   : > { %s2516_s1 = scalar_lea.vmem %s2829_s9, %s2099_s19  ;;  %s2856_s2 = sld [smem:[#allocation19_spill]] }
  0x23   : > { %s2857_s12 = sld [smem:[#allocation20_spill]]  ;;  %s2858_s23 = sld [smem:[#allocation6_spill]] }
  0x24   : > { %s2500_s21 = scalar_lea.vmem %s2855_s5, %s2094_s27  ;;  %s2074_s27 = sshll.u32 %s582_s8, 3 }
  0x28   : > { %s2521_s4 = scalar_lea.vmem %s2856_s2, %s2074_s27 }
  0x29   : > { %s2526_s5 = scalar_lea.vmem %s2857_s12, %s2074_s27  ;;  %p2080_p9 = scmp.ne.s32.totalorder %s2858_s23, 0 }
  0x2a   : > { %vm603_vm0 = vcmask (!%p2080_p9), 261120   ;;  %vm605_vm1 = vcmask (!%p2080_p9), 253952   ;;  %v2370_v0 = vmov (!%p2080_p9), 0.0  }
  0x2b   : > { %602 = sbr.rel (%p2080_p9) target bundleno = 50 (0x32), region = 64  ;;  %604 = vst.msk [vmem:[#allocation2] sm:$0xff] (!%p2080_p9), %vm603_vm0, %v2370_v0 }
  0x2c   : > { %606 = vst.msk [vmem:[#allocation2 + $0x8] sm:$0x1] (!%p2080_p9), %vm605_vm1, %v2370_v0 }
  0x32 PF: > { %v627_v1 = vld [vmem:[%s549_s11] sm:$0xff]  ;;  %v628_v2 = vld [vmem:[%s549_s11 + $0x8] sm:$0xff]  ;;  %v629_v3 = vld [vmem:[%s549_s11 + $0x10] sm:$0xff]  ;;  %vm631_vm2 = vcmask 261120   ;;  %v989_v42 = vlaneseq  ;;  %vm1790_vm3 = vcmask 1041409   ;;  %vm1793_vm4 = vcmask 1042434  }
  0x33   : > { %v2168_v4 = vpack.c.bf16 %v628_v2, %v627_v1  ;;  %v630_v5 = vld [vmem:[%s549_s11 + $0x18] sm:$0xff]  ;;  %v607_v6 = vld [vmem:[%s544_s10] sm:$0xff]  ;;  %v608_v7 = vld [vmem:[%s544_s10 + $0x8] sm:$0x1]  ;;  %s2859_s10 = scalar_lea.vmem %s2823_s3, %s2879_s15  ;;  %vm1796_vm5 = vcmask 1043459   ;;  %vm1799_vm6 = vcmask 1044484  }
  0x34   : > { %v2172_v8 = vpack.c.bf16 %v630_v5, %v629_v3  ;;  %v611_v9 = vand.u32 2147483647, %v607_v6  ;;  %v825_v10 = vld [vmem:[%s2495_s29] sm:$0xff]  ;;  %v826_v11 = vld [vmem:[%s2495_s29 + $0x8] sm:$0xff]  ;;  %v612_v12 = vand.u32 2147483647, %v608_v7 }
  0x35   : > { %2169 = vmatprep.subr.bf16.mxu0 %v2168_v4  ;;  %v713_v13 = vld [vmem:[%s2483_s20] sm:$0xff]  ;;  %v714_v15 = vld [vmem:[%s2483_s20 + $0x8] sm:$0xff]  ;;  %v715_v16 = vld [vmem:[%s2483_s20 + $0x10] sm:$0xff]  ;;  %v2184_v19 = vpack.c.bf16 %v826_v11, %v825_v10  ;;  %v609_v28 = vmax.f32 %v607_v6, 0.0  ;;  %v610_v30 = vmax.f32 %v608_v7, 0.0  ;;  %v2553_v48 = vshrl.u32 %v989_v42, 7 }
  0x36   : > { %2171 = vmatpush3.bf16.msra.mxu0 %v2168_v4  ;;  %v613_v14 = vsub.f32 0.0, %v611_v9  ;;  %v716_v17 = vld [vmem:[%s2483_s20 + $0x18] sm:$0xff]  ;;  %v614_v18 = vsub.f32 0.0, %v612_v12  ;;  %v2176_v20 = vpack.c.bf16 %v714_v15, %v713_v13  ;;  %v827_v33 = vld [vmem:[%s2495_s29 + $0x10] sm:$0xff]  ;;  %v904_v39 = vld [vmem:[%s2500_s21] sm:$0xff]  ;;  %vm1802_vm7 = vcmask 1045509  }
  0x37   : > { %2173 = vmatprep.subr.bf16.mxu0 %v2172_v8  ;;  %v2180_v21 = vpack.c.bf16 %v716_v17, %v715_v16  ;;  %v828_v34 = vld [vmem:[%s2495_s29 + $0x18] sm:$0xff]  ;;  %v905_v40 = vld [vmem:[%s2500_s21 + $0x8] sm:$0xff]  ;;  %v906_v43 = vld [vmem:[%s2500_s21 + $0x10] sm:$0xff]  ;;  %v2560_v49 = vsub.s32 0, %v2553_v48  ;;  %v1180_v50 = vsub.s32 1, %v2553_v48  ;;  %v1191_v56 = vsub.s32 2, %v2553_v48 }
  0x38   : > { %v615_v22 = vmul.f32 1.442695, %v613_v14  ;;  %v617_v23 = vmul.f32 1.442695, %v614_v18  ;;  %2177 = vmatprep.subr.bf16.mxu1 %v2176_v20  ;;  %v2188_v38 = vpack.c.bf16 %v828_v34, %v827_v33  ;;  %v2192_v41 = vpack.c.bf16 %v905_v40, %v904_v39  ;;  %v907_v44 = vld [vmem:[%s2500_s21 + $0x18] sm:$0xff]  ;;  %s2860_s15 = sld [smem:[#allocation6_spill]] }
  0x39   : > { %2179 = vmatpush3.bf16.msra.mxu1 %v2176_v20  ;;  %v2196_v47 = vpack.c.bf16 %v907_v44, %v906_v43  ;;  %v1202_v58 = vsub.s32 3, %v2553_v48  ;;  %v1213_v60 = vsub.s32 4, %v2553_v48  ;;  %v1224_v62 = vsub.s32 5, %v2553_v48  ;;  %v2083_v4 = vld [vmem:[%s2859_s10] ss:$0 sm:$0xff] }
  0x3a   : > { %2175 = vmatpush3.bf16.msra.mxu0 %v2172_v8  ;;  %2258 = vpow2.f32 %v615_v22  ;;  %2181 = vmatprep.subr.bf16.mxu1 %v2180_v21  ;;  %v1235_v0 = vsub.s32 6, %v2553_v48  ;;  %v1246_v2 = vsub.s32 7, %v2553_v48  ;;  %vm1805_vm8 = vcmask 1046534  }
  0x3b   : > { %2260 = vpow2.f32 %v617_v23  ;;  %2185 = vmatprep.subr.bf16.mxu0 %v2184_v19  ;;  %vm1808_vm9 = vcmask 1047559   ;;  %vm1815_vm10 = vcmask 253952  }
  0x3d   : > { %2183 = vmatpush3.bf16.msra.mxu1 %v2180_v21 }
  0x3e   : > { %2193 = vmatprep.subr.bf16.mxu1 %v2192_v41  ;;  %p2091_p10 = scmp.ne.s32.totalorder %s2860_s15, 1 }
  0x44   : > { %v2259_v24 = vpop.eup %2258 }
  0x45   : > { %v2261_v25 = vpop.eup %2260  ;;  %v619_v26 = vadd.f32 1.0, %v2259_v24 }
  0x46   : > { %v620_v27 = vadd.f32 1.0, %v2261_v25 }
  0x47   : > { %2262 = vlog2.f32 %v619_v26 }
  0x48   : > { %2264 = vlog2.f32 %v620_v27  ;;  %v2371_v27 = vmov 1966171168  }
  0x51   : > { %v2263_v29 = vpop.eup %2262 }
  0x52   : > { %v2265_v31 = vpop.eup %2264  ;;  %v622_v32 = vmul.f32 0.6931472, %v2263_v29 }
  0x53   : > { %v624_v35 = vmul.f32 0.6931472, %v2265_v31 }
  0x54   : > { %v2537_v36 = vadd.f32 %v622_v32, %v609_v28  ;;  %v987_v28 = vunpack.c.l.s4 %v2371_v27 }
  0x55   : > { %v2539_v37 = vadd.f32 %v624_v35, %v610_v30 }
  0x56   : > { %2132 = vmatprep.mubr.msk.f32.mxu0 %vm631_vm2, %v2537_v36  ;;  %v988_v32 = vunpack.c.0.s8 %v987_v28 }
  0x57   : > { %2133 = vmatmul.mubr.msk.f32.vlgmr.msra.gmra.mrb[0].mxu0 %vm631_vm2, %v2539_v37 }
  0x58   : > { %2187 = vmatpush3.bf16.msra.mxu0 %v2184_v19  ;;  %2154 = vmatprep.mubr.msk.f32.mxu0 %vm631_vm2, %v2537_v36  ;;  %v2598_v42 = vsub.s32 %v988_v32, %v2553_v48 }
  0x59   : > { %2189 = vmatprep.subr.bf16.mxu0 %v2188_v38 }
  0x5c   : > { %2191 = vmatpush3.bf16.msra.mxu0 %v2188_v38 }
  0x5f   : > { %2155 = vmatmul.mubr.msk.f32.vlgmr.msra.gmra.mrb[2].mxu0 %vm631_vm2, %v2539_v37 }
 0x12a   : > { %v2134_v45 = vpop.f32.mrb[0].mxu0 }
 0x12b   : > { %v704_v46 = vpop.f32.mrb[1].mxu0 }
 0x12c   : > { %2143 = vmatprep.mubr.msk.f32.mxu1 %vm631_vm2, %v704_v46 }
 0x12d   : > { %2144 = vmatmul.mubr.msk.f32.vlgmr.msra.gmra.mrb[0].mxu1 %vm631_vm2, %v2134_v45 }
 0x12e   : > { %2195 = vmatpush3.bf16.msra.mxu1 %v2192_v41  ;;  %2165 = vmatprep.mubr.msk.f32.mxu1 %vm631_vm2, %v2537_v36 }
 0x12f   : > { %2197 = vmatprep.subr.bf16.mxu1 %v2196_v47 }
 0x132   : > { %2199 = vmatpush3.bf16.msra.mxu1 %v2196_v47  ;;  %v2156_v51 = vpop.f32.mrb[2].mxu0 }
 0x133   : > { %v1258_v52 = vrot.slane %v2156_v51, %v2560_v49  ;;  %v895_v53 = vpop.f32.mrb[3].mxu0 }
 0x134   : > { %v1181_v54 = vrot.slane %v895_v53, %v1180_v50  ;;  %v1170_v55 = vrot.slane %v895_v53, %v2560_v49  ;;  %v1192_v57 = vrot.slane %v895_v53, %v1191_v56  ;;  %v1203_v59 = vrot.slane %v895_v53, %v1202_v58 }
 0x135   : > { %2166 = vmatmul.mubr.msk.f32.vlgmr.msra.gmra.mrb[2].mxu1 %vm631_vm2, %v2539_v37  ;;  %1264 = vbcast.lane.b32.xlu1 %v1258_v52, 264  ;;  %v1214_v61 = vrot.slane %v895_v53, %v1213_v60  ;;  %v1225_v63 = vrot.slane %v895_v53, %v1224_v62  ;;  %v1236_v1 = vrot.slane %v895_v53, %v1235_v0 }
 0x136   : > { %1260 = vbcast.lane.b32.xlu0 %v1258_v52, 256  ;;  %v1247_v3 = vrot.slane %v895_v53, %v1246_v2 }
 0x139   : > { %1183 = vbcast.lane.b32.xlu1 %v1181_v54, 256 }
 0x13a   : > { %1172 = vbcast.lane.b32.xlu0 %v1170_v55, 256 }
 0x13d   : > { %1187 = vbcast.lane.b32.xlu1 %v1181_v54, 264 }
 0x13e   : > { %1176 = vbcast.lane.b32.xlu0 %v1170_v55, 264 }
 0x141   : > { %1198 = vbcast.lane.b32.xlu1 %v1192_v57, 264 }
 0x142   : > { %1194 = vbcast.lane.b32.xlu0 %v1192_v57, 256 }
 0x145   : > { %1209 = vbcast.lane.b32.xlu1 %v1203_v59, 264 }
 0x146   : > { %1205 = vbcast.lane.b32.xlu0 %v1203_v59, 256  ;;  %v1048_v59 = vld [vmem:[%s2506_s16] sm:$0xff] }
 0x149   : > { %1220 = vbcast.lane.b32.xlu1 %v1214_v61, 264 }
 0x14a   : > { %1216 = vbcast.lane.b32.xlu0 %v1214_v61, 256 }
 0x14d   : > { %1231 = vbcast.lane.b32.xlu1 %v1225_v63, 264 }
 0x14e   : > { %1227 = vbcast.lane.b32.xlu0 %v1225_v63, 256 }
 0x151   : > { %1242 = vbcast.lane.b32.xlu1 %v1236_v1, 264 }
 0x152   : > { %1238 = vbcast.lane.b32.xlu0 %v1236_v1, 256 }
 0x155   : > { %1253 = vbcast.lane.b32.xlu1 %v1247_v3, 264 }
 0x156   : > { %1249 = vbcast.lane.b32.xlu0 %v1247_v3, 256 }
 0x1a7   : > { %v2585_v23 = vpop.permute.xlu1 %1264 }
 0x1a8   : > { %v2587_v24 = vpop.permute.xlu0 %1260 }
 0x1ab   : > { %v2589_v29 = vpop.permute.xlu1 %1183 }
 0x1ac   : > { %v2591_v30 = vpop.permute.xlu0 %1172 }
 0x1af   : > { %v2593_v35 = vpop.permute.xlu1 %1187 }
 0x1b0   : > { %v2595_v38 = vpop.permute.xlu0 %1176 }
 0x1b3   : > { %v2605_v54 = vpop.permute.xlu1 %1198 }
 0x1b4   : > { %v2607_v55 = vpop.permute.xlu0 %1194 }
 0x200   : > { %v2145_v5 = vpop.f32.mrb[0].mxu1 }
 0x201   : > { %v802_v6 = vadd.f32 %v2145_v5, %v2083_v4  ;;  %v796_v7 = vpop.f32.mrb[1].mxu1 }
 0x202   : > { %v797_v8 = vadd.f32 %v2083_v4, %v796_v7 }
 0x203   : > { %v808_v9 = vand.u32 2147483647, %v802_v6  ;;  %v806_v40 = vmax.f32 %v802_v6, 0.0 }
 0x204   : > { %v807_v10 = vand.u32 2147483647, %v797_v8  ;;  %v805_v43 = vmax.f32 %v797_v8, 0.0 }
 0x205   : > { %v810_v11 = vsub.f32 0.0, %v808_v9 }
 0x206   : > { %v809_v12 = vsub.f32 0.0, %v807_v10 }
 0x207   : > { %v813_v13 = vmul.f32 1.442695, %v810_v11 }
 0x208   : > { %v811_v14 = vmul.f32 1.442695, %v809_v12  ;;  %v2582_v15 = vpop.f32.mrb[2].mxu1 }
 0x209   : > { %2266 = vpow2.f32 %v813_v13  ;;  %v974_v16 = vpop.f32.mrb[3].mxu1  ;;  %v1617_v48 = vrot.slane %v2582_v15, %v2560_v49  ;;  %v2634_v15 = vpop.permute.xlu0 %1205 }
 0x20a   : > { %2268 = vpow2.f32 %v811_v14  ;;  %v1540_v17 = vrot.slane %v974_v16, %v1180_v50  ;;  %v1551_v18 = vrot.slane %v974_v16, %v1191_v56  ;;  %v1529_v19 = vrot.slane %v974_v16, %v2560_v49  ;;  %v2632_v14 = vpop.permute.xlu1 %1209 }
 0x20b   : > { %v1562_v26 = vrot.slane %v974_v16, %v1202_v58  ;;  %v1573_v31 = vrot.slane %v974_v16, %v1213_v60  ;;  %v1584_v33 = vrot.slane %v974_v16, %v1224_v62  ;;  %v1595_v45 = vrot.slane %v974_v16, %v1235_v0  ;;  %v2615_v60 = vld [vmem:[%s2506_s16 + $0x8] sm:$0xff] }
 0x20c   : > { %1546 = vbcast.lane.b32.xlu1 %v1540_v17, 264  ;;  %1542 = vbcast.lane.b32.xlu0 %v1540_v17, 256  ;;  %v1606_v56 = vrot.slane %v974_v16, %v1246_v2 }
 0x210   : > { %1557 = vbcast.lane.b32.xlu1 %v1551_v18, 264  ;;  %1553 = vbcast.lane.b32.xlu0 %v1551_v18, 256 }
 0x213   : > { %v2267_v20 = vpop.eup %2266 }
 0x214   : > { %v2269_v21 = vpop.eup %2268  ;;  %v816_v22 = vadd.f32 1.0, %v2267_v20  ;;  %1535 = vbcast.lane.b32.xlu1 %v1529_v19, 264  ;;  %1531 = vbcast.lane.b32.xlu0 %v1529_v19, 256 }
 0x215   : > { %v815_v25 = vadd.f32 1.0, %v2269_v21 }
 0x216   : > { %2270 = vlog2.f32 %v816_v22 }
 0x217   : > { %2272 = vlog2.f32 %v815_v25 }
 0x218   : > { %1568 = vbcast.lane.b32.xlu1 %v1562_v26, 264  ;;  %1564 = vbcast.lane.b32.xlu0 %v1562_v26, 256 }
 0x21c   : > { %1579 = vbcast.lane.b32.xlu1 %v1573_v31, 264  ;;  %1575 = vbcast.lane.b32.xlu0 %v1573_v31, 256 }
 0x220   : > { %v2271_v34 = vpop.eup %2270  ;;  %1590 = vbcast.lane.b32.xlu1 %v1584_v33, 264  ;;  %1586 = vbcast.lane.b32.xlu0 %v1584_v33, 256 }
 0x221   : > { %v2273_v39 = vpop.eup %2272  ;;  %v820_v41 = vmul.f32 0.6931472, %v2271_v34 }
 0x222   : > { %v818_v44 = vmul.f32 0.6931472, %v2273_v39 }
 0x223   : > { %v822_v46 = vadd.f32 %v820_v41, %v806_v40 }
 0x224   : > { %v821_v47 = vadd.f32 %v818_v44, %v805_v43  ;;  %1601 = vbcast.lane.b32.xlu1 %v1595_v45, 264  ;;  %1597 = vbcast.lane.b32.xlu0 %v1595_v45, 256 }
 0x225   : > { %v824_v50 = vmul.f32 %v822_v46, %v2539_v37  ;;  %v1040_v51 = vrot.slane %v822_v46, %v2598_v42 }
 0x226   : > { %v985_v52 = vcombine.high %v821_v47, %v821_v47  ;;  %v992_v53 = vrot.slane %v821_v47, %v2598_v42  ;;  %v2621_v1 = vmul.f32 %v821_v47, %v2537_v36  ;;  %v2654_v47 = vpop.permute.xlu1 %1220 }
 0x227   : > { %v1047_v57 = vrot.slane %v1040_v51, %v2598_v42  ;;  %v1323_v58 = vrot.slane %v824_v50, %v2598_v42  ;;  %v2656_v50 = vpop.permute.xlu0 %1216 }
 0x228   : > { %v999_v61 = vrot.slane %v985_v52, %v2598_v42  ;;  %v1000_v62 = vcombine.high %v992_v53, %v992_v53  ;;  %v1008_v63 = vrot.slane %v992_v53, %v2598_v42  ;;  %1612 = vbcast.lane.b32.xlu1 %v1606_v56, 264  ;;  %1608 = vbcast.lane.b32.xlu0 %v1606_v56, 256 }
 0x229   : > { %v1085_v0 = vrot.slane %v1047_v57, %v2560_v49  ;;  %v1330_v2 = vrot.slane %v1323_v58, %v2598_v42  ;;  %v2639_v19 = vrot.slane %v2621_v1, %v2598_v42  ;;  %v1268_v41 = vcombine.high %v2621_v1, %v2621_v1 }
 0x22a   : > { %v1001_v3 = vcombine.high %v999_v61, %v999_v61  ;;  %v1015_v4 = vrot.slane %v999_v61, %v2598_v42  ;;  %v1022_v5 = vrot.slane %v1000_v62, %v2598_v42  ;;  %v1030_v6 = vcombine.high %v1008_v63, %v1008_v63 }
 0x22b   : > { %v1111_v7 = vmul.f32 %v1085_v0, %v1048_v59  ;;  %v1112_v8 = vmul.f32 %v1085_v0, %v2615_v60  ;;  %v1053_v9 = vrot.slane %v1008_v63, %v2560_v49  ;;  %v1366_v25 = vrot.slane %v1330_v2, %v2560_v49 }
 0x22c   : > { %v1029_v10 = vrot.slane %v1001_v3, %v2598_v42  ;;  %v1031_v11 = vcombine.high %v1015_v4, %v1015_v4  ;;  %v1032_v12 = vcombine.high %v1022_v5, %v1022_v5  ;;  %v1057_v13 = vrot.slane %v1022_v5, %v2560_v49  ;;  %1623 = vbcast.lane.b32.xlu1 %v1617_v48, 264 }
 0x22d   : > { %v1145_v16 = vmul.f32 1.442695, %v1111_v7  ;;  %v1147_v17 = vmul.f32 1.442695, %v1112_v8  ;;  %v1061_v18 = vrot.slane %v1030_v6, %v2560_v49  ;;  %1619 = vbcast.lane.b32.xlu0 %v1617_v48, 256  ;;  %v1069_v22 = vrot.slane %v1015_v4, %v2560_v49 }
 0x22e   : > { %v1033_v20 = vcombine.high %v1029_v10, %v1029_v10  ;;  %v1065_v21 = vrot.slane %v1032_v12, %v2560_v49  ;;  %v1073_v26 = vrot.slane %v1029_v10, %v2560_v49  ;;  %v1077_v27 = vrot.slane %v1031_v11, %v2560_v49 }
 0x22f   : > { %2274 = vpow2.f32 %v1145_v16  ;;  %v1095_v28 = vmul.f32 %v1053_v9, %v1048_v59  ;;  %v1096_v31 = vmul.f32 %v1053_v9, %v2615_v60  ;;  %v1097_v32 = vmul.f32 %v1057_v13, %v1048_v59  ;;  %v2663_v9 = vpop.permute.xlu1 %1231 }
 0x230   : > { %2276 = vpow2.f32 %v1147_v17  ;;  %v1098_v33 = vmul.f32 %v1057_v13, %v2615_v60  ;;  %v1081_v34 = vrot.slane %v1033_v20, %v2560_v49  ;;  %v1099_v39 = vmul.f32 %v1061_v18, %v1048_v59 }
 0x231   : > { %v1100_v40 = vmul.f32 %v1061_v18, %v2615_v60  ;;  %v1101_v43 = vmul.f32 %v1065_v21, %v1048_v59  ;;  %v1102_v44 = vmul.f32 %v1065_v21, %v2615_v60  ;;  %v1103_v45 = vmul.f32 %v1069_v22, %v1048_v59 }
 0x232   : > { %v1104_v46 = vmul.f32 %v1069_v22, %v2615_v60  ;;  %v1105_v51 = vmul.f32 %v1073_v26, %v1048_v59  ;;  %v1106_v52 = vmul.f32 %v1073_v26, %v2615_v60  ;;  %v1107_v53 = vmul.f32 %v1077_v27, %v1048_v59 }
 0x233   : > { %v1113_v56 = vmul.f32 1.442695, %v1095_v28  ;;  %v1115_v57 = vmul.f32 1.442695, %v1096_v31  ;;  %v1117_v58 = vmul.f32 1.442695, %v1097_v32  ;;  %v1393_v62 = vmul.f32 %v1366_v25, %v2585_v23 }
 0x234   : > { %v1119_v61 = vmul.f32 1.442695, %v1098_v33  ;;  %v1108_v63 = vmul.f32 %v1077_v27, %v2615_v60  ;;  %v1109_v0 = vmul.f32 %v1081_v34, %v1048_v59  ;;  %v1121_v1 = vmul.f32 1.442695, %v1099_v39  ;;  %v2665_v59 = vpop.permute.xlu0 %1227 }
 0x235   : > { %2278 = vpow2.f32 %v1113_v56  ;;  %v1110_v48 = vmul.f32 %v1081_v34, %v2615_v60  ;;  %v1123_v2 = vmul.f32 1.442695, %v1100_v40  ;;  %v1125_v3 = vmul.f32 1.442695, %v1101_v43  ;;  %1411 = vst.msk [vmem:[#allocation4 + $0x88] sm:$0xff] %vm631_vm2, %v1393_v62  ;;  %v1243_v34 = vpop.permute.xlu1 %1242 }
 0x236   : > { %2280 = vpow2.f32 %v1115_v57  ;;  %v1127_v4 = vmul.f32 1.442695, %v1102_v44  ;;  %v1129_v5 = vmul.f32 1.442695, %v1103_v45  ;;  %v1131_v6 = vmul.f32 1.442695, %v1104_v46 }
 0x237   : > { %2282 = vpow2.f32 %v1117_v58  ;;  %v1133_v7 = vmul.f32 1.442695, %v1105_v51  ;;  %v1135_v8 = vmul.f32 1.442695, %v1106_v52  ;;  %v1137_v23 = vmul.f32 1.442695, %v1107_v53 }
 0x238   : > { %2284 = vpow2.f32 %v1119_v61  ;;  %v1392_v60 = vmul.f32 %v1366_v25, %v2587_v24  ;;  %v1283_v11 = vcombine.high %v2639_v19, %v2639_v19  ;;  %v1291_v12 = vrot.slane %v2639_v19, %v2598_v42  ;;  %v1239_v39 = vpop.permute.xlu0 %1238 }
 0x239   : > { %v2275_v10 = vpop.eup %2274  ;;  %2286 = vpow2.f32 %v1121_v1  ;;  %v1139_v16 = vmul.f32 1.442695, %v1108_v63  ;;  %v1141_v17 = vmul.f32 1.442695, %v1109_v0  ;;  %v1282_v18 = vrot.slane %v1268_v41, %v2598_v42 }
 0x23a   : > { %v2277_v13 = vpop.eup %2276  ;;  %1165 = vst.msk [vmem:[#allocation3 + $0x80] sm:$0xff] %vm631_vm2, %v2275_v10  ;;  %2288 = vpow2.f32 %v1123_v2  ;;  %1410 = vst.msk [vmem:[#allocation4 + $0x80] sm:$0xff] %vm631_vm2, %v1392_v60  ;;  %v1305_v24 = vrot.slane %v1283_v11, %v2598_v42  ;;  %v1334_v20 = vrot.slane %v1291_v12, %v2560_v49  ;;  %v1313_v21 = vcombine.high %v1291_v12, %v1291_v12 }
 0x23b   : > { %1166 = vst.msk [vmem:[#allocation3 + $0x88] sm:$0xff] %vm631_vm2, %v2277_v13  ;;  %2290 = vpow2.f32 %v1125_v3  ;;  %v1143_v19 = vmul.f32 1.442695, %v1110_v48  ;;  %v1298_v22 = vrot.slane %v1282_v18, %v2598_v42  ;;  %v1284_v25 = vcombine.high %v1282_v18, %v1282_v18 }
 0x23c   : > { %2292 = vpow2.f32 %v1127_v4  ;;  %v1338_v26 = vrot.slane %v1305_v24, %v2560_v49  ;;  %v1376_v27 = vmul.f32 %v1334_v20, %v2591_v30  ;;  %v1377_v28 = vmul.f32 %v1334_v20, %v2595_v38  ;;  %v1250_v61 = vpop.permute.xlu0 %1249 }
 0x23d   : > { %2294 = vpow2.f32 %v1129_v5  ;;  %v1342_v31 = vrot.slane %v1313_v21, %v2560_v49  ;;  %v1315_v32 = vcombine.high %v1305_v24, %v1305_v24  ;;  %v1350_v33 = vrot.slane %v1298_v22, %v2560_v49 }
 0x23e   : > { %2296 = vpow2.f32 %v1131_v6  ;;  %v1378_v41 = vmul.f32 %v1338_v26, %v2589_v29  ;;  %1394 = vst.msk [vmem:[#allocation4] sm:$0xff] %vm631_vm2, %v1376_v27  ;;  %v1379_v43 = vmul.f32 %v1338_v26, %v2593_v35  ;;  %1395 = vst.msk [vmem:[#allocation4 + $0x8] sm:$0xff] %vm631_vm2, %v1377_v28  ;;  %v1312_v30 = vrot.slane %v1284_v25, %v2598_v42 }
 0x23f   : > { %v2279_v40 = vpop.eup %2278  ;;  %2298 = vpow2.f32 %v1133_v7  ;;  %v1381_v44 = vmul.f32 %v1342_v31, %v2605_v54  ;;  %v1380_v45 = vmul.f32 %v1342_v31, %v2607_v55  ;;  %v1346_v46 = vrot.slane %v1315_v32, %v2560_v49 }
 0x240   : > { %v2281_v38 = vpop.eup %2280  ;;  %2300 = vpow2.f32 %v1135_v8  ;;  %1149 = vst.msk [vmem:[#allocation3] sm:$0xff] %vm631_vm2, %v2279_v40  ;;  %1396 = vst.msk [vmem:[#allocation4 + $0x10] sm:$0xff] %vm631_vm2, %v1378_v41  ;;  %v1385_v29 = vmul.f32 %v1350_v33, %v2654_v47  ;;  %v1384_v35 = vmul.f32 %v1350_v33, %v2656_v50  ;;  %v1354_v42 = vrot.slane %v1312_v30, %v2560_v49 }
 0x241   : > { %v2283_v51 = vpop.eup %2282  ;;  %2302 = vpow2.f32 %v1137_v23  ;;  %1150 = vst.msk [vmem:[#allocation3 + $0x8] sm:$0xff] %vm631_vm2, %v2281_v38  ;;  %1397 = vst.msk [vmem:[#allocation4 + $0x18] sm:$0xff] %vm631_vm2, %v1379_v43  ;;  %v1383_v54 = vmul.f32 %v1346_v46, %v2632_v14  ;;  %v1382_v55 = vmul.f32 %v1346_v46, %v2634_v15  ;;  %v1314_v53 = vcombine.high %v1298_v22, %v1298_v22  ;;  %v1254_v15 = vpop.permute.xlu1 %1253 }
 0x242   : > { %v2285_v52 = vpop.eup %2284  ;;  %2304 = vpow2.f32 %v1139_v16  ;;  %1151 = vst.msk [vmem:[#allocation3 + $0x10] sm:$0xff] %vm631_vm2, %v2283_v51  ;;  %1399 = vst.msk [vmem:[#allocation4 + $0x28] sm:$0xff] %vm631_vm2, %v1381_v44  ;;  %v1387_v47 = vmul.f32 %v1354_v42, %v2663_v9  ;;  %v1386_v50 = vmul.f32 %v1354_v42, %v2665_v59  ;;  %v1316_v57 = vcombine.high %v1312_v30, %v1312_v30 }
 0x243   : > { %1398 = vst.msk [vmem:[#allocation4 + $0x20] sm:$0xff] %vm631_vm2, %v1380_v45  ;;  %v2287_v56 = vpop.eup %2286  ;;  %2306 = vpow2.f32 %v1141_v17  ;;  %1152 = vst.msk [vmem:[#allocation3 + $0x18] sm:$0xff] %vm631_vm2, %v2285_v52  ;;  %v1358_v14 = vrot.slane %v1314_v53, %v2560_v49 }
 0x244   : > { %1403 = vst.msk [vmem:[#allocation4 + $0x48] sm:$0xff] %vm631_vm2, %v1385_v29  ;;  %1402 = vst.msk [vmem:[#allocation4 + $0x40] sm:$0xff] %vm631_vm2, %v1384_v35  ;;  %v2289_v58 = vpop.eup %2288  ;;  %2308 = vpow2.f32 %v1143_v19  ;;  %v1362_v63 = vrot.slane %v1316_v57, %v2560_v49 }
 0x245   : > { %1153 = vst.msk [vmem:[#allocation3 + $0x20] sm:$0xff] %vm631_vm2, %v2287_v56  ;;  %1401 = vst.msk [vmem:[#allocation4 + $0x38] sm:$0xff] %vm631_vm2, %v1383_v54  ;;  %v2291_v62 = vpop.eup %2290  ;;  %v1389_v1 = vmul.f32 %v1358_v14, %v1243_v34  ;;  %v1388_v48 = vmul.f32 %v1358_v14, %v1239_v39  ;;  %v1416_v23 = vld [vmem:[#allocation4] sm:$0xff]  ;;  %v1417_v60 = vld [vmem:[#allocation4 + $0x8] sm:$0xff] }
 0x246   : > { %1400 = vst.msk [vmem:[#allocation4 + $0x30] sm:$0xff] %vm631_vm2, %v1382_v55  ;;  %1154 = vst.msk [vmem:[#allocation3 + $0x28] sm:$0xff] %vm631_vm2, %v2289_v58  ;;  %v2293_v0 = vpop.eup %2292  ;;  %v1391_v4 = vmul.f32 %v1362_v63, %v1254_v15  ;;  %v1390_v5 = vmul.f32 %v1362_v63, %v1250_v61 }
 0x247   : > { %1405 = vst.msk [vmem:[#allocation4 + $0x58] sm:$0xff] %vm631_vm2, %v1387_v47  ;;  %1404 = vst.msk [vmem:[#allocation4 + $0x50] sm:$0xff] %vm631_vm2, %v1386_v50  ;;  %v2295_v2 = vpop.eup %2294  ;;  %v1412_v3 = vld [vmem:[#allocation3] sm:$0xff] }
 0x248   : > { %1155 = vst.msk [vmem:[#allocation3 + $0x30] sm:$0xff] %vm631_vm2, %v2291_v62  ;;  %1156 = vst.msk [vmem:[#allocation3 + $0x38] sm:$0xff] %vm631_vm2, %v2293_v0  ;;  %v2297_v6 = vpop.eup %2296  ;;  %v1414_v7 = vmul.f32 0.0, %v1412_v3  ;;  %v1413_v8 = vld [vmem:[#allocation3 + $0x8] sm:$0xff]  ;;  %v1428_v20 = vld [vmem:[#allocation4 + $0x10] sm:$0xff] }
 0x249   : > { %1157 = vst.msk [vmem:[#allocation3 + $0x40] sm:$0xff] %vm631_vm2, %v2295_v2  ;;  %1407 = vst.msk [vmem:[#allocation4 + $0x68] sm:$0xff] %vm631_vm2, %v1389_v1  ;;  %v2299_v49 = vpop.eup %2298  ;;  %v1415_v9 = vmul.f32 0.0, %v1413_v8  ;;  %v1423_v13 = vld [vmem:[#allocation3 + $0x10] sm:$0xff]  ;;  %v1429_v22 = vld [vmem:[#allocation4 + $0x18] sm:$0xff] }
 0x24a   : > { %1406 = vst.msk [vmem:[#allocation4 + $0x60] sm:$0xff] %vm631_vm2, %v1388_v48  ;;  %1158 = vst.msk [vmem:[#allocation3 + $0x48] sm:$0xff] %vm631_vm2, %v2297_v6  ;;  %v2301_v59 = vpop.eup %2300  ;;  %v1418_v10 = vadd.f32 %v1416_v23, %v1414_v7  ;;  %v1424_v17 = vld [vmem:[#allocation3 + $0x18] sm:$0xff]  ;;  %v1441_v32 = vld [vmem:[#allocation4 + $0x20] sm:$0xff] }
 0x24b   : > { %1409 = vst.msk [vmem:[#allocation4 + $0x78] sm:$0xff] %vm631_vm2, %v1391_v4  ;;  %1408 = vst.msk [vmem:[#allocation4 + $0x70] sm:$0xff] %vm631_vm2, %v1390_v5  ;;  %v2303_v11 = vpop.eup %2302  ;;  %v1419_v12 = vadd.f32 %v1417_v60, %v1415_v9  ;;  %v1442_v34 = vld [vmem:[#allocation4 + $0x28] sm:$0xff]  ;;  %v1467_v52 = vld [vmem:[#allocation4 + $0x40] sm:$0xff] }
 0x24c   : > { %1159 = vst.msk [vmem:[#allocation3 + $0x50] sm:$0xff] %vm631_vm2, %v2299_v49  ;;  %1160 = vst.msk [vmem:[#allocation3 + $0x58] sm:$0xff] %vm631_vm2, %v2301_v59  ;;  %v2305_v16 = vpop.eup %2304  ;;  %v1425_v18 = vmul.f32 %v1423_v13, %v1418_v10  ;;  %v1436_v27 = vld [vmem:[#allocation3 + $0x20] sm:$0xff]  ;;  %v1455_v45 = vld [vmem:[#allocation4 + $0x38] sm:$0xff] }
 0x24d   : > { %1161 = vst.msk [vmem:[#allocation3 + $0x60] sm:$0xff] %vm631_vm2, %v2303_v11  ;;  %1420 = vst.msk [vmem:[#allocation5] sm:$0xff] %vm631_vm2, %v1418_v10  ;;  %v2307_v24 = vpop.eup %2306  ;;  %v1426_v21 = vmul.f32 %v1424_v17, %v1419_v12  ;;  %v1437_v28 = vld [vmem:[#allocation3 + $0x28] sm:$0xff]  ;;  %v1454_v38 = vld [vmem:[#allocation4 + $0x30] sm:$0xff] }
 0x24e   : > { %1162 = vst.msk [vmem:[#allocation3 + $0x68] sm:$0xff] %vm631_vm2, %v2305_v16  ;;  %1421 = vst.msk [vmem:[#allocation5 + $0x8] sm:$0xff] %vm631_vm2, %v1419_v12  ;;  %v2309_v19 = vpop.eup %2308  ;;  %v1430_v25 = vadd.f32 %v1428_v20, %v1425_v18  ;;  %v1468_v55 = vld [vmem:[#allocation4 + $0x48] sm:$0xff]  ;;  %v1480_v58 = vld [vmem:[#allocation4 + $0x50] sm:$0xff] }
 0x24f   : > { %1163 = vst.msk [vmem:[#allocation3 + $0x70] sm:$0xff] %vm631_vm2, %v2307_v24  ;;  %1164 = vst.msk [vmem:[#allocation3 + $0x78] sm:$0xff] %vm631_vm2, %v2309_v19  ;;  %v1431_v26 = vadd.f32 %v1429_v22, %v1426_v21  ;;  %v1449_v41 = vld [vmem:[#allocation3 + $0x30] sm:$0xff]  ;;  %v1450_v43 = vld [vmem:[#allocation3 + $0x38] sm:$0xff] }
 0x250   : > { %1433 = vst.msk [vmem:[#allocation5 + $0x10] sm:$0xff] %vm631_vm2, %v1430_v25  ;;  %v1438_v31 = vmul.f32 %v1436_v27, %v1430_v25  ;;  %v1462_v29 = vld [vmem:[#allocation3 + $0x40] sm:$0xff]  ;;  %v1481_v15 = vld [vmem:[#allocation4 + $0x58] sm:$0xff]  ;;  %v1494_v3 = vld [vmem:[#allocation4 + $0x68] sm:$0xff] }
 0x251   : > { %1434 = vst.msk [vmem:[#allocation5 + $0x18] sm:$0xff] %vm631_vm2, %v1431_v26  ;;  %v1439_v33 = vmul.f32 %v1437_v28, %v1431_v26  ;;  %v1463_v35 = vld [vmem:[#allocation3 + $0x48] sm:$0xff]  ;;  %v1493_v48 = vld [vmem:[#allocation4 + $0x60] sm:$0xff]  ;;  %v1514_v60 = vld [vmem:[#allocation3 + $0x80] sm:$0xff] }
 0x252   : > { %v1443_v39 = vadd.f32 %v1441_v32, %v1438_v31  ;;  %v1506_v49 = vld [vmem:[#allocation4 + $0x70] sm:$0xff]  ;;  %v1507_v9 = vld [vmem:[#allocation4 + $0x78] sm:$0xff]  ;;  %v1519_v13 = vld [vmem:[#allocation4 + $0x80] sm:$0xff] }
 0x253   : > { %v1444_v40 = vadd.f32 %v1442_v34, %v1439_v33  ;;  %v1475_v47 = vld [vmem:[#allocation3 + $0x50] sm:$0xff]  ;;  %v1476_v50 = vld [vmem:[#allocation3 + $0x58] sm:$0xff]  ;;  %v1515_v11 = vld [vmem:[#allocation3 + $0x88] sm:$0xff] }
 0x254   : > { %1446 = vst.msk [vmem:[#allocation5 + $0x20] sm:$0xff] %vm631_vm2, %v1443_v39  ;;  %v1451_v30 = vmul.f32 %v1449_v41, %v1443_v39  ;;  %v1488_v63 = vld [vmem:[#allocation3 + $0x60] sm:$0xff]  ;;  %v1520_v17 = vld [vmem:[#allocation4 + $0x88] sm:$0xff] }
 0x255   : > { %1447 = vst.msk [vmem:[#allocation5 + $0x28] sm:$0xff] %vm631_vm2, %v1444_v40  ;;  %v1452_v44 = vmul.f32 %v1450_v43, %v1444_v40  ;;  %v1489_v0 = vld [vmem:[#allocation3 + $0x68] sm:$0xff] }
 0x256   : > { %v1456_v46 = vadd.f32 %v1454_v38, %v1451_v30  ;;  %v1501_v6 = vld [vmem:[#allocation3 + $0x70] sm:$0xff]  ;;  %v1502_v7 = vld [vmem:[#allocation3 + $0x78] sm:$0xff]  ;;  %v1626_v38 = vld [vmem:[#allocation5 + $0x8] sm:$0xff] }
 0x257   : > { %v1457_v51 = vadd.f32 %v1455_v45, %v1452_v44  ;;  %v1627_v22 = vld [vmem:[#allocation5 + $0x10] sm:$0xff]  ;;  %v1625_v45 = vld [vmem:[#allocation5] sm:$0xff] }
 0x258   : > { %1459 = vst.msk [vmem:[#allocation5 + $0x30] sm:$0xff] %vm631_vm2, %v1456_v46  ;;  %v1464_v42 = vmul.f32 %v1462_v29, %v1456_v46  ;;  %v1628_v19 = vld [vmem:[#allocation5 + $0x18] sm:$0xff] }
 0x259   : > { %1460 = vst.msk [vmem:[#allocation5 + $0x38] sm:$0xff] %vm631_vm2, %v1457_v51  ;;  %v1465_v54 = vmul.f32 %v1463_v35, %v1457_v51 }
 0x25a   : > { %v1469_v53 = vadd.f32 %v1467_v52, %v1464_v42 }
 0x25b   : > { %v1470_v56 = vadd.f32 %v1468_v55, %v1465_v54  ;;  %v1629_v32 = vld [vmem:[#allocation5 + $0x20] sm:$0xff] }
 0x25c   : > { %1472 = vst.msk [vmem:[#allocation5 + $0x40] sm:$0xff] %vm631_vm2, %v1469_v53  ;;  %v1477_v57 = vmul.f32 %v1475_v47, %v1469_v53  ;;  %v1630_v28 = vld [vmem:[#allocation5 + $0x28] sm:$0xff] }
 0x25d   : > { %1473 = vst.msk [vmem:[#allocation5 + $0x48] sm:$0xff] %vm631_vm2, %v1470_v56  ;;  %v1478_v14 = vmul.f32 %v1476_v50, %v1470_v56 }
 0x25e   : > { %v1482_v61 = vadd.f32 %v1480_v58, %v1477_v57 }
 0x25f   : > { %v1483_v62 = vadd.f32 %v1481_v15, %v1478_v14  ;;  %v1631_v47 = vld [vmem:[#allocation5 + $0x30] sm:$0xff] }
 0x260   : > { %1485 = vst.msk [vmem:[#allocation5 + $0x50] sm:$0xff] %vm631_vm2, %v1482_v61  ;;  %v1490_v1 = vmul.f32 %v1488_v63, %v1482_v61  ;;  %v1632_v53 = vld [vmem:[#allocation5 + $0x38] sm:$0xff] }
 0x261   : > { %1486 = vst.msk [vmem:[#allocation5 + $0x58] sm:$0xff] %vm631_vm2, %v1483_v62  ;;  %v1491_v2 = vmul.f32 %v1489_v0, %v1483_v62 }
 0x262   : > { %v1495_v4 = vadd.f32 %v1493_v48, %v1490_v1 }
 0x263   : > { %v1496_v5 = vadd.f32 %v1494_v3, %v1491_v2  ;;  %v1633_v2 = vld [vmem:[#allocation5 + $0x40] sm:$0xff] }
 0x264   : > { %1498 = vst.msk [vmem:[#allocation5 + $0x60] sm:$0xff] %vm631_vm2, %v1495_v4  ;;  %v1503_v8 = vmul.f32 %v1501_v6, %v1495_v4  ;;  %v1634_v1 = vld [vmem:[#allocation5 + $0x48] sm:$0xff] }
 0x265   : > { %1499 = vst.msk [vmem:[#allocation5 + $0x68] sm:$0xff] %vm631_vm2, %v1496_v5  ;;  %v1504_v23 = vmul.f32 %v1502_v7, %v1496_v5 }
 0x266   : > { %v1508_v59 = vadd.f32 %v1506_v49, %v1503_v8 }
 0x267   : > { %v1509_v10 = vadd.f32 %v1507_v9, %v1504_v23 }
 0x268   : > { %1511 = vst.msk [vmem:[#allocation5 + $0x70] sm:$0xff] %vm631_vm2, %v1508_v59  ;;  %v1516_v12 = vmul.f32 %v1514_v60, %v1508_v59 }
 0x269   : > { %1512 = vst.msk [vmem:[#allocation5 + $0x78] sm:$0xff] %vm631_vm2, %v1509_v10  ;;  %v1517_v16 = vmul.f32 %v1515_v11, %v1509_v10  ;;  %v1636_v10 = vld [vmem:[#allocation5 + $0x58] sm:$0xff]  ;;  %v1635_v11 = vld [vmem:[#allocation5 + $0x50] sm:$0xff] }
 0x26a   : > { %v1521_v18 = vadd.f32 %v1519_v13, %v1516_v12  ;;  %v2764_v12 = vld [vmem:[%s575_s13] ss:$0 sm:$0xff] }
 0x26b   : > { %v1522_v24 = vadd.f32 %v1520_v17, %v1517_v16 }
 0x26c   : > { %1524 = vst.msk [vmem:[#allocation5 + $0x80] sm:$0xff] %vm631_vm2, %v1521_v18 }
 0x26d   : > { %1525 = vst.msk [vmem:[#allocation5 + $0x88] sm:$0xff] %vm631_vm2, %v1522_v24 }
 0x27e   : > { %v1547_v20 = vpop.permute.xlu1 %1546  ;;  %v1543_v21 = vpop.permute.xlu0 %1542 }
 0x27f   : > { %v1646_v25 = vmul.f32 %v1628_v19, %v1547_v20  ;;  %v1645_v26 = vmul.f32 %v1627_v22, %v1543_v21 }
 0x281   : > { %v1671_v39 = vsel %vm631_vm2, %v1646_v25, 0.0  ;;  %v1670_v40 = vsel %vm631_vm2, %v1645_v26, 0.0  ;;  %v2770_v26 = vmul.f32 %v2764_v12, %v2537_v36 }
 0x282   : > { %v1558_v27 = vpop.permute.xlu1 %1557  ;;  %v1554_v31 = vpop.permute.xlu0 %1553  ;;  %v1672_v46 = vadd.f32 %v1671_v39, %v1670_v40 }
 0x283   : > { %v1648_v33 = vmul.f32 %v1630_v28, %v1558_v27  ;;  %v1647_v34 = vmul.f32 %v1629_v32, %v1554_v31  ;;  %v1638_v31 = vld [vmem:[#allocation5 + $0x68] sm:$0xff]  ;;  %v1755_v36 = vrot.slane %v2770_v26, 1 }
 0x284   : > { %v1673_v50 = vrot.slane %v1672_v46, 4 }
 0x285   : > { %v1680_v41 = vsel %vm631_vm2, %v1648_v33, 0.0  ;;  %v1679_v43 = vsel %vm631_vm2, %v1647_v34, 0.0  ;;  %v1637_v33 = vld [vmem:[#allocation5 + $0x60] sm:$0xff] }
 0x286   : > { %v1536_v30 = vpop.permute.xlu1 %1535  ;;  %v1532_v44 = vpop.permute.xlu0 %1531  ;;  %v1681_v35 = vadd.f32 %v1680_v41, %v1679_v43  ;;  %v1674_v3 = vadd.f32 %v1673_v50, %v1672_v46  ;;  %v1639_v50 = vld [vmem:[#allocation5 + $0x70] sm:$0xff] }
 0x287   : > { %v1644_v51 = vmul.f32 %v1626_v38, %v1536_v30  ;;  %v1643_v29 = vmul.f32 %v1625_v45, %v1532_v44 }
 0x288   : > { %v1682_v14 = vrot.slane %v1681_v35, 4  ;;  %v1675_v13 = vrot.slane %v1674_v3, 2 }
 0x289   : > { %v1662_v42 = vsel %vm631_vm2, %v1644_v51, 0.0  ;;  %v1661_v52 = vsel %vm631_vm2, %v1643_v29, 0.0 }
 0x28a   : > { %v1663_v54 = vadd.f32 %v1662_v42, %v1661_v52  ;;  %v1569_v55 = vpop.permute.xlu1 %1568  ;;  %v1565_v56 = vpop.permute.xlu0 %1564  ;;  %v1683_v6 = vadd.f32 %v1682_v14, %v1681_v35  ;;  %v1676_v34 = vadd.f32 %v1675_v13, %v1674_v3  ;;  %v1640_v52 = vld [vmem:[#allocation5 + $0x78] sm:$0xff] }
 0x28b   : > { %v1650_v57 = vmul.f32 %v1632_v53, %v1569_v55  ;;  %v1649_v58 = vmul.f32 %v1631_v47, %v1565_v56  ;;  %v1756_v55 = vrot.slane %v2770_v26, 2 }
 0x28c   : > { %v1664_v15 = vrot.slane %v1663_v54, 4  ;;  %v1684_v24 = vrot.slane %v1683_v6, 2 }
 0x28d   : > { %v1689_v61 = vsel %vm631_vm2, %v1650_v57, 0.0  ;;  %v1688_v62 = vsel %vm631_vm2, %v1649_v58, 0.0  ;;  %v1757_v57 = vrot.slane %v2770_v26, 3 }
 0x28e   : > { %v1690_v63 = vadd.f32 %v1689_v61, %v1688_v62  ;;  %v1580_v0 = vpop.permute.xlu1 %1579  ;;  %v1576_v48 = vpop.permute.xlu0 %1575  ;;  %v1665_v7 = vadd.f32 %v1664_v15, %v1663_v54  ;;  %v1685_v43 = vadd.f32 %v1684_v24, %v1683_v6  ;;  %v1677_v54 = vrot.slane %v1676_v34, 1 }
 0x28f   : > { %v1652_v4 = vmul.f32 %v1634_v1, %v1580_v0  ;;  %v1651_v5 = vmul.f32 %v1633_v2, %v1576_v48 }
 0x290   : > { %v1691_v8 = vrot.slane %v1690_v63, 4  ;;  %v1666_v20 = vrot.slane %v1665_v7, 2  ;;  %v1686_v61 = vrot.slane %v1685_v43, 1  ;;  %v1678_v6 = vadd.f32 %v1677_v54, %v1676_v34 }
 0x291   : > { %v1698_v49 = vsel %vm631_vm2, %v1652_v4, 0.0  ;;  %v1697_v23 = vsel %vm631_vm2, %v1651_v5, 0.0  ;;  %v1642_v5 = vld [vmem:[#allocation5 + $0x88] sm:$0xff] }
 0x292   : > { %v1692_v9 = vadd.f32 %v1691_v8, %v1690_v63  ;;  %v1591_v59 = vpop.permute.xlu1 %1590  ;;  %v1587_v60 = vpop.permute.xlu0 %1586  ;;  %v1699_v16 = vadd.f32 %v1698_v49, %v1697_v23  ;;  %v1667_v30 = vadd.f32 %v1666_v20, %v1665_v7  ;;  %v1758_v7 = vrot.slane %v2770_v26, 4 }
 0x293   : > { %v1654_v17 = vmul.f32 %v1636_v10, %v1591_v59  ;;  %v1653_v18 = vmul.f32 %v1635_v11, %v1587_v60  ;;  %v1759_v59 = vrot.slane %v2770_v26, 5  ;;  %v1687_v24 = vadd.f32 %v1686_v61, %v1685_v43 }
 0x294   : > { %v1693_v21 = vrot.slane %v1692_v9, 2  ;;  %v1700_v19 = vrot.slane %v1699_v16, 4  ;;  %v1668_v62 = vrot.slane %v1667_v30, 1 }
 0x295   : > { %v1707_v22 = vsel %vm631_vm2, %v1654_v17, 0.0  ;;  %v1706_v25 = vsel %vm631_vm2, %v1653_v18, 0.0 }
 0x296   : > { %v1708_v27 = vadd.f32 %v1707_v22, %v1706_v25  ;;  %v1602_v28 = vpop.permute.xlu1 %1601  ;;  %v1598_v32 = vpop.permute.xlu0 %1597  ;;  %v1701_v39 = vadd.f32 %v1700_v19, %v1699_v16  ;;  %v1694_v44 = vadd.f32 %v1693_v21, %v1692_v9  ;;  %v1641_v9 = vld [vmem:[#allocation5 + $0x80] sm:$0xff]  ;;  %v1669_v13 = vadd.f32 %v1668_v62, %v1667_v30 }
 0x297   : > { %v1656_v40 = vmul.f32 %v1638_v31, %v1602_v28  ;;  %v1655_v41 = vmul.f32 %v1637_v33, %v1598_v32  ;;  %v1772_v22 = vadd.f32 %v1755_v36, %v1678_v6  ;;  %v1760_v31 = vrot.slane %v2770_v26, 6 }
 0x298   : > { %v1709_v38 = vrot.slane %v1708_v27, 4  ;;  %v1702_v45 = vrot.slane %v1701_v39, 2  ;;  %v1695_v63 = vrot.slane %v1694_v44, 1  ;;  %v1771_v33 = vadd.f32 %v2770_v26, %v1669_v13 }
 0x299   : > { %v1716_v46 = vsel %vm631_vm2, %v1656_v40, 0.0  ;;  %v1715_v51 = vsel %vm631_vm2, %v1655_v41, 0.0  ;;  %v1773_v41 = vadd.f32 %v1756_v55, %v1687_v24  ;;  %v1761_v36 = vrot.slane %v2770_v26, 7 }
 0x29a   : > { %v1710_v29 = vadd.f32 %v1709_v38, %v1708_v27  ;;  %v1717_v35 = vadd.f32 %v1716_v46, %v1715_v51  ;;  %v1613_v42 = vpop.permute.xlu1 %1612  ;;  %v1703_v53 = vadd.f32 %v1702_v45, %v1701_v39  ;;  %v1609_v47 = vpop.permute.xlu0 %1608  ;;  %v1696_v16 = vadd.f32 %v1695_v63, %v1694_v44  ;;  %v1742_v63 = vld [vmem:[#allocation2] sm:$0xff] }
 0x29b   : > { %v1658_v56 = vmul.f32 %v1640_v52, %v1613_v42  ;;  %v1657_v15 = vmul.f32 %v1639_v50, %v1609_v47  ;;  %v1789_v38 = vrot.slane %v1772_v22, 7  ;;  %v1792_v54 = vrot.slane %v1773_v41, 6 }
 0x29c   : > { %v1711_v58 = vrot.slane %v1710_v29, 2  ;;  %v1718_v14 = vrot.slane %v1717_v35, 4  ;;  %v1704_v1 = vrot.slane %v1703_v53, 1  ;;  %v1774_v34 = vadd.f32 %v1757_v57, %v1696_v16 }
 0x29d   : > { %v1725_v0 = vsel %vm631_vm2, %v1658_v56, 0.0  ;;  %v1724_v3 = vsel %vm631_vm2, %v1657_v15, 0.0  ;;  %v1752_v26 = vmul.f32 %v2764_v12, %v2539_v37  ;;  %v1823_v12 = vld [vmem:[%s2521_s4] sm:$0xff] (!%p2091_p10) }
 0x29e   : > { %v1712_v48 = vadd.f32 %v1711_v58, %v1710_v29  ;;  %v1719_v2 = vadd.f32 %v1718_v14, %v1717_v35  ;;  %v1624_v4 = vpop.permute.xlu1 %1623  ;;  %v1726_v8 = vadd.f32 %v1725_v0, %v1724_v3  ;;  %v1705_v20 = vadd.f32 %v1704_v1, %v1703_v53 }
 0x29f   : > { %v1660_v49 = vmul.f32 %v1642_v5, %v1624_v4  ;;  %v1620_v23 = vpop.permute.xlu0 %1619  ;;  %v1791_v29 = vsel %vm1790_vm3, %v1789_v38, %v1771_v33  ;;  %v1795_v35 = vrot.slane %v1774_v34, 5 }
 0x2a0   : > { %v1713_v10 = vrot.slane %v1712_v48, 1  ;;  %v1720_v60 = vrot.slane %v1719_v2, 2  ;;  %v1659_v11 = vmul.f32 %v1641_v9, %v1620_v23  ;;  %v1727_v17 = vrot.slane %v1726_v8, 4  ;;  %v1824_v23 = vld [vmem:[%s2521_s4 + $0x8] sm:$0x1] (!%p2091_p10) }
 0x2a1   : > { %v1734_v18 = vsel %vm631_vm2, %v1660_v49, 0.0  ;;  %v1775_v30 = vadd.f32 %v1758_v7, %v1705_v20  ;;  %v1794_v50 = vsel %vm1793_vm4, %v1792_v54, %v1791_v29  ;;  %v1827_v7 = vld [vmem:[%s2516_s1] sm:$0xff] (!%p2091_p10)  ;;  %v1828_v9 = vld [vmem:[%s2516_s1 + $0x8] sm:$0x1] (!%p2091_p10) }
 0x2a2   : > { %v1721_v21 = vadd.f32 %v1720_v60, %v1719_v2  ;;  %v1733_v19 = vsel %vm631_vm2, %v1659_v11, 0.0  ;;  %v1714_v25 = vadd.f32 %v1713_v10, %v1712_v48  ;;  %v1728_v27 = vadd.f32 %v1727_v17, %v1726_v8  ;;  %v1743_v2 = vld [vmem:[#allocation2 + $0x8] sm:$0x1] }
 0x2a3   : > { %v1735_v28 = vadd.f32 %v1734_v18, %v1733_v19  ;;  %v1798_v53 = vrot.slane %v1775_v30, 4  ;;  %v1797_v58 = vsel %vm1796_vm5, %v1795_v35, %v1794_v50 }
 0x2a4   : > { %v1722_v32 = vrot.slane %v1721_v21, 1  ;;  %v1729_v39 = vrot.slane %v1728_v27, 2  ;;  %v1776_v44 = vadd.f32 %v1759_v59, %v1714_v25 }
 0x2a5   : > { %v1736_v40 = vrot.slane %v1735_v28, 4  ;;  %v1800_v61 = vsel %vm1799_vm6, %v1798_v53, %v1797_v58 }
 0x2a6   : > { %v1723_v43 = vadd.f32 %v1722_v32, %v1721_v21  ;;  %v1730_v45 = vadd.f32 %v1729_v39, %v1728_v27  ;;  %v1801_v55 = vrot.slane %v1776_v44, 3 }
 0x2a7   : > { %v1737_v46 = vadd.f32 %v1736_v40, %v1735_v28 }
 0x2a8   : > { %v1777_v51 = vadd.f32 %v1760_v31, %v1723_v43  ;;  %v1731_v42 = vrot.slane %v1730_v45, 1  ;;  %v1803_v62 = vsel %vm1802_vm7, %v1801_v55, %v1800_v61 }
 0x2a9   : > { %v1738_v52 = vrot.slane %v1737_v46, 2 }
 0x2aa   : > { %v1732_v56 = vadd.f32 %v1731_v42, %v1730_v45  ;;  %v1804_v57 = vrot.slane %v1777_v51, 2 }
 0x2ab   : > { %v1739_v47 = vadd.f32 %v1738_v52, %v1737_v46 }
 0x2ac   : > { %v1778_v14 = vadd.f32 %v1761_v36, %v1732_v56  ;;  %v1806_v48 = vsel %vm1805_vm8, %v1804_v57, %v1803_v62 }
 0x2ad   : > { %v1740_v15 = vrot.slane %v1739_v47, 1 }
 0x2ae   : > { %v1807_v0 = vrot.slane %v1778_v14, 1 }
 0x2af   : > { %v1741_v1 = vadd.f32 %v1740_v15, %v1739_v47  ;;  %1820 = sbr.rel (%p2091_p10) target bundleno = 717 (0x2cd), region = 68 }
 0x2b0   : > { %v1809_v3 = vsel %vm1808_vm9, %v1807_v0, %v1806_v48 }
 0x2b1   : > { %v1779_v4 = vadd.f32 %v1752_v26, %v1741_v1  ;;  %v1812_v5 = vadd.f32 %v1809_v3, %v1742_v63 }
 0x2b3   : > { %v1813_v6 = vadd.f32 %v1779_v4, %v1743_v2  ;;  %1814 = vst.msk [vmem:[#allocation2] sm:$0xff] %vm631_vm2, %v1812_v5 }
 0x2b5   : > { %1816 = vst.msk [vmem:[#allocation2 + $0x8] sm:$0x1] %vm1815_vm10, %v1813_v6 }
 0x2ba   : > { %v1821_v37 = vld [vmem:[#allocation2] sm:$0xff] }
 0x2bb   : > { %v1825_v8 = vmul.f32 %v1823_v12, %v1821_v37 }
 0x2bc   : > { %v1822_v49 = vld [vmem:[#allocation2 + $0x8] sm:$0x1] }
 0x2bd   : > { %v1826_v59 = vmul.f32 %v1824_v23, %v1822_v49  ;;  %v1829_v10 = vadd.f32 %v1827_v7, %v1825_v8 }
 0x2bf   : > { %v1830_v60 = vadd.f32 %v1828_v9, %v1826_v59  ;;  %2310 = vtanh.f32 %v1829_v10 }
 0x2c1   : > { %2312 = vtanh.f32 %v1830_v60 }
 0x2c9   : > { %v2311_v11 = vpop.eup %2310 }
 0x2ca   : > { %1833 = vst.msk [vmem:[%s2526_s5] sm:$0xff] %vm631_vm2, %v2311_v11 }
 0x2cb   : > { %v2313_v13 = vpop.eup %2312 }
 0x2cc   : > { %1834 = vst.msk [vmem:[%s2526_s5 + $0x8] sm:$0x1] %vm1815_vm10, %v2313_v13 }
 0x2cd PF: > { %s2861_s26 = sld [smem:[#allocation10_spill]]  ;;  %s2862_s13 = sld [smem:[#allocation7_spill]] }
 0x2ce   : > { %s2863_s14 = sld [smem:[#allocation8_spill]]  ;;  %s2864_s15 = sld [smem:[#allocation9_spill]] }
 0x2cf   : > { %s2865_s16 = sld [smem:[#allocation11_spill]]  ;;  %s2866_s17 = sld [smem:[#allocation12_spill]] }
 0x2d0   : > { %s2867_s18 = sld [smem:[#allocation13_spill]] }
 0x2d3   : > { %s20_s19 = sadd.s32 1, %s2861_s26  }
 0x2d4   : > { %p17_p11 = scmp.ge.s32.totalorder %s20_s19, 10  }
 0x2d6   :  { %19 = sbr.rel (!%p17_p11) target bundleno = 8 (0x8), region = 149 }

// kernel: t_mamba_forward.10
= control target key start
LH: loop header
LB: loop body
LE: loop exit
PB: predicated region body
PF: predicated region fallthrough
CT: control target
= control target key end

     0   :  { %vm55_vm0 = vcmask 1044480   ;;  %vm30_vm1 = vcmask 39936   ;;  %s301_s1 = inlined_call_operand.vmem [shape: f32[5,5], index: 1, kind: input, shape index: {}]   ;;  %s302_s0 = inlined_call_operand.vmem [shape: f32[64,5], index: 0, kind: input, shape index: {}]   ;;  %s303_s2 = inlined_call_operand.vmem [shape: f32[1,5], index: 2, kind: input, shape index: {}]   ;;  %s304_s3 = inlined_call_operand.vmem [shape: f32[64,5], index: 3, kind: output, shape index: {}]  }
   0x1   :  { %v22_v0 = vld [vmem:[%s301_s1] sm:$0x1f]  ;;  %v15_v3 = vld [vmem:[%s302_s0 + $0x8] sm:$0xff]  ;;  %v16_v5 = vld [vmem:[%s302_s0 + $0x10] sm:$0xff] }
   0x2   :  { %v14_v1 = vld [vmem:[%s302_s0] sm:$0xff]  ;;  %195 = vmatprep.subr.msk.mxu0 %vm55_vm0, %v22_v0  ;;  %209 = vmatprep.subr.msk.mxu1 %vm55_vm0, %v22_v0  ;;  %v19_v4 = vld [vmem:[%s302_s0 + $0x28] sm:$0xff]  ;;  %v20_v6 = vld [vmem:[%s302_s0 + $0x30] sm:$0xff] }
   0x3   :  { %v18_v2 = vld [vmem:[%s302_s0 + $0x20] sm:$0xff]  ;;  %196 = vmatpush3.msk.msra.mxu0 %vm55_vm0, %v22_v0  ;;  %210 = vmatpush3.msk.msra.mxu1 %vm55_vm0, %v22_v0  ;;  %v17_v7 = vld [vmem:[%s302_s0 + $0x18] sm:$0xff] }
   0x4   :  { %197 = vmatprep.mubr.msk.f32.mxu0 %vm30_vm1, %v14_v1  ;;  %203 = vmatprep.mubr.msk.f32.mxu1 %vm30_vm1, %v18_v2  ;;  %v21_v8 = vld [vmem:[%s302_s0 + $0x38] sm:$0xff]  ;;  %v176_v9 = vld [vmem:[%s303_s2] ss:$0 sm:$0xff] }
   0x5   :  { %198 = vmatmul.mubr.msk.f32.vlgmr.msra.gmra.mrb[0].mxu0 %vm30_vm1, %v15_v3  ;;  %204 = vmatmul.mubr.msk.f32.vlgmr.msra.gmra.mrb[0].mxu1 %vm30_vm1, %v19_v4 }
   0x6   :  { %200 = vmatprep.mubr.msk.f32.mxu0 %vm30_vm1, %v16_v5  ;;  %206 = vmatprep.mubr.msk.f32.mxu1 %vm30_vm1, %v20_v6 }
   0x9   :  { %201 = vmatmul.mubr.msk.f32.gmra.mrb[2].mxu0 %vm30_vm1, %v17_v7  ;;  %207 = vmatmul.mubr.msk.f32.gmra.mrb[2].mxu1 %vm30_vm1, %v21_v8 }
  0xd8   :  { %v199_v10 = vpop.f32.mrb[0].mxu0  ;;  %v205_v11 = vpop.f32.mrb[0].mxu1 }
  0xd9   :  { %v131_v12 = vadd.f32 %v199_v10, %v176_v9  ;;  %v151_v13 = vadd.f32 %v205_v11, %v176_v9  ;;  %v125_v14 = vpop.f32.mrb[1].mxu0  ;;  %v145_v15 = vpop.f32.mrb[1].mxu1 }
  0xda   :  { %v126_v16 = vadd.f32 %v176_v9, %v125_v14  ;;  %v146_v17 = vadd.f32 %v176_v9, %v145_v15 }
  0xdb   :  { %165 = vst.msk [vmem:[%s304_s3 + $0x8] sm:$0xff] %vm30_vm1, %v131_v12  ;;  %169 = vst.msk [vmem:[%s304_s3 + $0x28] sm:$0xff] %vm30_vm1, %v151_v13 }
  0xdc   :  { %164 = vst.msk [vmem:[%s304_s3] sm:$0xff] %vm30_vm1, %v126_v16  ;;  %168 = vst.msk [vmem:[%s304_s3 + $0x20] sm:$0xff] %vm30_vm1, %v146_v17  ;;  %v202_v18 = vpop.f32.mrb[2].mxu0  ;;  %v208_v19 = vpop.f32.mrb[2].mxu1 }
  0xdd   :  { %v141_v20 = vadd.f32 %v202_v18, %v176_v9  ;;  %v161_v21 = vadd.f32 %v208_v19, %v176_v9  ;;  %v135_v22 = vpop.f32.mrb[3].mxu0  ;;  %v155_v23 = vpop.f32.mrb[3].mxu1 }
  0xde   :  { %v136_v24 = vadd.f32 %v176_v9, %v135_v22  ;;  %v156_v25 = vadd.f32 %v176_v9, %v155_v23 }
  0xdf   :  { %167 = vst.msk [vmem:[%s304_s3 + $0x18] sm:$0xff] %vm30_vm1, %v141_v20  ;;  %171 = vst.msk [vmem:[%s304_s3 + $0x38] sm:$0xff] %vm30_vm1, %v161_v21 }
  0xe0   :  { %166 = vst.msk [vmem:[%s304_s3 + $0x10] sm:$0xff] %vm30_vm1, %v136_v24  ;;  %170 = vst.msk [vmem:[%s304_s3 + $0x30] sm:$0xff] %vm30_vm1, %v156_v25 }

// kernel: t_mamba_forward.11
= control target key start
LH: loop header
LB: loop body
LE: loop exit
PB: predicated region body
PF: predicated region fallthrough
CT: control target
= control target key end

     0   :  { %s598_s18 = smov 0   ;;  %s642_s0 = inlined_call_operand.vmem [shape: f32[2,5,5], index: 0, kind: input, shape index: {}]   ;;  %s643_s1 = inlined_call_operand.vmem [shape: f32[2,5,32], index: 1, kind: input, shape index: {}]   ;;  %s644_s2 = inlined_call_operand.vmem [shape: f32[2,5,32], index: 2, kind: input, shape index: {}]   ;;  %s645_s3 = inlined_call_operand.vmem [shape: f32[32,32], index: 3, kind: input, shape index: {}]   ;;  %s646_s4 = inlined_call_operand.vmem [shape: f32[1,32], index: 4, kind: input, shape index: {}]   ;;  %s647_s5 = inlined_call_operand.vmem [shape: f32[2,5,32], index: 5, kind: output, shape index: {}]  }
   0x1 LB: > { %s500_s19 = sadd.s32 4294967295, %s563_s18   ;;  %p504_p0 = scmp.ge.s32.totalorder %s563_s18, 1  ;;  %s563_s18 = sphi %s598_s18, %s15_s18  }
   0x2   : > { %p204_p1 = scmp.lt.s32.totalorder %s563_s18, 3 }
   0x4   : > { %p205_p2 = pnand %p504_p0, %p204_p1 }
   0x5   : > { %p238_p3 = scmp.lt.s32.totalorder (!%p205_p2), %s500_s19, 1  ;;  %v335_v0 = vld [vmem:[%s645_s3] sm:$0xff] (!%p205_p2)  ;;  %v565_v1 = vmov (!%p205_p2), 0.0   ;;  %vm566_vm0 = vmmov (!%p205_p2), 0   ;;  %v336_v2 = vld [vmem:[%s645_s3 + $0x8] sm:$0xff] (!%p205_p2)  ;;  %v567_v3 = vmov (!%p205_p2), 0.0|0.0  }
   0x6   : > { %208 = sbr.rel (%p205_p2) target bundleno = 458 (0x1ca), region = 40  ;;  %522 = vmatprep.subr.mxu0 (!%p205_p2), %v565_v1  ;;  %524 = vmatprep.mubr.msk.f32.mxu0 (!%p205_p2), %vm566_vm0, %v565_v1  ;;  %v539_v4 = vpack.c.bf16 (!%p205_p2), %v336_v2, %v335_v0  ;;  %vm261_vm1 = vcmask (!%p205_p2), 1044480   ;;  %vm257_vm2 = vcmask (!%p205_p2), 39936   ;;  %v337_v7 = vld [vmem:[%s645_s3 + $0x10] sm:$0xff] (!%p205_p2)  ;;  %v338_v8 = vld [vmem:[%s645_s3 + $0x18] sm:$0xff] (!%p205_p2)  ;;  %vm346_vm3 = vcmask (!%p205_p2), 261120  }
   0x7   : > { %538 = vmatprep.subr.bf16.mxu1 (!%p205_p2), %v567_v3  ;;  %535 = vmatprep.mubr.msk.f32.mxu1 (!%p205_p2), %vm566_vm0, %v565_v1  ;;  %v542_v9 = vpack.c.bf16 (!%p205_p2), %v338_v8, %v337_v7  ;;  %v511_v14 = vld [vmem:[%s646_s4] ss:$0 sm:$0xff] (!%p205_p2)  ;;  %vm421_vm4 = vcmask (!%p205_p2), 258048  }
   0x8   : > { %540 = vmatpush3.bf16.msra.mxu1 (!%p205_p2), %v539_v4 }
   0x9   : > { %541 = vmatprep.subr.bf16.mxu1 (!%p205_p2), %v567_v3 }
   0xc   : > { %543 = vmatpush3.bf16.msra.mxu1 (!%p205_p2), %v542_v9 }
   0xd   : > { %s649_s19 = smov (!%p238_p3, %s500_s19), 1 }
   0xe   : > { %s612_s24 = sshll.u32 %s649_s19, 3 }
   0xf   : > { %s245_s27 = scalar_lea.vmem %s643_s1, %s612_s24  ;;  %s241_s30 = scalar_lea.vmem %s642_s0, %s612_s24 }
  0x10   : > { %v255_v5 = vld [vmem:[%s245_s27] sm:$0x1f]  ;;  %s249_s12 = scalar_lea.vmem %s644_s2, %s612_s24  ;;  %s253_s17 = scalar_lea.vmem %s647_s5, %s612_s24 }
  0x11   : > { %523 = vmatpush3.msk.msra.mxu0 %vm261_vm1, %v255_v5  ;;  %v254_v6 = vld [vmem:[%s241_s30] sm:$0x1f] }
  0x12   : > { %525 = vmatmul.mubr.msk.f32.vlgmr.msra.gmra.mrb[0].mxu0 %vm257_vm2, %v254_v6  ;;  %v256_v10 = vld [vmem:[%s249_s12] sm:$0x1f] }
  0xe5   : > { %v331_v11 = vpop.f32.mrb[0].mxu0 }
  0xe6   : > { %v332_v12 = vadd.f32 %v331_v11, %v256_v10  ;;  %v526_v13 = vpop.f32.mrb[1].mxu0 }
  0xe8   : > { %536 = vmatmul.mubr.msk.f32.vlgmr.msra.gmra.mrb[0].mxu1 %vm346_vm3, %v332_v12 }
 0x1bb   : > { %v416_v15 = vpop.f32.mrb[0].mxu1 }
 0x1bc   : > { %v417_v16 = vadd.f32 %v511_v14, %v416_v15  ;;  %v537_v17 = vpop.f32.mrb[1].mxu1 }
 0x1be   : > { %555 = vtanh.f32 %v417_v16 }
 0x1c8   : > { %v556_v18 = vpop.eup %555 }
 0x1c9   : > { %422 = vst.msk [vmem:[%s253_s17] sm:$0x1f] %vm421_vm4, %v556_v18 }
 0x1ca PF: > { %s15_s18 = sadd.s32 1, %s563_s18  }
 0x1cb   : > { %p12_p4 = scmp.ge.s32.totalorder %s15_s18, 4  }
 0x1cd   :  { %14 = sbr.rel (!%p12_p4) target bundleno = 1 (0x1), region = 76 }

// kernel: t_mamba_forward.9
= control target key start
LH: loop header
LB: loop body
LE: loop exit
PB: predicated region body
PF: predicated region fallthrough
CT: control target
= control target key end

     0   :  { %20 = vsyncpa [#allocation3], 0  ;;  %s1953_s0 = inlined_call_operand.vmem [shape: f32[3], index: 0, kind: input, shape index: {}]   ;;  %s1954_s1 = inlined_call_operand.vmem [shape: f32[3], index: 1, kind: input, shape index: {}]   ;;  %s1955_s2 = inlined_call_operand.vmem [shape: f32[2,9,64], index: 2, kind: input, shape index: {}]   ;;  %s1956_s3 = inlined_call_operand.vmem [shape: f32[2,9,1], index: 3, kind: input, shape index: {}]   ;;  %s1957_s4 = inlined_call_operand.vmem [shape: f32[2,9,32], index: 4, kind: input, shape index: {}]   ;;  %s1958_s5 = inlined_call_operand.vmem [shape: f32[64,32], index: 5, kind: input, shape index: {}]   ;;  %s1959_s6 = inlined_call_operand.vmem [shape: f32[1,32], index: 6, kind: input, shape index: {}]   ;;  %s1960_s7 = inlined_call_operand.vmem [shape: f32[32,5], index: 7, kind: input, shape index: {}]   ;;  %s1961_s8 = inlined_call_operand.vmem [shape: f32[32,32], index: 8, kind: input, shape index: {}]   ;;  %s1962_s9 = inlined_call_operand.vmem [shape: f32[5,9], index: 9, kind: input, shape index: {}]   ;;  %s1963_s10 = inlined_call_operand.vmem [shape: f32[32,5], index: 10, kind: input, shape index: {}]   ;;  %s1964_s11 = inlined_call_operand.vmem [shape: f32[1,5], index: 11, kind: input, shape index: {}]   ;;  %s1965_s12 = inlined_call_operand.vmem [shape: f32[2,5,32], index: 12, kind: output, shape index: {0}]   ;;  %s1966_s13 = inlined_call_operand.vmem [shape: f32[2,5,5], index: 13, kind: output, shape index: {1}]   ;;  %s1967_s14 = inlined_call_operand.vmem [shape: f32[2,5,32], index: 14, kind: output, shape index: {2}]  }
   0x1   :  { %21 = vsyncpa [#allocation5], 0  ;;  %s1765_s29 = smov 0  }
   0x2 LB: > { %s1771_s30 = sadd.s32 4294967295, %s1681_s29   ;;  %p1388_p0 = scmp.ge.s32.totalorder %s1681_s29, 1  ;;  %s1681_s29 = sphi %s1765_s29, %s27_s29  }
   0x3   : > { %p377_p1 = scmp.lt.s32.totalorder %s1681_s29, 3  ;;  %s390_s17 = sshll.u32 %s1953_s0, 4  ;;  %s391_s17 = int_to_ptr.vmem [resolvable:$true] %s390_s17 }
   0x4   : > { %p1968_p3 = scmp.eq.s32.totalorder %s1771_s30, 0  ;;  %s401_s21 = sshll.u32 %s1954_s1, 4  ;;  %s402_s21 = int_to_ptr.vmem [resolvable:$true] %s401_s21 }
   0x5   : > { %p1778_p2 = pnand %p1388_p0, %p377_p1  ;;  %s1637_s23 = scalar_lea.vmem %s391_s17, 16 }
   0x6   : > { %p1638_p6 = scmp.ne.s32.totalorder %s391_s17, %s1637_s23  ;;  %p1645_p10 = scmp.lt.s32.totalorder %s391_s17, %s391_s17 }
   0x7   : > { %s1970_s18 = scalar_select %p1778_p2, 1, 0 }
   0x8   : > { %p1584_p4 = pneg %p1778_p2  ;;  %p1646_p11 = scmp.lt.s32.totalorder %s1637_s23, %s1637_s23 }
   0xa   : > { %p1790_p5 = pnand %p1968_p3, %p1584_p4  ;;  %p1647_p12 = por %p1646_p11, %p1645_p10 }
   0xc   : > { %p1639_p7 = pneg %p1790_p5 }
   0xe   : > { %p1640_p8 = pnand %p1639_p7, %p1638_p6 }
  0x10   : > { %p1641_p9 = pneg %p1640_p8 }
  0x12   : > { %p1648_p13 = pnand %p1647_p12, %p1641_p9 }
  0x14   : > { %1651 = shalt.err (!%p1648_p13)
}
  0x15   : > { %s1683_s24 = smov [#allocation2]   ;;  %s1652_s25 = scalar_lea.vmem %s402_s21, 16 }
  0x16   : > { %1587 = dma.vmem_to_smem (!%p1790_p5), %s391_s17, 16, %s1683_s24, [#allocation3]  }
  0x17   : > { %p1653_p0 = scmp.ne.s32.totalorder %s402_s21, %s1652_s25  ;;  %p1660_p3 = scmp.lt.s32.totalorder %s402_s21, %s402_s21 }
  0x18   : > { %p1661_p2 = scmp.lt.s32.totalorder %s1652_s25, %s1652_s25 }
  0x19   : > { %p1655_p1 = pnand %p1653_p0, %p1639_p7 }
  0x1a   : > { %p1662_p6 = por %p1661_p2, %p1660_p3 }
  0x1b   : > { %p1656_p4 = pneg %p1655_p1 }
  0x1d   : > { %p1663_p8 = pnand %p1662_p6, %p1656_p4 }
  0x1f   : > { %1666 = shalt.err (!%p1663_p8)
}
  0x20   : > { %s1684_s26 = smov [#allocation4]   ;;  %p1972_p9 = scmp.ne.s32.totalorder %s1970_s18, 0 }
  0x21   : > { %1590 = dma.vmem_to_smem (!%p1790_p5), %s402_s21, 16, %s1684_s26, [#allocation5]  }
  0x22   : > { %459 = sbr.rel (%p1972_p9) target bundleno = 1358 (0x54e), region = 68  ;;  %p1973_p10 = scmp.eq.s32.totalorder (!%p1972_p9), %s1771_s30, 0 }
  0x29   : > { %1672 = dma.done.wait (%p1973_p10), [#allocation3], 16   ;;  %p1974_p11 = pmov %p1973_p10 }
  0x2a   : > { %p1975_p7 = pmov %p1973_p10 }
  0x2b   : > { %1674 = vsyncadd (%p1974_p11), [#allocation3], 4294967280 }
  0x2c   : > { %1676 = dma.done.wait (%p1975_p7), [#allocation5], 16   ;;  %p1976_p2 = pmov %p1975_p7 }
  0x2e   : > { %1678 = vsyncadd (%p1976_p2), [#allocation5], 4294967280 }
  0x2f   : > { %469 = sfence }
  0x30   : > { %v556_v0 = vld [vmem:[%s1958_s5] sm:$0xff]  ;;  %v557_v1 = vld [vmem:[%s1958_s5 + $0x8] sm:$0xff]  ;;  %v558_v2 = vld [vmem:[%s1958_s5 + $0x10] sm:$0xff]  ;;  %p527_p3 = scmp.lt.s32.totalorder %s1771_s30, 1  ;;  %v1685_v5 = vmov 0   ;;  %vm571_vm0 = vcmask 523264  }
  0x31   : > { %v1530_v3 = vpack.c.bf16 %v557_v1, %v556_v0  ;;  %v559_v4 = vld [vmem:[%s1958_s5 + $0x18] sm:$0xff]  ;;  %1610 = vset.pattern.permute.xlu0 %v1685_v5  ;;  %v560_v7 = vld [vmem:[%s1958_s5 + $0x20] sm:$0xff]  ;;  %v561_v8 = vld [vmem:[%s1958_s5 + $0x28] sm:$0xff]  ;;  %vm671_vm1 = vcmask 253952   ;;  %vm667_vm2 = vcmask 261120   ;;  %s683_s23 = sld [smem:[#allocation2]] }
  0x32   : > { %v1534_v6 = vpack.c.bf16 %v559_v4, %v558_v2  ;;  %s1980_s30 = smov (!%p527_p3, %s1771_s30), 1  ;;  %v1538_v9 = vpack.c.bf16 %v561_v8, %v560_v7  ;;  %v562_v10 = vld [vmem:[%s1958_s5 + $0x30] sm:$0xff]  ;;  %v563_v11 = vld [vmem:[%s1958_s5 + $0x38] sm:$0xff]  ;;  %v1404_v18 = vld [vmem:[%s1959_s6] ss:$0 sm:$0xff]  ;;  %s1407_s24 = sld [smem:[#allocation2 + $0x1]] }
  0x33   : > { %1531 = vmatprep.subr.bf16.mxu0 %v1530_v3  ;;  %s1833_s25 = sshll.u32 %s1980_s30, 4  ;;  %v1542_v14 = vpack.c.bf16 %v563_v11, %v562_v10  ;;  %v715_v30 = vld [vmem:[%s1960_s7] sm:$0xff]  ;;  %v716_v31 = vld [vmem:[%s1960_s7 + $0x8] sm:$0xff]  ;;  %v717_v32 = vld [vmem:[%s1960_s7 + $0x10] sm:$0xff]  ;;  %s1408_s26 = sld [smem:[#allocation2 + $0x2]]  ;;  %vm1687_vm3 = vmmov 0  }
  0x34   : > { %1533 = vmatpush3.bf16.msra.mxu0 %v1530_v3  ;;  %s531_s28 = scalar_lea.vmem %s1955_s2, %s1833_s25  ;;  %s536_s21 = scalar_lea.vmem %s1956_s3, %s1833_s25  ;;  %v1546_v33 = vpack.c.bf16 %v716_v31, %v715_v30  ;;  %v718_v34 = vld [vmem:[%s1960_s7 + $0x18] sm:$0xff]  ;;  %v829_v36 = vld [vmem:[%s1961_s8] sm:$0xff]  ;;  %v830_v37 = vld [vmem:[%s1961_s8 + $0x8] sm:$0xff]  ;;  %v1688_v10 = vmov 0.0   ;;  %vm802_vm4 = vcmask 32768   ;;  %vm800_vm5 = vcmask 39936  }
  0x35   : > { %1535 = vmatprep.subr.bf16.mxu0 %v1534_v6  ;;  %v554_v12 = vld [vmem:[%s531_s28] sm:$0xff]  ;;  %v654_v15 = vld [vmem:[%s536_s21 + $0x8] sm:$0x1]  ;;  %v1550_v35 = vpack.c.bf16 %v718_v34, %v717_v32  ;;  %v1554_v38 = vpack.c.bf16 %v830_v37, %v829_v36  ;;  %v831_v3 = vld [vmem:[%s1961_s8 + $0x10] sm:$0xff]  ;;  %vm944_vm6 = vcmask 1040384   ;;  %vm1689_vm7 = vmmov 1   ;;  %s541_s19 = scalar_lea.vmem %s1957_s4, %s1833_s25 }
  0x36   : > { %1480 = vmatprep.mubr.msk.f32.mxu0 %vm571_vm0, %v554_v12  ;;  %v653_v13 = vld [vmem:[%s536_s21] sm:$0xff]  ;;  %v555_v16 = vld [vmem:[%s531_s28 + $0x8] sm:$0x1]  ;;  %1547 = vmatprep.subr.bf16.mxu1 %v1546_v33  ;;  %v832_v4 = vld [vmem:[%s1961_s8 + $0x18] sm:$0xff]  ;;  %vm940_vm9 = vcmask 72704   ;;  %s1928_s16 = sshll.u32 %s1980_s30, 3 }
  0x37   : > { %657 = vperm.xlu0 %1610, %v653_v13   ;;  %1549 = vmatpush3.bf16.msra.mxu1 %v1546_v33  ;;  %v684_v40 = vstv %s683_s23  ;;  %v1558_v8 = vpack.c.bf16 %v832_v4, %v831_v3  ;;  %vm1895_vm8 = vmpackc.low %vm944_vm6, %vm1689_vm7  ;;  %vm1018_vm10 = vcmask 258048   ;;  %s1423_s30 = sld [smem:[#allocation4 + $0x1]]  ;;  %s1205_s20 = sld [smem:[#allocation4]]  ;;  %vm1196_vm11 = vcmask 36864  }
  0x38   : > { %1537 = vmatpush3.bf16.msra.mxu0 %v1534_v6  ;;  %1551 = vmatprep.subr.bf16.mxu1 %v1550_v35  ;;  %v688_v45 = vstv %s1407_s24  ;;  %s1424_s21 = sld [smem:[#allocation4 + $0x2]]  ;;  %s553_s25 = scalar_lea.vmem %s1967_s14, %s1928_s16 }
  0x39   : > { %1539 = vmatprep.subr.bf16.mxu0 %v1538_v9  ;;  %v694_v48 = vstv %s1408_s26  ;;  %s549_s15 = scalar_lea.vmem %s1966_s13, %s1928_s16 }
  0x3b   : > { %662 = vperm.xlu0 %1610, %v654_v15   ;;  %1553 = vmatpush3.bf16.msra.mxu1 %v1550_v35 }
  0x3c   : > { %1541 = vmatpush3.bf16.msra.mxu0 %v1538_v9  ;;  %1555 = vmatprep.subr.bf16.mxu1 %v1554_v38  ;;  %v1686_v9 = vmov 0.0|0.0  }
  0x3d   : > { %1543 = vmatprep.subr.bf16.mxu0 %v1542_v14  ;;  %v1209_v4 = vstv %s1423_s30 }
  0x40   : > { %1545 = vmatpush3.bf16.msra.mxu0 %v1542_v14 }
  0x41   : > { %1570 = vmatprep.subr.bf16.mxu0 %v1686_v9 }
  0x43   : > { %1481 = vmatmul.mubr.msk.f32.vlgmr.msra.gmra.mrb[0].mxu0 %vm571_vm0, %v555_v16 }
  0x44   : > { %1527 = vmatprep.mubr.msk.f32.mxu0 %vm1687_vm3, %v1688_v10 }
  0xb6   : > { %v658_v17 = vpop.permute.xlu0 %657 }
  0xba   : > { %v663_v22 = vpop.permute.xlu0 %662 }
 0x116   : > { %v1482_v19 = vpop.f32.mrb[0].mxu0 }
 0x117   : > { %v650_v20 = vadd.f32 %v1482_v19, %v1404_v18  ;;  %v644_v21 = vpop.f32.mrb[1].mxu0 }
 0x118   : > { %v645_v23 = vadd.f32 %v1404_v18, %v644_v21 }
 0x119   : > { %v1854_v24 = vmul.f32 %v663_v22, %v650_v20 }
 0x11a   : > { %v665_v25 = vmul.f32 %v658_v17, %v645_v23 }
 0x11b   : > { %v678_v26 = vsel %vm671_vm1, %v1854_v24, 0.0  ;;  %v672_v29 = vsel %vm671_vm1, %v1854_v24, -inf }
 0x11c   : > { %679 = vadd.xlane.f32.xlu1 %v678_v26  ;;  %v668_v27 = vsel %vm667_vm2, %v665_v25, -inf  ;;  %v675_v28 = vsel %vm667_vm2, %v665_v25, 0.0 }
 0x11d   : > { %669 = vmax.xlane.f32.xlu0 %v668_v27 }
 0x120   : > { %676 = vadd.xlane.f32.xlu1 %v675_v28 }
 0x124   : > { %673 = vmax.xlane.f32.xlu1 %v672_v29 }
 0x1a9   : > { %v680_v39 = vpop.xlane.xlu1 %679 }
 0x1aa   : > { %v670_v41 = vpop.xlane.xlu0 %669  ;;  %v682_v43 = vmul.f32 0.03125, %v680_v39 }
 0x1ab   : > { %v685_v46 = vmul.f32 %v684_v40, %v670_v41 }
 0x1ac   : > { %v690_v50 = vmul.f32 %v688_v45, %v682_v43 }
 0x1ad   : > { %v677_v42 = vpop.xlane.xlu1 %676 }
 0x1ae   : > { %v681_v44 = vmul.f32 0.03125, %v677_v42 }
 0x1b0   : > { %v689_v47 = vmul.f32 %v688_v45, %v681_v44  ;;  %v1021_v44 = vld [vmem:[%s541_s19] sm:$0xff]  ;;  %v1022_v45 = vld [vmem:[%s541_s19 + $0x8] sm:$0x1]  ;;  %s545_s19 = scalar_lea.vmem %s1965_s12, %s1928_s16 }
 0x1b1   : > { %v674_v49 = vpop.xlane.xlu1 %673 }
 0x1b2   : > { %v691_v51 = vadd.f32 %v689_v47, %v685_v46  ;;  %v686_v52 = vmul.f32 %v684_v40, %v674_v49  ;;  %v1567_v46 = vpack.c.bf16 %v1022_v45, %v1021_v44  ;;  %v1106_v49 = vld [vmem:[%s1963_s10] sm:$0xff] }
 0x1b4   : > { %v692_v53 = vadd.f32 %v690_v50, %v686_v52  ;;  %v695_v54 = vadd.f32 %v694_v48, %v691_v51  ;;  %v1107_v50 = vld [vmem:[%s1963_s10 + $0x8] sm:$0xff]  ;;  %v1108_v52 = vld [vmem:[%s1963_s10 + $0x10] sm:$0xff] }
 0x1b5   : > { %v1571_v51 = vpack.c.bf16 %v1107_v50, %v1106_v49 }
 0x1b6   : > { %v696_v55 = vadd.f32 %v694_v48, %v692_v53  ;;  %v697_v56 = vmul.f32 0.999995, %v695_v54  ;;  %v1020_v48 = vld [vmem:[%s1962_s9] sm:$0x1f]  ;;  %v1109_v53 = vld [vmem:[%s1963_s10 + $0x18] sm:$0xff] }
 0x1b7   : > { %1572 = vmatpush3.bf16.msra.mxu0 %v1571_v51  ;;  %v1574_v54 = vpack.c.bf16 %v1109_v53, %v1108_v52 }
 0x1b8   : > { %v698_v57 = vmul.f32 0.999995, %v696_v55  ;;  %v699_v58 = vmax.f32 %v697_v56, 0.0  ;;  %1573 = vmatprep.subr.bf16.mxu0 %v1686_v9 }
 0x1ba   : > { %v700_v59 = vmax.f32 %v698_v57, 0.0  ;;  %v1409_v60 = vmul.f32 -1.442695, %v699_v58 }
 0x1bb   : > { %1575 = vmatpush3.bf16.msra.mxu0 %v1574_v54 }
 0x1bc   : > { %1611 = vpow2.f32 %v1409_v60  ;;  %v1410_v61 = vmul.f32 -1.442695, %v700_v59 }
 0x1be   : > { %1613 = vpow2.f32 %v1410_v61 }
 0x1c6   : > { %v1612_v62 = vpop.eup %1611 }
 0x1c7   : > { %v707_v63 = vadd.f32 1.0, %v1612_v62 }
 0x1c8   : > { %v1614_v0 = vpop.eup %1613 }
 0x1c9   : > { %v708_v1 = vadd.f32 1.0, %v1614_v0  ;;  %1615 = vrcp.f32 %v707_v63 }
 0x1cb   : > { %1617 = vrcp.f32 %v708_v1 }
 0x1d3   : > { %v1616_v2 = vpop.eup %1615 }
 0x1d4   : > { %v713_v5 = vmul.f32 %v1616_v2, %v665_v25 }
 0x1d5   : > { %v1618_v6 = vpop.eup %1617 }
 0x1d6   : > { %1491 = vmatprep.mubr.msk.f32.mxu1 %vm667_vm2, %v713_v5  ;;  %v714_v7 = vmul.f32 %v1618_v6, %v1854_v24 }
 0x1d8   : > { %1492 = vmatmul.mubr.msk.f32.vlgmr.msra.gmra.mrb[0].mxu1 %vm667_vm2, %v714_v7 }
 0x1d9   : > { %1557 = vmatpush3.bf16.msra.mxu1 %v1554_v38  ;;  %1502 = vmatprep.mubr.msk.f32.mxu1 %vm667_vm2, %v713_v5  ;;  %v1206_v5 = vstv %s1205_s20 }
 0x1da   : > { %1559 = vmatprep.subr.bf16.mxu1 %v1558_v8 }
 0x1dd   : > { %1561 = vmatpush3.bf16.msra.mxu1 %v1558_v8 }
 0x1de   : > { %1562 = vmatprep.subr.bf16.mxu1 %v1686_v9 }
 0x1e0   : > { %1503 = vmatmul.mubr.msk.f32.vlgmr.msra.gmra.mrb[2].mxu1 %vm667_vm2, %v714_v7 }
 0x1e1   : > { %1509 = vmatprep.mubr.msk.f32.mxu1 %vm1687_vm3, %v1688_v10 }
 0x2ab   : > { %v1493_v11 = vpop.f32.mrb[0].mxu1 }
 0x2ac   : > { %v803_v12 = vsel %vm802_vm4, %v1493_v11, -inf  ;;  %v791_v13 = vpop.f32.mrb[1].mxu1 }
 0x2ad   : > { %v801_v14 = vsel %vm800_vm5, %v791_v13, -inf }
 0x2ae   : > { %v804_v15 = vmax.f32 %v801_v14, %v803_v12 }
 0x2b0   : > { %v805_v16 = vrot.slane %v804_v15, 4 }
 0x2b2   : > { %v806_v17 = vmax.f32 %v804_v15, %v805_v16 }
 0x2b3   : > { %v1504_v18 = vpop.f32.mrb[2].mxu1 }
 0x2b4   : > { %v807_v19 = vrot.slane %v806_v17, 2  ;;  %v899_v20 = vpop.f32.mrb[3].mxu1 }
 0x2b5   : > { %v1563_v22 = vpack.c.bf16 %v1504_v18, %v899_v20 }
 0x2b6   : > { %v808_v23 = vmax.f32 %v806_v17, %v807_v19  ;;  %v1420_v19 = vld [vmem:[%s1964_s11] ss:$0 sm:$0xff] }
 0x2b7   : > { %1565 = vmatpush3.bf16.msk.msra.mxu1 %vm1895_vm8, %v1563_v22 }
 0x2b8   : > { %v809_v24 = vrot.slane %v808_v23, 1  ;;  %1566 = vmatprep.subr.bf16.mxu1 %v1686_v9  ;;  %v1213_v9 = vstv %s1424_s21 }
 0x2ba   : > { %v810_v25 = vmax.f32 %v808_v23, %v809_v24 }
 0x2bc   : > { %v811_v26 = vsub.f32 %v791_v13, %v810_v25  ;;  %v812_v27 = vsub.f32 %v1493_v11, %v810_v25 }
 0x2be   : > { %v813_v28 = vmul.f32 1.442695, %v811_v26  ;;  %v815_v29 = vmul.f32 1.442695, %v812_v27 }
 0x2c0   : > { %1619 = vpow2.f32 %v813_v28 }
 0x2c1   : > { %1621 = vpow2.f32 %v815_v29 }
 0x2ca   : > { %v1620_v30 = vpop.eup %1619 }
 0x2cb   : > { %v1622_v31 = vpop.eup %1621  ;;  %v817_v32 = vsel %vm800_vm5, %v1620_v30, 0.0 }
 0x2cc   : > { %v818_v33 = vsel %vm802_vm4, %v1622_v31, 0.0 }
 0x2cd   : > { %v819_v34 = vadd.f32 %v818_v33, %v817_v32 }
 0x2cf   : > { %v820_v35 = vrot.slane %v819_v34, 4 }
 0x2d1   : > { %v821_v36 = vadd.f32 %v820_v35, %v819_v34 }
 0x2d3   : > { %v822_v37 = vrot.slane %v821_v36, 2 }
 0x2d5   : > { %v823_v38 = vadd.f32 %v822_v37, %v821_v36 }
 0x2d7   : > { %v824_v39 = vrot.slane %v823_v38, 1 }
 0x2d9   : > { %v825_v40 = vadd.f32 %v824_v39, %v823_v38 }
 0x2db   : > { %1623 = vrcp.f32 %v825_v40 }
 0x2e5   : > { %v1624_v41 = vpop.eup %1623 }
 0x2e6   : > { %v827_v42 = vmul.f32 %v1624_v41, %v1620_v30  ;;  %v828_v43 = vmul.f32 %v1624_v41, %v1622_v31 }
 0x2e8   : > { %908 = vxpose.xlu1.b32.start [1/2] (short) (narrow) %v827_v42, 8 }
 0x2ec   : > { %909 = vxpose.xlu1.b32.end [2/2] (short) (narrow) %v828_v43, 8 }
 0x368   : > { %v924_v47 = vpop.trf.xlu1 }
 0x369   : > { %1510 = vmatmul.mubr.msk.f32.vlgmr.msra.gmra.mrb[4].mxu1 %vm940_vm9, %v924_v47 }
 0x36a   : > { %1569 = vmatpush3.bf16.msk.msra.mxu1 %vm1895_vm8, %v1567_v46  ;;  %1516 = vmatprep.mubr.msk.f32.mxu1 %vm1687_vm3, %v1688_v10 }
 0x36d   : > { %1517 = vmatmul.mubr.msk.f32.vlgmr.msra.gmra.mrb[6].mxu1 %vm940_vm9, %v1020_v48 }
 0x43c   : > { %v1014_v55 = vpop.f32.mrb[4].mxu1 }
 0x43d   : > { %1019 = vst.msk [vmem:[%s545_s19] sm:$0x1f] %vm1018_vm10, %v1014_v55  ;;  %v1511_v56 = vpop.f32.mrb[5].mxu1 }
 0x440   : > { %v1095_v57 = vpop.f32.mrb[6].mxu1 }
 0x441   : > { %v1419_v58 = vmul.f32 -1.442695, %v1095_v57  ;;  %v1518_v59 = vpop.f32.mrb[7].mxu1 }
 0x443   : > { %1625 = vpow2.f32 %v1419_v58 }
 0x44d   : > { %v1626_v60 = vpop.eup %1625 }
 0x44e   : > { %v1102_v61 = vadd.f32 1.0, %v1626_v60 }
 0x450   : > { %1627 = vrcp.f32 %v1102_v61 }
 0x45a   : > { %v1628_v62 = vpop.eup %1627 }
 0x45b   : > { %v1105_v63 = vmul.f32 %v1628_v62, %v1095_v57 }
 0x45d   : > { %1528 = vmatmul.mubr.msk.f32.vlgmr.msra.gmra.mrb[2].mxu0 %vm667_vm2, %v1105_v63  ;;  %v1201_v0 = vsel %vm1018_vm10, %v1105_v63, 0.0  ;;  %v1198_v1 = vsel %vm1018_vm10, %v1105_v63, -inf }
 0x45e   : > { %1202 = vadd.xlane.f32.xlu0 %v1201_v0 }
 0x462   : > { %1199 = vmax.xlane.f32.xlu0 %v1198_v1 }
 0x4eb   : > { %v1203_v2 = vpop.xlane.xlu0 %1202 }
 0x4ec   : > { %v1204_v3 = vmul.f32 0.03125, %v1203_v2 }
 0x4ee   : > { %v1210_v7 = vmul.f32 %v1209_v4, %v1204_v3 }
 0x4ef   : > { %v1200_v6 = vpop.xlane.xlu0 %1199 }
 0x4f0   : > { %v1207_v8 = vmul.f32 %v1206_v5, %v1200_v6 }
 0x4f2   : > { %v1211_v10 = vadd.f32 %v1210_v7, %v1207_v8 }
 0x4f4   : > { %v1214_v11 = vadd.f32 %v1213_v9, %v1211_v10 }
 0x4f6   : > { %v1215_v12 = vmul.f32 0.999995, %v1214_v11 }
 0x4f8   : > { %v1216_v13 = vmax.f32 %v1215_v12, 0.0 }
 0x4fa   : > { %v1425_v14 = vmul.f32 -1.442695, %v1216_v13 }
 0x4fc   : > { %1629 = vpow2.f32 %v1425_v14 }
 0x506   : > { %v1630_v15 = vpop.eup %1629 }
 0x507   : > { %v1220_v16 = vadd.f32 1.0, %v1630_v15 }
 0x509   : > { %1631 = vrcp.f32 %v1220_v16 }
 0x513   : > { %v1632_v17 = vpop.eup %1631 }
 0x514   : > { %v1223_v18 = vmul.f32 %v1632_v17, %v1105_v63 }
 0x516   : > { %1224 = vst.msk [vmem:[%s553_s25] sm:$0x1f] %vm1018_vm10, %v1223_v18 }
 0x530   : > { %v1186_v20 = vpop.f32.mrb[2].mxu0 }
 0x531   : > { %v1187_v21 = vadd.f32 %v1420_v19, %v1186_v20  ;;  %v1529_v22 = vpop.f32.mrb[3].mxu0 }
 0x533   : > { %v1422_v23 = vmul.f32 -1.442695, %v1187_v21 }
 0x535   : > { %1633 = vpow2.f32 %v1422_v23 }
 0x53f   : > { %v1634_v24 = vpop.eup %1633 }
 0x540   : > { %v1193_v25 = vadd.f32 1.0, %v1634_v24 }
 0x542   : > { %1635 = vrcp.f32 %v1193_v25 }
 0x54c   : > { %v1636_v26 = vpop.eup %1635 }
 0x54d   : > { %1197 = vst.msk [vmem:[%s549_s15] sm:$0x1f] %vm1196_vm11, %v1636_v26 }
 0x54e PF: > { %s27_s29 = sadd.s32 1, %s1681_s29  }
 0x54f   : > { %p24_p5 = scmp.ge.s32.totalorder %s27_s29, 4  }
 0x551   :  { %26 = sbr.rel (!%p24_p5) target bundleno = 2 (0x2), region = 137 }
 0x558   :  { %1272 = vsyncpa [#allocation3], 1 }
 0x559   :  { %1274 = vsyncpa [#allocation3 + $0x1], 1 }
 0x55a   :  { %1275 = vsyncpa [#allocation5], 1 }

</bundles_post_ra>
